<compile_context>
chip_gen: v6e
topology: v6e:2x2x1
jax: 0.10.0
libtpu: 0.0.40
codegen_flags: <defaults>
</compile_context>

<pallas_src>
import math
import functools

import jax
import jax.numpy as jnp
from jax import lax
from jax.experimental import pallas as pl
from jax.experimental.pallas import tpu as pltpu


# ----------------------------- small helpers -----------------------------

def _round_up(x, m):
    return ((x + m - 1) // m) * m


def _pick_chunk(tk, target):
    """Largest chunk <= target that divides tk (and is >= 128), else tk (no chunking)."""
    if tk <= target:
        return tk
    for c in range(target, 127, -1):
        if tk % c == 0:
            return c
    return tk


def _vmem_cap_bytes():
    try:
        return int(pltpu.get_tpu_info().vmem_capacity_bytes)
    except Exception:
        return 64 * 1024 * 1024          # conservative: v7x per-TensorCore VMEM


def _clamp_vmem_limit(estimate_bytes):
    cap = _vmem_cap_bytes()
    return int(max(32 * 1024 * 1024, min(int(estimate_bytes), int(0.9 * cap))))


# ----------------------------- in-kernel math helpers -----------------------------

def _layernorm(x, g, b, eps=1e-5):
    mu = jnp.mean(x, axis=-1, keepdims=True)
    xc = x - mu
    var = jnp.mean(xc * xc, axis=-1, keepdims=True)
    return xc * lax.rsqrt(var + eps) * g + b


_GELU_C = math.sqrt(2.0 / math.pi)


def _gelu(x):
    # tanh-form GELU: exp/tanh run on the EUP slot, essentially free next to the FFN matmuls.
    # TODO(synk): PyTorch F.gelu default is the exact erf form; tanh approx differs by <1e-3.
    return 0.5 * x * (1.0 + jnp.tanh(_GELU_C * (x + 0.044715 * x * x * x)))


def _linear(x, w, b):
    """y = x @ w + b with bf16 MXU operands and f32 accumulation.
    x: (B, T, Din), w: (Din, Dout) bf16, b: (1, Dout) f32 -> (B, T, Dout) f32."""
    B, T, Din = x.shape
    y = jnp.dot(x.reshape(B * T, Din).astype(jnp.bfloat16),
                w.astype(jnp.bfloat16),
                preferred_element_type=jnp.float32)
    return (y + b).reshape(B, T, -1)


def _mha(q, k, v, wo, bo, num_heads, *, causal, mask, kv_chunk):
    """Multi-head attention with an online (flash-style) softmax over Tk chunks.

    q: (B, Tq, D) f32, pre-scaled.  k, v: (B, Tk, D).  wo: (D, D) bf16, bo: (1, D) f32.
    Head outputs are never concatenated: each head's (Tq, Dh) output is projected through its
    (Dh, D) slice of wo and accumulated into one lane-dense (B*Tq, D) f32 buffer.
    Returns (B, Tq, D) f32 (= concat-heads @ wo + bo)."""
    B, Tq, D = q.shape
    Tk = k.shape[1]
    H = num_heads
    Dh = D // H

    # One cast each (hoisted out of the head / chunk loops).
    qb = q.astype(jnp.bfloat16)
    kb = k.astype(jnp.bfloat16)
    vb = v.astype(jnp.bfloat16)
    wob = wo.astype(jnp.bfloat16)

    C = _pick_chunk(Tk, kv_chunk)
    n_chunks = Tk // C

    # Per-chunk mask pieces are identical across heads -> hoisted.
    keep, bias = None, None
    if causal:
        rows = lax.broadcasted_iota(jnp.int32, (Tq, C), 0)
        cols = lax.broadcasted_iota(jnp.int32, (Tq, C), 1)
        keep = [((cols + c * C) <= rows)[None, :, :] for c in range(n_chunks)]
    elif mask is not None:
        bias = [mask[None, :, c * C:(c + 1) * C] for c in range(n_chunks)]

    out = jnp.zeros((B * Tq, D), jnp.float32)
    for h in range(H):
        hs = slice(h * Dh, (h + 1) * Dh)
        qh = qb[:, :, hs]
        m = jnp.full((B, Tq, 1), -jnp.inf, jnp.float32)
        ssum = jnp.zeros((B, Tq, 1), jnp.float32)
        acc = jnp.zeros((B, Tq, Dh), jnp.float32)
        for c in range(n_chunks):
            ck = slice(c * C, (c + 1) * C)
            s = jnp.einsum('bqd,bkd->bqk', qh, kb[:, ck, hs],
                           preferred_element_type=jnp.float32)
            if keep is not None:
                s = jnp.where(keep[c], s, -1e30)
            elif bias is not None:
                s = s + bias[c]
            m_new = jnp.maximum(m, jnp.max(s, axis=-1, keepdims=True))
            p = jnp.exp(s - m_new)
            alpha = jnp.exp(m - m_new)
            ssum = alpha * ssum + jnp.sum(p, axis=-1, keepdims=True)
            acc = alpha * acc + jnp.einsum('bqk,bkd->bqd', p.astype(jnp.bfloat16),
                                           vb[:, ck, hs],
                                           preferred_element_type=jnp.float32)
            m = m_new
        o_h = acc * pl.reciprocal(ssum, approx=True)          # (B, Tq, Dh) f32
        out = out + jnp.dot(o_h.reshape(B * Tq, Dh).astype(jnp.bfloat16), wob[hs, :],
                            preferred_element_type=jnp.float32)
    return (out + bo).reshape(B, Tq, D)


# ----------------------------- decoder-stack kernel -----------------------------

_WEIGHT_ORDER = ('sqkv_w', 'sqkv_b', 'so_w', 'so_b', 'n1_g', 'n1_b',
                 'cq_w', 'cq_b', 'ckv_w', 'ckv_b', 'co_w', 'co_b', 'n2_g', 'n2_b',
                 'f1_w', 'f1_b', 'f2_w', 'f2_b', 'n3_g', 'n3_b')
_BIG_SLABS = ('sqkv_w', 'f1_w', 'f2_w')


def _decoder_stack_kernel(num_heads, causal, has_mask, kv_chunk, *refs):
    """Whole nn.TransformerDecoder stack: grid = (batch_tiles ["parallel"], depth ["arbitrary"]).
    Per-layer weight refs carry a leading size-1 depth dim indexed by the grid."""
    if has_mask:
        x_in, mem_ref, mask_ref = refs[0], refs[1], refs[2]
        rest = refs[3:]
    else:
        x_in, mem_ref = refs[0], refs[1]
        mask_ref = None
        rest = refs[2:]

    (sqkv_w, sqkv_b, so_w, so_b, n1_g, n1_b,
     cq_w, cq_b, ckv_w, ckv_b, co_w, co_b, n2_g, n2_b,
     f1_w, f1_b, f2_w, f2_b, n3_g, n3_b,
     fng_ref, fnb_ref, out_ref) = rest

    l = pl.program_id(1)
    n_layers = pl.num_programs(1)

    # Seed the resident residual stream once per batch tile (output block index is constant
    # across the depth axis, so it stays in VMEM for the whole stack).
    @pl.when(l == 0)
    def _():
        out_ref[...] = x_in[...].astype(jnp.float32)

    x = out_ref[...]                       # (Bt, T, D) f32 residual stream
    mem = mem_ref[...]                     # (Bt, S, D) bf16
    mask = mask_ref[...] if has_mask else None

    D = x.shape[-1]
    inv_sqrt_dh = 1.0 / math.sqrt(D // num_heads)

    # ---- masked self-attention (fused QKV, per-head-accumulated out-proj) + add & norm ----
    qkv = _linear(x, sqkv_w[0], sqkv_b[0])
    sa = _mha(qkv[:, :, :D] * inv_sqrt_dh, qkv[:, :, D:2 * D], qkv[:, :, 2 * D:],
              so_w[0], so_b[0], num_heads, causal=causal, mask=mask, kv_chunk=kv_chunk)
    x = _layernorm(x + sa, n1_g[0], n1_b[0])

    # ---- cross-attention over memory (fused KV projection) + add & norm ----
    # TODO(synk): memory_mask / tgt_key_padding_mask / memory_key_padding_mask not implemented.
    qc = _linear(x, cq_w[0], cq_b[0]) * inv_sqrt_dh
    kv = _linear(mem, ckv_w[0], ckv_b[0])
    ca = _mha(qc, kv[:, :, :D], kv[:, :, D:], co_w[0], co_b[0], num_heads,
              causal=False, mask=None, kv_chunk=kv_chunk)
    x = _layernorm(x + ca, n2_g[0], n2_b[0])

    # ---- feed-forward (tanh-gelu) + add & norm ----
    # TODO(synk): at production D/F, stream f1_w/f2_w over d_ff tiles (inner grid axis or
    # emit_pipeline + f32 accumulator) so one layer's weights never have to fit VMEM whole.
    h = _gelu(_linear(x, f1_w[0], f1_b[0]))
    x = _layernorm(x + _linear(h, f2_w[0], f2_b[0]), n3_g[0], n3_b[0])

    @pl.when(l < n_layers - 1)
    def _():
        out_ref[...] = x

    # Last layer: fuse the decoder's trailing LayerNorm so the vocab head is pure matmul.
    @pl.when(l == n_layers - 1)
    def _():
        out_ref[...] = _layernorm(x, fng_ref[...], fnb_ref[...])


def decoder_stack(x, memory, mask, layers, fnorm_g, fnorm_b, num_heads, *,
                  causal=False, batch_tiles=1, kv_chunk=512):
    """x, memory are bf16 (B,T,D)/(B,S,D); returns the final-LayerNormed f32 residual (B,T,D)."""
    depth = layers[_WEIGHT_ORDER[0]].shape[0]
    B, T, D = x.shape
    S = memory.shape[1]
    F = layers['f1_w'].shape[2]
    assert B % batch_tiles == 0
    Bt = B // batch_tiles
    has_mask = (mask is not None) and (not causal)

    # ---- VMEM accounting: explicit limit + gated single-buffering of the big slabs ----
    def slab_bytes(key):
        a = layers[key]
        return int(math.prod(a.shape[1:])) * a.dtype.itemsize

    big_bytes = sum(slab_bytes(k) for k in _BIG_SLABS)
    small_bytes = sum(slab_bytes(k) for k in _WEIGHT_ORDER) - big_bytes
    cap = _vmem_cap_bytes()
    single_buffer_big = (2 * big_bytes) > int(0.4 * cap)
    big_bufs = 1 if single_buffer_big else 2

    Ce = _pick_chunk(max(T, S), kv_chunk)
    resident = Bt * T * D * 4 + Bt * T * D * 2 + Bt * S * D * 2   # out f32 + x bf16 + mem bf16
    resident += T * T * 4 if has_mask else 0
    transient = 4 * Bt * T * (3 * D + F + 8 * D) + 4 * Bt * T * Ce
    est = resident + big_bufs * big_bytes + 2 * small_bytes + transient + (4 << 20)
    vmem_limit = _clamp_vmem_limit(est)

    # ---- BlockSpecs ----
    def resident_batch_spec(arr):
        return pl.BlockSpec((Bt,) + arr.shape[1:], lambda b, l: (b, 0, 0))

    def const_spec(arr):
        nd = arr.ndim
        return pl.BlockSpec(arr.shape, lambda b, l, nd=nd: (0,) * nd)

    def layer_spec(arr, single_buffer=False):
        bs = (1,) + arr.shape[1:]
        if single_buffer:
            # Pragmatic v7x-fit knob: halve the dominant VMEM term at the cost of exposed DMA.
            return pl.BlockSpec(bs, lambda b, l: (l, 0, 0), pipeline_mode=pl.Buffered(1))
        return pl.BlockSpec(bs, lambda b, l: (l, 0, 0))

    w_arrays = [layers[k] for k in _WEIGHT_ORDER]
    w_specs = [layer_spec(layers[k], single_buffer=(single_buffer_big and k in _BIG_SLABS))
               for k in _WEIGHT_ORDER]

    inputs = [x, memory] + ([mask] if has_mask else []) + w_arrays + [fnorm_g, fnorm_b]
    in_specs = ([resident_batch_spec(x), resident_batch_spec(memory)]
                + ([const_spec(mask)] if has_mask else [])
                + w_specs
                + [const_spec(fnorm_g), const_spec(fnorm_b)])

    return pl.pallas_call(
        functools.partial(_decoder_stack_kernel, num_heads, causal, has_mask, kv_chunk),
        grid=(batch_tiles, depth),
        in_specs=in_specs,
        out_specs=pl.BlockSpec((Bt, T, D), lambda b, l: (b, 0, 0)),
        out_shape=jax.ShapeDtypeStruct((B, T, D), jnp.float32),
        compiler_params=pltpu.CompilerParams(
            dimension_semantics=("parallel", "arbitrary"),
            vmem_limit_bytes=vmem_limit),
    )(*inputs)


# ----------------------------- vocab head kernel -----------------------------

def _head_kernel(x_ref, w_ref, b_ref, out_ref):
    """Final Linear(dModel -> vocab): bf16 tiles in, f32 accumulate, lane-dense stores."""
    out_ref[...] = (jnp.dot(x_ref[...], w_ref[...],
                            preferred_element_type=jnp.float32) + b_ref[...])


def decoder_head(x2d, fc_w, fc_b, *, tn=512, tm=256):
    """x2d: (BT, D) bf16 (cast once in the wrapper).  Vocab is padded to a lane-dense multiple
    so every output tile is an unmasked 128-aligned store; BT is tiled when large."""
    BT, D = x2d.shape
    V = fc_w.shape[1]
    TN = tn if V >= tn else _round_up(V, 128)
    Vp = _round_up(V, TN)
    fc_w = fc_w.astype(jnp.bfloat16)
    if Vp != V:
        fc_w = jnp.pad(fc_w, ((0, 0), (0, Vp - V)))
        fc_b = jnp.pad(fc_b, ((0, 0), (0, Vp - V)))
    TM = tm if BT % tm == 0 else BT

    est = 2 * (TM * D * 2 + D * TN * 2 + TN * 4 + TM * TN * 4) + (2 << 20)
    out = pl.pallas_call(
        _head_kernel,
        grid=(BT // TM, Vp // TN),
        in_specs=[pl.BlockSpec((TM, D), lambda i, j: (i, 0)),
                  pl.BlockSpec((D, TN), lambda i, j: (0, j)),
                  pl.BlockSpec((1, TN), lambda i, j: (0, j))],
        out_specs=pl.BlockSpec((TM, TN), lambda i, j: (i, j)),
        out_shape=jax.ShapeDtypeStruct((BT, Vp), jnp.float32),
        compiler_params=pltpu.CompilerParams(
            dimension_semantics=("parallel", "parallel"),
            vmem_limit_bytes=_clamp_vmem_limit(est)),
    )(x2d, fc_w, fc_b)
    return out[:, :V] if Vp != V else out


# ----------------------------- full forward -----------------------------

def positional_encoding(T, D):
    pos = jnp.arange(T, dtype=jnp.float32)[:, None]
    div = jnp.exp(jnp.arange(0, D, 2, dtype=jnp.float32) * (-math.log(10000.0) / D))
    pe = jnp.zeros((T, D), jnp.float32)
    pe = pe.at[:, 0::2].set(jnp.sin(pos * div))
    pe = pe.at[:, 1::2].set(jnp.cos(pos * div))
    return pe


def transformer_decoder_forward(params, tgt_tokens, memory, tgt_mask=None, *, causal=False):
    """Eval-mode forward (dropout = identity).  causal=True generates the causal tgt mask
    in-kernel (no (T,T) DMA); otherwise an additive (T,T) tgt_mask array may be supplied."""
    B, T = tgt_tokens.shape
    D = params['d_model']

    # token embedding * sqrt(dModel) + sinusoidal PE
    x = params['tok_embed'][tgt_tokens] * math.sqrt(D)
    x = x + positional_encoding(T, D)[None, :, :]

    mask = None if (tgt_mask is None or causal) else tgt_mask.astype(jnp.float32)

    # Megacore batch tiling only when each tile keeps enough work to stay compute-bound
    # (otherwise both cores just re-read the weights).  TODO(synk): also keep Bt*T a
    # multiple of 256 (v6e/v7x MXU) / 128 (v5e) at production shapes.
    batch_tiles = B if (B > 1 and T * D >= 256 * 1024) else 1

    x = decoder_stack(x.astype(jnp.bfloat16), memory.astype(jnp.bfloat16), mask,
                      params['layers'], params['norm_g'], params['norm_b'],
                      params['num_heads'], causal=causal, batch_tiles=batch_tiles)

    # Single wrapper-side cast: the head consumes bf16 activations (half the resident block,
    # no repeated per-vocab-tile casts inside the kernel).
    logits = decoder_head(x.reshape(B * T, D).astype(jnp.bfloat16),
                          params['fc_w'], params['fc_b'])
    return logits.reshape(B, T, -1)


# ----------------------------- deterministic parameter init -----------------------------

def init_params(key, d_model, num_heads, depth, vocab, d_ff):
    keys = iter(jax.random.split(key, 64))

    def wmat(shape, scale=0.02):        # matmul weights stored in bf16 (halves HBM traffic)
        return (jax.random.normal(next(keys), shape, jnp.float32) * scale).astype(jnp.bfloat16)

    def bvec(shape, scale=0.02):        # biases / norm params stay f32
        return jax.random.normal(next(keys), shape, jnp.float32) * scale

    D, F = d_model, d_ff
    layers = dict(
        sqkv_w=wmat((depth, D, 3 * D)), sqkv_b=bvec((depth, 1, 3 * D)),
        so_w=wmat((depth, D, D)),       so_b=bvec((depth, 1, D)),
        n1_g=jnp.ones((depth, 1, D), jnp.float32), n1_b=jnp.zeros((depth, 1, D), jnp.float32),
        cq_w=wmat((depth, D, D)),       cq_b=bvec((depth, 1, D)),
        ckv_w=wmat((depth, D, 2 * D)),  ckv_b=bvec((depth, 1, 2 * D)),
        co_w=wmat((depth, D, D)),       co_b=bvec((depth, 1, D)),
        n2_g=jnp.ones((depth, 1, D), jnp.float32), n2_b=jnp.zeros((depth, 1, D), jnp.float32),
        f1_w=wmat((depth, D, F)),       f1_b=bvec((depth, 1, F)),
        f2_w=wmat((depth, F, D)),       f2_b=bvec((depth, 1, D)),
        n3_g=jnp.ones((depth, 1, D), jnp.float32), n3_b=jnp.zeros((depth, 1, D), jnp.float32),
    )
    return dict(
        d_model=d_model, num_heads=num_heads,
        tok_embed=jax.random.normal(next(keys), (vocab, D), jnp.float32),
        layers=layers,
        norm_g=jnp.ones((1, D), jnp.float32), norm_b=jnp.zeros((1, D), jnp.float32),
        fc_w=wmat((D, vocab)), fc_b=jnp.zeros((1, vocab), jnp.float32),
    )


# ----------------------------- main -----------------------------

if __name__ == "__main__":
    B, T, S = 2, 8, 8
    d_model, num_heads, depth, vocab, d_ff = 32, 4, 2, 128, 64

    key = jax.random.PRNGKey(0)
    kp, kt, km = jax.random.split(key, 3)

    params = init_params(kp, d_model, num_heads, depth, vocab, d_ff)
    tgt = jax.random.randint(kt, (B, T), 0, vocab)
    memory = jax.random.normal(km, (B, S, d_model), jnp.float32)

    # causal tgt mask is generated in-kernel (broadcasted_iota); no (T,T) mask array is DMA'd.
    out = transformer_decoder_forward(params, tgt, memory, causal=True)
    out = jax.block_until_ready(out)

    assert out.shape == (B, T, vocab)
    assert jnp.all(jnp.isfinite(out))
    print("KERNEL_OK")
</pallas_src>

<mosaic_0001>
module attributes {stable_mosaic.version = 11 : i64} {
  func.func @_decoder_stack_kernel(%arg0: i32, %arg1: i32, %arg2: memref<2x8x32xbf16, #tpu.memory_space<vmem>>, %arg3: memref<2x8x32xbf16, #tpu.memory_space<vmem>>, %arg4: memref<1x32x96xbf16, #tpu.memory_space<vmem>>, %arg5: memref<1x1x96xf32, #tpu.memory_space<vmem>>, %arg6: memref<1x32x32xbf16, #tpu.memory_space<vmem>>, %arg7: memref<1x1x32xf32, #tpu.memory_space<vmem>>, %arg8: memref<1x1x32xf32, #tpu.memory_space<vmem>>, %arg9: memref<1x1x32xf32, #tpu.memory_space<vmem>>, %arg10: memref<1x32x32xbf16, #tpu.memory_space<vmem>>, %arg11: memref<1x1x32xf32, #tpu.memory_space<vmem>>, %arg12: memref<1x32x64xbf16, #tpu.memory_space<vmem>>, %arg13: memref<1x1x64xf32, #tpu.memory_space<vmem>>, %arg14: memref<1x32x32xbf16, #tpu.memory_space<vmem>>, %arg15: memref<1x1x32xf32, #tpu.memory_space<vmem>>, %arg16: memref<1x1x32xf32, #tpu.memory_space<vmem>>, %arg17: memref<1x1x32xf32, #tpu.memory_space<vmem>>, %arg18: memref<1x32x64xbf16, #tpu.memory_space<vmem>>, %arg19: memref<1x1x64xf32, #tpu.memory_space<vmem>>, %arg20: memref<1x64x32xbf16, #tpu.memory_space<vmem>>, %arg21: memref<1x1x32xf32, #tpu.memory_space<vmem>>, %arg22: memref<1x1x32xf32, #tpu.memory_space<vmem>>, %arg23: memref<1x1x32xf32, #tpu.memory_space<vmem>>, %arg24: memref<1x32xf32, #tpu.memory_space<vmem>>, %arg25: memref<1x32xf32, #tpu.memory_space<vmem>>, %arg26: memref<2x8x32xf32, #tpu.memory_space<vmem>>) attributes {dimension_semantics = [#tpu.dimension_semantics<parallel>, #tpu.dimension_semantics<arbitrary>], iteration_bounds = array<i64: 1, 2>, scalar_prefetch = 0 : i64, scratch_operands = 0 : i64, tpu.core_type = #tpu.core_type<tc>, window_params = [{transform_indices = @transform_0, window_bounds = array<i64: 2, 8, 32>}, {transform_indices = @transform_1, window_bounds = array<i64: 2, 8, 32>}, {transform_indices = @transform_2, window_bounds = array<i64: 1, 32, 96>}, {transform_indices = @transform_3, window_bounds = array<i64: 1, 1, 96>}, {transform_indices = @transform_4, window_bounds = array<i64: 1, 32, 32>}, {transform_indices = @transform_5, window_bounds = array<i64: 1, 1, 32>}, {transform_indices = @transform_6, window_bounds = array<i64: 1, 1, 32>}, {transform_indices = @transform_7, window_bounds = array<i64: 1, 1, 32>}, {transform_indices = @transform_8, window_bounds = array<i64: 1, 32, 32>}, {transform_indices = @transform_9, window_bounds = array<i64: 1, 1, 32>}, {transform_indices = @transform_10, window_bounds = array<i64: 1, 32, 64>}, {transform_indices = @transform_11, window_bounds = array<i64: 1, 1, 64>}, {transform_indices = @transform_12, window_bounds = array<i64: 1, 32, 32>}, {transform_indices = @transform_13, window_bounds = array<i64: 1, 1, 32>}, {transform_indices = @transform_14, window_bounds = array<i64: 1, 1, 32>}, {transform_indices = @transform_15, window_bounds = array<i64: 1, 1, 32>}, {transform_indices = @transform_16, window_bounds = array<i64: 1, 32, 64>}, {transform_indices = @transform_17, window_bounds = array<i64: 1, 1, 64>}, {transform_indices = @transform_18, window_bounds = array<i64: 1, 64, 32>}, {transform_indices = @transform_19, window_bounds = array<i64: 1, 1, 32>}, {transform_indices = @transform_20, window_bounds = array<i64: 1, 1, 32>}, {transform_indices = @transform_21, window_bounds = array<i64: 1, 1, 32>}, {pipeline_mode = #tpu.pipeline_mode<synchronous>, transform_indices = @transform_22, window_bounds = array<i64: 1, 32>}, {pipeline_mode = #tpu.pipeline_mode<synchronous>, transform_indices = @transform_23, window_bounds = array<i64: 1, 32>}, {transform_indices = @transform_24, window_bounds = array<i64: 2, 8, 32>}]} {
    %c0_i32 = arith.constant 0 : i32
    %0 = arith.cmpi eq, %arg1, %c0_i32 : i32
    %1 = arith.extui %0 : i1 to i32
    %c0_i32_0 = arith.constant 0 : i32
    %2 = arith.cmpi ne, %1, %c0_i32_0 : i32
    scf.if %2 {
      %c0_165 = arith.constant 0 : index
      %c0_166 = arith.constant 0 : index
      %c0_167 = arith.constant 0 : index
      %463 = vector.load %arg2[%c0_165, %c0_166, %c0_167] : memref<2x8x32xbf16, #tpu.memory_space<vmem>>, vector<2x8x32xbf16>
      %464 = arith.extf %463 : vector<2x8x32xbf16> to vector<2x8x32xf32>
      %c0_168 = arith.constant 0 : index
      %c0_169 = arith.constant 0 : index
      %c0_170 = arith.constant 0 : index
      %465 = vector.load %arg26[%c0_168, %c0_169, %c0_170] : memref<2x8x32xf32, #tpu.memory_space<vmem>>, vector<2x8x32xf32>
      tpu.vector_store %arg26[%c0_168, %c0_169, %c0_170], %464 {strides = array<i32>} : memref<2x8x32xf32, #tpu.memory_space<vmem>>, vector<2x8x32xf32>,
    } else {
    }
    %c0 = arith.constant 0 : index
    %c0_1 = arith.constant 0 : index
    %c0_2 = arith.constant 0 : index
    %3 = vector.load %arg26[%c0, %c0_1, %c0_2] : memref<2x8x32xf32, #tpu.memory_space<vmem>>, vector<2x8x32xf32>
    %c0_3 = arith.constant 0 : index
    %c0_4 = arith.constant 0 : index
    %c0_5 = arith.constant 0 : index
    %4 = vector.load %arg3[%c0_3, %c0_4, %c0_5] : memref<2x8x32xbf16, #tpu.memory_space<vmem>>, vector<2x8x32xbf16>
    %c0_6 = arith.constant 0 : index
    %c0_7 = arith.constant 0 : index
    %c0_8 = arith.constant 0 : index
    %5 = vector.load %arg4[%c0_6, %c0_7, %c0_8] : memref<1x32x96xbf16, #tpu.memory_space<vmem>>, vector<1x32x96xbf16>
    %6 = vector.shape_cast %5 : vector<1x32x96xbf16> to vector<32x96xbf16>
    %c0_9 = arith.constant 0 : index
    %c0_10 = arith.constant 0 : index
    %c0_11 = arith.constant 0 : index
    %7 = vector.load %arg5[%c0_9, %c0_10, %c0_11] : memref<1x1x96xf32, #tpu.memory_space<vmem>>, vector<1x1x96xf32>
    %8 = vector.shape_cast %7 : vector<1x1x96xf32> to vector<1x96xf32>
    %9 = vector.shape_cast %3 : vector<2x8x32xf32> to vector<16x32xf32>
    %10 = arith.truncf %9 : vector<16x32xf32> to vector<16x32xbf16>
    %cst = arith.constant dense<0.000000e+00> : vector<16x96xf32>
    %11 = tpu.matmul %10, %6, %cst {dimension_numbers = #tpu.dot_dimension_numbers<[1], [0], [0], [1], [0, 0, 1, 1], [], []>} : vector<16x32xbf16>, vector<32x96xbf16>, vector<16x96xf32> -> vector<16x96xf32>
    %12 = vector.broadcast %8 : vector<1x96xf32> to vector<16x96xf32>
    %13 = arith.addf %11, %12 : vector<16x96xf32>
    %14 = vector.shape_cast %13 : vector<16x96xf32> to vector<2x8x96xf32>
    %15 = vector.extract_strided_slice %14 {offsets = [0, 0, 0], sizes = [2, 8, 32], strides = [1, 1, 1]} : vector<2x8x96xf32> to vector<2x8x32xf32>
    %cst_12 = arith.constant 0.353553385 : f32
    %16 = vector.broadcast %cst_12 : f32 to vector<2x8x32xf32>
    %17 = arith.mulf %15, %16 : vector<2x8x32xf32>
    %18 = vector.extract_strided_slice %14 {offsets = [0, 0, 32], sizes = [2, 8, 32], strides = [1, 1, 1]} : vector<2x8x96xf32> to vector<2x8x32xf32>
    %19 = vector.extract_strided_slice %14 {offsets = [0, 0, 64], sizes = [2, 8, 32], strides = [1, 1, 1]} : vector<2x8x96xf32> to vector<2x8x32xf32>
    %c0_13 = arith.constant 0 : index
    %c0_14 = arith.constant 0 : index
    %c0_15 = arith.constant 0 : index
    %20 = vector.load %arg6[%c0_13, %c0_14, %c0_15] : memref<1x32x32xbf16, #tpu.memory_space<vmem>>, vector<1x32x32xbf16>
    %21 = vector.shape_cast %20 : vector<1x32x32xbf16> to vector<32x32xbf16>
    %c0_16 = arith.constant 0 : index
    %c0_17 = arith.constant 0 : index
    %c0_18 = arith.constant 0 : index
    %22 = vector.load %arg7[%c0_16, %c0_17, %c0_18] : memref<1x1x32xf32, #tpu.memory_space<vmem>>, vector<1x1x32xf32>
    %23 = vector.shape_cast %22 : vector<1x1x32xf32> to vector<1x32xf32>
    %24 = arith.truncf %17 : vector<2x8x32xf32> to vector<2x8x32xbf16>
    %25 = arith.truncf %18 : vector<2x8x32xf32> to vector<2x8x32xbf16>
    %26 = arith.truncf %19 : vector<2x8x32xf32> to vector<2x8x32xbf16>
    %27 = tpu.iota {dimensions = array<i32: 0>} : vector<8x8xi32>
    %28 = tpu.iota {dimensions = array<i32: 1>} : vector<8x8xi32>
    %c0_i32_19 = arith.constant 0 : i32
    %29 = vector.broadcast %c0_i32_19 : i32 to vector<8x8xi32>
    %30 = arith.addi %28, %29 : vector<8x8xi32>
    %31 = arith.cmpi sle, %30, %27 : vector<8x8xi32>
    %32 = vector.shape_cast %31 : vector<8x8xi1> to vector<1x8x8xi1>
    %cst_20 = arith.constant 0.000000e+00 : f32
    %33 = vector.broadcast %cst_20 : f32 to vector<16x32xf32>
    %34 = vector.extract_strided_slice %24 {offsets = [0, 0, 0], sizes = [2, 8, 8], strides = [1, 1, 1]} : vector<2x8x32xbf16> to vector<2x8x8xbf16>
    %cst_21 = arith.constant 0xFF800000 : f32
    %35 = vector.broadcast %cst_21 : f32 to vector<2x8x1xf32>
    %cst_22 = arith.constant 0.000000e+00 : f32
    %36 = vector.broadcast %cst_22 : f32 to vector<2x8x1xf32>
    %cst_23 = arith.constant 0.000000e+00 : f32
    %37 = vector.broadcast %cst_23 : f32 to vector<2x8x8xf32>
    %38 = vector.extract_strided_slice %25 {offsets = [0, 0, 0], sizes = [2, 8, 8], strides = [1, 1, 1]} : vector<2x8x32xbf16> to vector<2x8x8xbf16>
    "tpu.trace_start"() <{level = 10 : i32, message = "bqd,bkd->bqk"}> : () -> ()
    %cst_24 = arith.constant dense<0.000000e+00> : vector<2x8x8xf32>
    %39 = tpu.matmul %34, %38, %cst_24 {dimension_numbers = #tpu.dot_dimension_numbers<[2], [2], [1], [1], [0, 0, 0, 1, 1, 1], [0], [0]>} : vector<2x8x8xbf16>, vector<2x8x8xbf16>, vector<2x8x8xf32> -> vector<2x8x8xf32>
    %cst_25 = arith.constant -1.000000e+30 : f32
    "tpu.trace_stop"() : () -> ()
    %40 = vector.shape_cast %32 : vector<1x8x8xi1> to vector<1x8x8xi1>
    %41 = vector.broadcast %40 : vector<1x8x8xi1> to vector<2x8x8xi1>
    %42 = vector.broadcast %cst_25 : f32 to vector<2x8x8xf32>
    %43 = arith.select %41, %39, %42 : vector<2x8x8xi1>, vector<2x8x8xf32>
    %cst_26 = arith.constant dense<0xFF800000> : vector<2x8xf32>
    %44 = vector.multi_reduction <maximumf>, %43, %cst_26 [2] : vector<2x8x8xf32> to vector<2x8xf32>
    %45 = vector.shape_cast %44 : vector<2x8xf32> to vector<2x8x1xf32>
    %46 = arith.maximumf %35, %45 : vector<2x8x1xf32>
    %47 = vector.broadcast %46 : vector<2x8x1xf32> to vector<2x8x8xf32>
    %48 = arith.subf %43, %47 : vector<2x8x8xf32>
    %49 = math.exp %48 : vector<2x8x8xf32>
    %50 = arith.subf %35, %46 : vector<2x8x1xf32>
    %51 = math.exp %50 : vector<2x8x1xf32>
    %52 = arith.mulf %51, %36 : vector<2x8x1xf32>
    %cst_27 = arith.constant dense<0.000000e+00> : vector<2x8xf32>
    %53 = vector.multi_reduction <add>, %49, %cst_27 [2] : vector<2x8x8xf32> to vector<2x8xf32>
    %54 = vector.shape_cast %53 : vector<2x8xf32> to vector<2x8x1xf32>
    %55 = arith.addf %52, %54 : vector<2x8x1xf32>
    %56 = vector.broadcast %51 : vector<2x8x1xf32> to vector<2x8x8xf32>
    %57 = arith.mulf %56, %37 : vector<2x8x8xf32>
    %58 = arith.truncf %49 : vector<2x8x8xf32> to vector<2x8x8xbf16>
    %59 = vector.extract_strided_slice %26 {offsets = [0, 0, 0], sizes = [2, 8, 8], strides = [1, 1, 1]} : vector<2x8x32xbf16> to vector<2x8x8xbf16>
    "tpu.trace_start"() <{level = 10 : i32, message = "bqk,bkd->bqd"}> : () -> ()
    %cst_28 = arith.constant dense<0.000000e+00> : vector<2x8x8xf32>
    %60 = tpu.matmul %58, %59, %cst_28 {dimension_numbers = #tpu.dot_dimension_numbers<[2], [1], [1], [2], [0, 0, 0, 1, 1, 2], [0], [0]>} : vector<2x8x8xbf16>, vector<2x8x8xbf16>, vector<2x8x8xf32> -> vector<2x8x8xf32>
    "tpu.trace_stop"() : () -> ()
    %61 = arith.addf %57, %60 : vector<2x8x8xf32>
    %62 = tpu.reciprocal %55 {approx = true} : vector<2x8x1xf32> -> vector<2x8x1xf32>
    %63 = vector.broadcast %62 : vector<2x8x1xf32> to vector<2x8x8xf32>
    %64 = arith.mulf %61, %63 : vector<2x8x8xf32>
    %65 = vector.shape_cast %64 : vector<2x8x8xf32> to vector<16x8xf32>
    %66 = arith.truncf %65 : vector<16x8xf32> to vector<16x8xbf16>
    %67 = vector.extract_strided_slice %21 {offsets = [0, 0], sizes = [8, 32], strides = [1, 1]} : vector<32x32xbf16> to vector<8x32xbf16>
    %cst_29 = arith.constant dense<0.000000e+00> : vector<16x32xf32>
    %68 = tpu.matmul %66, %67, %cst_29 {dimension_numbers = #tpu.dot_dimension_numbers<[1], [0], [0], [1], [0, 0, 1, 1], [], []>} : vector<16x8xbf16>, vector<8x32xbf16>, vector<16x32xf32> -> vector<16x32xf32>
    %69 = arith.addf %33, %68 : vector<16x32xf32>
    %70 = vector.extract_strided_slice %24 {offsets = [0, 0, 8], sizes = [2, 8, 8], strides = [1, 1, 1]} : vector<2x8x32xbf16> to vector<2x8x8xbf16>
    %cst_30 = arith.constant 0xFF800000 : f32
    %71 = vector.broadcast %cst_30 : f32 to vector<2x8x1xf32>
    %cst_31 = arith.constant 0.000000e+00 : f32
    %72 = vector.broadcast %cst_31 : f32 to vector<2x8x1xf32>
    %cst_32 = arith.constant 0.000000e+00 : f32
    %73 = vector.broadcast %cst_32 : f32 to vector<2x8x8xf32>
    %74 = vector.extract_strided_slice %25 {offsets = [0, 0, 8], sizes = [2, 8, 8], strides = [1, 1, 1]} : vector<2x8x32xbf16> to vector<2x8x8xbf16>
    "tpu.trace_start"() <{level = 10 : i32, message = "bqd,bkd->bqk"}> : () -> ()
    %cst_33 = arith.constant dense<0.000000e+00> : vector<2x8x8xf32>
    %75 = tpu.matmul %70, %74, %cst_33 {dimension_numbers = #tpu.dot_dimension_numbers<[2], [2], [1], [1], [0, 0, 0, 1, 1, 1], [0], [0]>} : vector<2x8x8xbf16>, vector<2x8x8xbf16>, vector<2x8x8xf32> -> vector<2x8x8xf32>
    %cst_34 = arith.constant -1.000000e+30 : f32
    "tpu.trace_stop"() : () -> ()
    %76 = vector.shape_cast %32 : vector<1x8x8xi1> to vector<1x8x8xi1>
    %77 = vector.broadcast %76 : vector<1x8x8xi1> to vector<2x8x8xi1>
    %78 = vector.broadcast %cst_34 : f32 to vector<2x8x8xf32>
    %79 = arith.select %77, %75, %78 : vector<2x8x8xi1>, vector<2x8x8xf32>
    %cst_35 = arith.constant dense<0xFF800000> : vector<2x8xf32>
    %80 = vector.multi_reduction <maximumf>, %79, %cst_35 [2] : vector<2x8x8xf32> to vector<2x8xf32>
    %81 = vector.shape_cast %80 : vector<2x8xf32> to vector<2x8x1xf32>
    %82 = arith.maximumf %71, %81 : vector<2x8x1xf32>
    %83 = vector.broadcast %82 : vector<2x8x1xf32> to vector<2x8x8xf32>
    %84 = arith.subf %79, %83 : vector<2x8x8xf32>
    %85 = math.exp %84 : vector<2x8x8xf32>
    %86 = arith.subf %71, %82 : vector<2x8x1xf32>
    %87 = math.exp %86 : vector<2x8x1xf32>
    %88 = arith.mulf %87, %72 : vector<2x8x1xf32>
    %cst_36 = arith.constant dense<0.000000e+00> : vector<2x8xf32>
    %89 = vector.multi_reduction <add>, %85, %cst_36 [2] : vector<2x8x8xf32> to vector<2x8xf32>
    %90 = vector.shape_cast %89 : vector<2x8xf32> to vector<2x8x1xf32>
    %91 = arith.addf %88, %90 : vector<2x8x1xf32>
    %92 = vector.broadcast %87 : vector<2x8x1xf32> to vector<2x8x8xf32>
    %93 = arith.mulf %92, %73 : vector<2x8x8xf32>
    %94 = arith.truncf %85 : vector<2x8x8xf32> to vector<2x8x8xbf16>
    %95 = vector.extract_strided_slice %26 {offsets = [0, 0, 8], sizes = [2, 8, 8], strides = [1, 1, 1]} : vector<2x8x32xbf16> to vector<2x8x8xbf16>
    "tpu.trace_start"() <{level = 10 : i32, message = "bqk,bkd->bqd"}> : () -> ()
    %cst_37 = arith.constant dense<0.000000e+00> : vector<2x8x8xf32>
    %96 = tpu.matmul %94, %95, %cst_37 {dimension_numbers = #tpu.dot_dimension_numbers<[2], [1], [1], [2], [0, 0, 0, 1, 1, 2], [0], [0]>} : vector<2x8x8xbf16>, vector<2x8x8xbf16>, vector<2x8x8xf32> -> vector<2x8x8xf32>
    "tpu.trace_stop"() : () -> ()
    %97 = arith.addf %93, %96 : vector<2x8x8xf32>
    %98 = tpu.reciprocal %91 {approx = true} : vector<2x8x1xf32> -> vector<2x8x1xf32>
    %99 = vector.broadcast %98 : vector<2x8x1xf32> to vector<2x8x8xf32>
    %100 = arith.mulf %97, %99 : vector<2x8x8xf32>
    %101 = vector.shape_cast %100 : vector<2x8x8xf32> to vector<16x8xf32>
    %102 = arith.truncf %101 : vector<16x8xf32> to vector<16x8xbf16>
    %103 = vector.extract_strided_slice %21 {offsets = [8, 0], sizes = [8, 32], strides = [1, 1]} : vector<32x32xbf16> to vector<8x32xbf16>
    %cst_38 = arith.constant dense<0.000000e+00> : vector<16x32xf32>
    %104 = tpu.matmul %102, %103, %cst_38 {dimension_numbers = #tpu.dot_dimension_numbers<[1], [0], [0], [1], [0, 0, 1, 1], [], []>} : vector<16x8xbf16>, vector<8x32xbf16>, vector<16x32xf32> -> vector<16x32xf32>
    %105 = arith.addf %69, %104 : vector<16x32xf32>
    %106 = vector.extract_strided_slice %24 {offsets = [0, 0, 16], sizes = [2, 8, 8], strides = [1, 1, 1]} : vector<2x8x32xbf16> to vector<2x8x8xbf16>
    %cst_39 = arith.constant 0xFF800000 : f32
    %107 = vector.broadcast %cst_39 : f32 to vector<2x8x1xf32>
    %cst_40 = arith.constant 0.000000e+00 : f32
    %108 = vector.broadcast %cst_40 : f32 to vector<2x8x1xf32>
    %cst_41 = arith.constant 0.000000e+00 : f32
    %109 = vector.broadcast %cst_41 : f32 to vector<2x8x8xf32>
    %110 = vector.extract_strided_slice %25 {offsets = [0, 0, 16], sizes = [2, 8, 8], strides = [1, 1, 1]} : vector<2x8x32xbf16> to vector<2x8x8xbf16>
    "tpu.trace_start"() <{level = 10 : i32, message = "bqd,bkd->bqk"}> : () -> ()
    %cst_42 = arith.constant dense<0.000000e+00> : vector<2x8x8xf32>
    %111 = tpu.matmul %106, %110, %cst_42 {dimension_numbers = #tpu.dot_dimension_numbers<[2], [2], [1], [1], [0, 0, 0, 1, 1, 1], [0], [0]>} : vector<2x8x8xbf16>, vector<2x8x8xbf16>, vector<2x8x8xf32> -> vector<2x8x8xf32>
    %cst_43 = arith.constant -1.000000e+30 : f32
    "tpu.trace_stop"() : () -> ()
    %112 = vector.shape_cast %32 : vector<1x8x8xi1> to vector<1x8x8xi1>
    %113 = vector.broadcast %112 : vector<1x8x8xi1> to vector<2x8x8xi1>
    %114 = vector.broadcast %cst_43 : f32 to vector<2x8x8xf32>
    %115 = arith.select %113, %111, %114 : vector<2x8x8xi1>, vector<2x8x8xf32>
    %cst_44 = arith.constant dense<0xFF800000> : vector<2x8xf32>
    %116 = vector.multi_reduction <maximumf>, %115, %cst_44 [2] : vector<2x8x8xf32> to vector<2x8xf32>
    %117 = vector.shape_cast %116 : vector<2x8xf32> to vector<2x8x1xf32>
    %118 = arith.maximumf %107, %117 : vector<2x8x1xf32>
    %119 = vector.broadcast %118 : vector<2x8x1xf32> to vector<2x8x8xf32>
    %120 = arith.subf %115, %119 : vector<2x8x8xf32>
    %121 = math.exp %120 : vector<2x8x8xf32>
    %122 = arith.subf %107, %118 : vector<2x8x1xf32>
    %123 = math.exp %122 : vector<2x8x1xf32>
    %124 = arith.mulf %123, %108 : vector<2x8x1xf32>
    %cst_45 = arith.constant dense<0.000000e+00> : vector<2x8xf32>
    %125 = vector.multi_reduction <add>, %121, %cst_45 [2] : vector<2x8x8xf32> to vector<2x8xf32>
    %126 = vector.shape_cast %125 : vector<2x8xf32> to vector<2x8x1xf32>
    %127 = arith.addf %124, %126 : vector<2x8x1xf32>
    %128 = vector.broadcast %123 : vector<2x8x1xf32> to vector<2x8x8xf32>
    %129 = arith.mulf %128, %109 : vector<2x8x8xf32>
    %130 = arith.truncf %121 : vector<2x8x8xf32> to vector<2x8x8xbf16>
    %131 = vector.extract_strided_slice %26 {offsets = [0, 0, 16], sizes = [2, 8, 8], strides = [1, 1, 1]} : vector<2x8x32xbf16> to vector<2x8x8xbf16>
    "tpu.trace_start"() <{level = 10 : i32, message = "bqk,bkd->bqd"}> : () -> ()
    %cst_46 = arith.constant dense<0.000000e+00> : vector<2x8x8xf32>
    %132 = tpu.matmul %130, %131, %cst_46 {dimension_numbers = #tpu.dot_dimension_numbers<[2], [1], [1], [2], [0, 0, 0, 1, 1, 2], [0], [0]>} : vector<2x8x8xbf16>, vector<2x8x8xbf16>, vector<2x8x8xf32> -> vector<2x8x8xf32>
    "tpu.trace_stop"() : () -> ()
    %133 = arith.addf %129, %132 : vector<2x8x8xf32>
    %134 = tpu.reciprocal %127 {approx = true} : vector<2x8x1xf32> -> vector<2x8x1xf32>
    %135 = vector.broadcast %134 : vector<2x8x1xf32> to vector<2x8x8xf32>
    %136 = arith.mulf %133, %135 : vector<2x8x8xf32>
    %137 = vector.shape_cast %136 : vector<2x8x8xf32> to vector<16x8xf32>
    %138 = arith.truncf %137 : vector<16x8xf32> to vector<16x8xbf16>
    %139 = vector.extract_strided_slice %21 {offsets = [16, 0], sizes = [8, 32], strides = [1, 1]} : vector<32x32xbf16> to vector<8x32xbf16>
    %cst_47 = arith.constant dense<0.000000e+00> : vector<16x32xf32>
    %140 = tpu.matmul %138, %139, %cst_47 {dimension_numbers = #tpu.dot_dimension_numbers<[1], [0], [0], [1], [0, 0, 1, 1], [], []>} : vector<16x8xbf16>, vector<8x32xbf16>, vector<16x32xf32> -> vector<16x32xf32>
    %141 = arith.addf %105, %140 : vector<16x32xf32>
    %142 = vector.extract_strided_slice %24 {offsets = [0, 0, 24], sizes = [2, 8, 8], strides = [1, 1, 1]} : vector<2x8x32xbf16> to vector<2x8x8xbf16>
    %cst_48 = arith.constant 0xFF800000 : f32
    %143 = vector.broadcast %cst_48 : f32 to vector<2x8x1xf32>
    %cst_49 = arith.constant 0.000000e+00 : f32
    %144 = vector.broadcast %cst_49 : f32 to vector<2x8x1xf32>
    %cst_50 = arith.constant 0.000000e+00 : f32
    %145 = vector.broadcast %cst_50 : f32 to vector<2x8x8xf32>
    %146 = vector.extract_strided_slice %25 {offsets = [0, 0, 24], sizes = [2, 8, 8], strides = [1, 1, 1]} : vector<2x8x32xbf16> to vector<2x8x8xbf16>
    "tpu.trace_start"() <{level = 10 : i32, message = "bqd,bkd->bqk"}> : () -> ()
    %cst_51 = arith.constant dense<0.000000e+00> : vector<2x8x8xf32>
    %147 = tpu.matmul %142, %146, %cst_51 {dimension_numbers = #tpu.dot_dimension_numbers<[2], [2], [1], [1], [0, 0, 0, 1, 1, 1], [0], [0]>} : vector<2x8x8xbf16>, vector<2x8x8xbf16>, vector<2x8x8xf32> -> vector<2x8x8xf32>
    %cst_52 = arith.constant -1.000000e+30 : f32
    "tpu.trace_stop"() : () -> ()
    %148 = vector.shape_cast %32 : vector<1x8x8xi1> to vector<1x8x8xi1>
    %149 = vector.broadcast %148 : vector<1x8x8xi1> to vector<2x8x8xi1>
    %150 = vector.broadcast %cst_52 : f32 to vector<2x8x8xf32>
    %151 = arith.select %149, %147, %150 : vector<2x8x8xi1>, vector<2x8x8xf32>
    %cst_53 = arith.constant dense<0xFF800000> : vector<2x8xf32>
    %152 = vector.multi_reduction <maximumf>, %151, %cst_53 [2] : vector<2x8x8xf32> to vector<2x8xf32>
    %153 = vector.shape_cast %152 : vector<2x8xf32> to vector<2x8x1xf32>
    %154 = arith.maximumf %143, %153 : vector<2x8x1xf32>
    %155 = vector.broadcast %154 : vector<2x8x1xf32> to vector<2x8x8xf32>
    %156 = arith.subf %151, %155 : vector<2x8x8xf32>
    %157 = math.exp %156 : vector<2x8x8xf32>
    %158 = arith.subf %143, %154 : vector<2x8x1xf32>
    %159 = math.exp %158 : vector<2x8x1xf32>
    %160 = arith.mulf %159, %144 : vector<2x8x1xf32>
    %cst_54 = arith.constant dense<0.000000e+00> : vector<2x8xf32>
    %161 = vector.multi_reduction <add>, %157, %cst_54 [2] : vector<2x8x8xf32> to vector<2x8xf32>
    %162 = vector.shape_cast %161 : vector<2x8xf32> to vector<2x8x1xf32>
    %163 = arith.addf %160, %162 : vector<2x8x1xf32>
    %164 = vector.broadcast %159 : vector<2x8x1xf32> to vector<2x8x8xf32>
    %165 = arith.mulf %164, %145 : vector<2x8x8xf32>
    %166 = arith.truncf %157 : vector<2x8x8xf32> to vector<2x8x8xbf16>
    %167 = vector.extract_strided_slice %26 {offsets = [0, 0, 24], sizes = [2, 8, 8], strides = [1, 1, 1]} : vector<2x8x32xbf16> to vector<2x8x8xbf16>
    "tpu.trace_start"() <{level = 10 : i32, message = "bqk,bkd->bqd"}> : () -> ()
    %cst_55 = arith.constant dense<0.000000e+00> : vector<2x8x8xf32>
    %168 = tpu.matmul %166, %167, %cst_55 {dimension_numbers = #tpu.dot_dimension_numbers<[2], [1], [1], [2], [0, 0, 0, 1, 1, 2], [0], [0]>} : vector<2x8x8xbf16>, vector<2x8x8xbf16>, vector<2x8x8xf32> -> vector<2x8x8xf32>
    "tpu.trace_stop"() : () -> ()
    %169 = arith.addf %165, %168 : vector<2x8x8xf32>
    %170 = tpu.reciprocal %163 {approx = true} : vector<2x8x1xf32> -> vector<2x8x1xf32>
    %171 = vector.broadcast %170 : vector<2x8x1xf32> to vector<2x8x8xf32>
    %172 = arith.mulf %169, %171 : vector<2x8x8xf32>
    %173 = vector.shape_cast %172 : vector<2x8x8xf32> to vector<16x8xf32>
    %174 = arith.truncf %173 : vector<16x8xf32> to vector<16x8xbf16>
    %175 = vector.extract_strided_slice %21 {offsets = [24, 0], sizes = [8, 32], strides = [1, 1]} : vector<32x32xbf16> to vector<8x32xbf16>
    %cst_56 = arith.constant dense<0.000000e+00> : vector<16x32xf32>
    %176 = tpu.matmul %174, %175, %cst_56 {dimension_numbers = #tpu.dot_dimension_numbers<[1], [0], [0], [1], [0, 0, 1, 1], [], []>} : vector<16x8xbf16>, vector<8x32xbf16>, vector<16x32xf32> -> vector<16x32xf32>
    %177 = arith.addf %141, %176 : vector<16x32xf32>
    %178 = vector.broadcast %23 : vector<1x32xf32> to vector<16x32xf32>
    %179 = arith.addf %177, %178 : vector<16x32xf32>
    %180 = vector.shape_cast %179 : vector<16x32xf32> to vector<2x8x32xf32>
    %181 = arith.addf %3, %180 : vector<2x8x32xf32>
    %c0_57 = arith.constant 0 : index
    %c0_58 = arith.constant 0 : index
    %c0_59 = arith.constant 0 : index
    %182 = vector.load %arg8[%c0_57, %c0_58, %c0_59] : memref<1x1x32xf32, #tpu.memory_space<vmem>>, vector<1x1x32xf32>
    %183 = vector.shape_cast %182 : vector<1x1x32xf32> to vector<1x32xf32>
    %c0_60 = arith.constant 0 : index
    %c0_61 = arith.constant 0 : index
    %c0_62 = arith.constant 0 : index
    %184 = vector.load %arg9[%c0_60, %c0_61, %c0_62] : memref<1x1x32xf32, #tpu.memory_space<vmem>>, vector<1x1x32xf32>
    %185 = vector.shape_cast %184 : vector<1x1x32xf32> to vector<1x32xf32>
    %cst_63 = arith.constant dense<0.000000e+00> : vector<2x8xf32>
    %186 = vector.multi_reduction <add>, %181, %cst_63 [2] : vector<2x8x32xf32> to vector<2x8xf32>
    %187 = vector.shape_cast %186 : vector<2x8xf32> to vector<2x8x1xf32>
    %cst_64 = arith.constant 3.200000e+01 : f32
    %188 = vector.broadcast %cst_64 : f32 to vector<2x8x1xf32>
    %189 = arith.divf %187, %188 : vector<2x8x1xf32>
    %190 = vector.broadcast %189 : vector<2x8x1xf32> to vector<2x8x32xf32>
    %191 = arith.subf %181, %190 : vector<2x8x32xf32>
    %192 = arith.mulf %191, %191 : vector<2x8x32xf32>
    %cst_65 = arith.constant dense<0.000000e+00> : vector<2x8xf32>
    %193 = vector.multi_reduction <add>, %192, %cst_65 [2] : vector<2x8x32xf32> to vector<2x8xf32>
    %194 = vector.shape_cast %193 : vector<2x8xf32> to vector<2x8x1xf32>
    %cst_66 = arith.constant 3.200000e+01 : f32
    %195 = vector.broadcast %cst_66 : f32 to vector<2x8x1xf32>
    %196 = arith.divf %194, %195 : vector<2x8x1xf32>
    %cst_67 = arith.constant 9.99999974E-6 : f32
    %197 = vector.broadcast %cst_67 : f32 to vector<2x8x1xf32>
    %198 = arith.addf %196, %197 : vector<2x8x1xf32>
    %199 = math.rsqrt %198 : vector<2x8x1xf32>
    %200 = vector.broadcast %199 : vector<2x8x1xf32> to vector<2x8x32xf32>
    %201 = arith.mulf %191, %200 : vector<2x8x32xf32>
    %202 = vector.shape_cast %183 : vector<1x32xf32> to vector<1x1x32xf32>
    %203 = vector.broadcast %202 : vector<1x1x32xf32> to vector<2x8x32xf32>
    %204 = arith.mulf %201, %203 : vector<2x8x32xf32>
    %205 = vector.shape_cast %185 : vector<1x32xf32> to vector<1x1x32xf32>
    %206 = vector.broadcast %205 : vector<1x1x32xf32> to vector<2x8x32xf32>
    %207 = arith.addf %204, %206 : vector<2x8x32xf32>
    %c0_68 = arith.constant 0 : index
    %c0_69 = arith.constant 0 : index
    %c0_70 = arith.constant 0 : index
    %208 = vector.load %arg10[%c0_68, %c0_69, %c0_70] : memref<1x32x32xbf16, #tpu.memory_space<vmem>>, vector<1x32x32xbf16>
    %209 = vector.shape_cast %208 : vector<1x32x32xbf16> to vector<32x32xbf16>
    %c0_71 = arith.constant 0 : index
    %c0_72 = arith.constant 0 : index
    %c0_73 = arith.constant 0 : index
    %210 = vector.load %arg11[%c0_71, %c0_72, %c0_73] : memref<1x1x32xf32, #tpu.memory_space<vmem>>, vector<1x1x32xf32>
    %211 = vector.shape_cast %210 : vector<1x1x32xf32> to vector<1x32xf32>
    %212 = vector.shape_cast %207 : vector<2x8x32xf32> to vector<16x32xf32>
    %213 = arith.truncf %212 : vector<16x32xf32> to vector<16x32xbf16>
    %cst_74 = arith.constant dense<0.000000e+00> : vector<16x32xf32>
    %214 = tpu.matmul %213, %209, %cst_74 {dimension_numbers = #tpu.dot_dimension_numbers<[1], [0], [0], [1], [0, 0, 1, 1], [], []>} : vector<16x32xbf16>, vector<32x32xbf16>, vector<16x32xf32> -> vector<16x32xf32>
    %215 = vector.broadcast %211 : vector<1x32xf32> to vector<16x32xf32>
    %216 = arith.addf %214, %215 : vector<16x32xf32>
    %217 = vector.shape_cast %216 : vector<16x32xf32> to vector<2x8x32xf32>
    %cst_75 = arith.constant 0.353553385 : f32
    %218 = vector.broadcast %cst_75 : f32 to vector<2x8x32xf32>
    %219 = arith.mulf %217, %218 : vector<2x8x32xf32>
    %c0_76 = arith.constant 0 : index
    %c0_77 = arith.constant 0 : index
    %c0_78 = arith.constant 0 : index
    %220 = vector.load %arg12[%c0_76, %c0_77, %c0_78] : memref<1x32x64xbf16, #tpu.memory_space<vmem>>, vector<1x32x64xbf16>
    %221 = vector.shape_cast %220 : vector<1x32x64xbf16> to vector<32x64xbf16>
    %c0_79 = arith.constant 0 : index
    %c0_80 = arith.constant 0 : index
    %c0_81 = arith.constant 0 : index
    %222 = vector.load %arg13[%c0_79, %c0_80, %c0_81] : memref<1x1x64xf32, #tpu.memory_space<vmem>>, vector<1x1x64xf32>
    %223 = vector.shape_cast %222 : vector<1x1x64xf32> to vector<1x64xf32>
    %224 = vector.shape_cast %4 : vector<2x8x32xbf16> to vector<16x32xbf16>
    %cst_82 = arith.constant dense<0.000000e+00> : vector<16x64xf32>
    %225 = tpu.matmul %224, %221, %cst_82 {dimension_numbers = #tpu.dot_dimension_numbers<[1], [0], [0], [1], [0, 0, 1, 1], [], []>} : vector<16x32xbf16>, vector<32x64xbf16>, vector<16x64xf32> -> vector<16x64xf32>
    %226 = vector.broadcast %223 : vector<1x64xf32> to vector<16x64xf32>
    %227 = arith.addf %225, %226 : vector<16x64xf32>
    %228 = vector.shape_cast %227 : vector<16x64xf32> to vector<2x8x64xf32>
    %229 = vector.extract_strided_slice %228 {offsets = [0, 0, 0], sizes = [2, 8, 32], strides = [1, 1, 1]} : vector<2x8x64xf32> to vector<2x8x32xf32>
    %230 = vector.extract_strided_slice %228 {offsets = [0, 0, 32], sizes = [2, 8, 32], strides = [1, 1, 1]} : vector<2x8x64xf32> to vector<2x8x32xf32>
    %c0_83 = arith.constant 0 : index
    %c0_84 = arith.constant 0 : index
    %c0_85 = arith.constant 0 : index
    %231 = vector.load %arg14[%c0_83, %c0_84, %c0_85] : memref<1x32x32xbf16, #tpu.memory_space<vmem>>, vector<1x32x32xbf16>
    %232 = vector.shape_cast %231 : vector<1x32x32xbf16> to vector<32x32xbf16>
    %c0_86 = arith.constant 0 : index
    %c0_87 = arith.constant 0 : index
    %c0_88 = arith.constant 0 : index
    %233 = vector.load %arg15[%c0_86, %c0_87, %c0_88] : memref<1x1x32xf32, #tpu.memory_space<vmem>>, vector<1x1x32xf32>
    %234 = vector.shape_cast %233 : vector<1x1x32xf32> to vector<1x32xf32>
    %235 = arith.truncf %219 : vector<2x8x32xf32> to vector<2x8x32xbf16>
    %236 = arith.truncf %229 : vector<2x8x32xf32> to vector<2x8x32xbf16>
    %237 = arith.truncf %230 : vector<2x8x32xf32> to vector<2x8x32xbf16>
    %cst_89 = arith.constant 0.000000e+00 : f32
    %238 = vector.broadcast %cst_89 : f32 to vector<16x32xf32>
    %239 = vector.extract_strided_slice %235 {offsets = [0, 0, 0], sizes = [2, 8, 8], strides = [1, 1, 1]} : vector<2x8x32xbf16> to vector<2x8x8xbf16>
    %cst_90 = arith.constant 0xFF800000 : f32
    %240 = vector.broadcast %cst_90 : f32 to vector<2x8x1xf32>
    %cst_91 = arith.constant 0.000000e+00 : f32
    %241 = vector.broadcast %cst_91 : f32 to vector<2x8x1xf32>
    %cst_92 = arith.constant 0.000000e+00 : f32
    %242 = vector.broadcast %cst_92 : f32 to vector<2x8x8xf32>
    %243 = vector.extract_strided_slice %236 {offsets = [0, 0, 0], sizes = [2, 8, 8], strides = [1, 1, 1]} : vector<2x8x32xbf16> to vector<2x8x8xbf16>
    "tpu.trace_start"() <{level = 10 : i32, message = "bqd,bkd->bqk"}> : () -> ()
    %cst_93 = arith.constant dense<0.000000e+00> : vector<2x8x8xf32>
    %244 = tpu.matmul %239, %243, %cst_93 {dimension_numbers = #tpu.dot_dimension_numbers<[2], [2], [1], [1], [0, 0, 0, 1, 1, 1], [0], [0]>} : vector<2x8x8xbf16>, vector<2x8x8xbf16>, vector<2x8x8xf32> -> vector<2x8x8xf32>
    "tpu.trace_stop"() : () -> ()
    %cst_94 = arith.constant dense<0xFF800000> : vector<2x8xf32>
    %245 = vector.multi_reduction <maximumf>, %244, %cst_94 [2] : vector<2x8x8xf32> to vector<2x8xf32>
    %246 = vector.shape_cast %245 : vector<2x8xf32> to vector<2x8x1xf32>
    %247 = arith.maximumf %240, %246 : vector<2x8x1xf32>
    %248 = vector.broadcast %247 : vector<2x8x1xf32> to vector<2x8x8xf32>
    %249 = arith.subf %244, %248 : vector<2x8x8xf32>
    %250 = math.exp %249 : vector<2x8x8xf32>
    %251 = arith.subf %240, %247 : vector<2x8x1xf32>
    %252 = math.exp %251 : vector<2x8x1xf32>
    %253 = arith.mulf %252, %241 : vector<2x8x1xf32>
    %cst_95 = arith.constant dense<0.000000e+00> : vector<2x8xf32>
    %254 = vector.multi_reduction <add>, %250, %cst_95 [2] : vector<2x8x8xf32> to vector<2x8xf32>
    %255 = vector.shape_cast %254 : vector<2x8xf32> to vector<2x8x1xf32>
    %256 = arith.addf %253, %255 : vector<2x8x1xf32>
    %257 = vector.broadcast %252 : vector<2x8x1xf32> to vector<2x8x8xf32>
    %258 = arith.mulf %257, %242 : vector<2x8x8xf32>
    %259 = arith.truncf %250 : vector<2x8x8xf32> to vector<2x8x8xbf16>
    %260 = vector.extract_strided_slice %237 {offsets = [0, 0, 0], sizes = [2, 8, 8], strides = [1, 1, 1]} : vector<2x8x32xbf16> to vector<2x8x8xbf16>
    "tpu.trace_start"() <{level = 10 : i32, message = "bqk,bkd->bqd"}> : () -> ()
    %cst_96 = arith.constant dense<0.000000e+00> : vector<2x8x8xf32>
    %261 = tpu.matmul %259, %260, %cst_96 {dimension_numbers = #tpu.dot_dimension_numbers<[2], [1], [1], [2], [0, 0, 0, 1, 1, 2], [0], [0]>} : vector<2x8x8xbf16>, vector<2x8x8xbf16>, vector<2x8x8xf32> -> vector<2x8x8xf32>
    "tpu.trace_stop"() : () -> ()
    %262 = arith.addf %258, %261 : vector<2x8x8xf32>
    %263 = tpu.reciprocal %256 {approx = true} : vector<2x8x1xf32> -> vector<2x8x1xf32>
    %264 = vector.broadcast %263 : vector<2x8x1xf32> to vector<2x8x8xf32>
    %265 = arith.mulf %262, %264 : vector<2x8x8xf32>
    %266 = vector.shape_cast %265 : vector<2x8x8xf32> to vector<16x8xf32>
    %267 = arith.truncf %266 : vector<16x8xf32> to vector<16x8xbf16>
    %268 = vector.extract_strided_slice %232 {offsets = [0, 0], sizes = [8, 32], strides = [1, 1]} : vector<32x32xbf16> to vector<8x32xbf16>
    %cst_97 = arith.constant dense<0.000000e+00> : vector<16x32xf32>
    %269 = tpu.matmul %267, %268, %cst_97 {dimension_numbers = #tpu.dot_dimension_numbers<[1], [0], [0], [1], [0, 0, 1, 1], [], []>} : vector<16x8xbf16>, vector<8x32xbf16>, vector<16x32xf32> -> vector<16x32xf32>
    %270 = arith.addf %238, %269 : vector<16x32xf32>
    %271 = vector.extract_strided_slice %235 {offsets = [0, 0, 8], sizes = [2, 8, 8], strides = [1, 1, 1]} : vector<2x8x32xbf16> to vector<2x8x8xbf16>
    %cst_98 = arith.constant 0xFF800000 : f32
    %272 = vector.broadcast %cst_98 : f32 to vector<2x8x1xf32>
    %cst_99 = arith.constant 0.000000e+00 : f32
    %273 = vector.broadcast %cst_99 : f32 to vector<2x8x1xf32>
    %cst_100 = arith.constant 0.000000e+00 : f32
    %274 = vector.broadcast %cst_100 : f32 to vector<2x8x8xf32>
    %275 = vector.extract_strided_slice %236 {offsets = [0, 0, 8], sizes = [2, 8, 8], strides = [1, 1, 1]} : vector<2x8x32xbf16> to vector<2x8x8xbf16>
    "tpu.trace_start"() <{level = 10 : i32, message = "bqd,bkd->bqk"}> : () -> ()
    %cst_101 = arith.constant dense<0.000000e+00> : vector<2x8x8xf32>
    %276 = tpu.matmul %271, %275, %cst_101 {dimension_numbers = #tpu.dot_dimension_numbers<[2], [2], [1], [1], [0, 0, 0, 1, 1, 1], [0], [0]>} : vector<2x8x8xbf16>, vector<2x8x8xbf16>, vector<2x8x8xf32> -> vector<2x8x8xf32>
    "tpu.trace_stop"() : () -> ()
    %cst_102 = arith.constant dense<0xFF800000> : vector<2x8xf32>
    %277 = vector.multi_reduction <maximumf>, %276, %cst_102 [2] : vector<2x8x8xf32> to vector<2x8xf32>
    %278 = vector.shape_cast %277 : vector<2x8xf32> to vector<2x8x1xf32>
    %279 = arith.maximumf %272, %278 : vector<2x8x1xf32>
    %280 = vector.broadcast %279 : vector<2x8x1xf32> to vector<2x8x8xf32>
    %281 = arith.subf %276, %280 : vector<2x8x8xf32>
    %282 = math.exp %281 : vector<2x8x8xf32>
    %283 = arith.subf %272, %279 : vector<2x8x1xf32>
    %284 = math.exp %283 : vector<2x8x1xf32>
    %285 = arith.mulf %284, %273 : vector<2x8x1xf32>
    %cst_103 = arith.constant dense<0.000000e+00> : vector<2x8xf32>
    %286 = vector.multi_reduction <add>, %282, %cst_103 [2] : vector<2x8x8xf32> to vector<2x8xf32>
    %287 = vector.shape_cast %286 : vector<2x8xf32> to vector<2x8x1xf32>
    %288 = arith.addf %285, %287 : vector<2x8x1xf32>
    %289 = vector.broadcast %284 : vector<2x8x1xf32> to vector<2x8x8xf32>
    %290 = arith.mulf %289, %274 : vector<2x8x8xf32>
    %291 = arith.truncf %282 : vector<2x8x8xf32> to vector<2x8x8xbf16>
    %292 = vector.extract_strided_slice %237 {offsets = [0, 0, 8], sizes = [2, 8, 8], strides = [1, 1, 1]} : vector<2x8x32xbf16> to vector<2x8x8xbf16>
    "tpu.trace_start"() <{level = 10 : i32, message = "bqk,bkd->bqd"}> : () -> ()
    %cst_104 = arith.constant dense<0.000000e+00> : vector<2x8x8xf32>
    %293 = tpu.matmul %291, %292, %cst_104 {dimension_numbers = #tpu.dot_dimension_numbers<[2], [1], [1], [2], [0, 0, 0, 1, 1, 2], [0], [0]>} : vector<2x8x8xbf16>, vector<2x8x8xbf16>, vector<2x8x8xf32> -> vector<2x8x8xf32>
    "tpu.trace_stop"() : () -> ()
    %294 = arith.addf %290, %293 : vector<2x8x8xf32>
    %295 = tpu.reciprocal %288 {approx = true} : vector<2x8x1xf32> -> vector<2x8x1xf32>
    %296 = vector.broadcast %295 : vector<2x8x1xf32> to vector<2x8x8xf32>
    %297 = arith.mulf %294, %296 : vector<2x8x8xf32>
    %298 = vector.shape_cast %297 : vector<2x8x8xf32> to vector<16x8xf32>
    %299 = arith.truncf %298 : vector<16x8xf32> to vector<16x8xbf16>
    %300 = vector.extract_strided_slice %232 {offsets = [8, 0], sizes = [8, 32], strides = [1, 1]} : vector<32x32xbf16> to vector<8x32xbf16>
    %cst_105 = arith.constant dense<0.000000e+00> : vector<16x32xf32>
    %301 = tpu.matmul %299, %300, %cst_105 {dimension_numbers = #tpu.dot_dimension_numbers<[1], [0], [0], [1], [0, 0, 1, 1], [], []>} : vector<16x8xbf16>, vector<8x32xbf16>, vector<16x32xf32> -> vector<16x32xf32>
    %302 = arith.addf %270, %301 : vector<16x32xf32>
    %303 = vector.extract_strided_slice %235 {offsets = [0, 0, 16], sizes = [2, 8, 8], strides = [1, 1, 1]} : vector<2x8x32xbf16> to vector<2x8x8xbf16>
    %cst_106 = arith.constant 0xFF800000 : f32
    %304 = vector.broadcast %cst_106 : f32 to vector<2x8x1xf32>
    %cst_107 = arith.constant 0.000000e+00 : f32
    %305 = vector.broadcast %cst_107 : f32 to vector<2x8x1xf32>
    %cst_108 = arith.constant 0.000000e+00 : f32
    %306 = vector.broadcast %cst_108 : f32 to vector<2x8x8xf32>
    %307 = vector.extract_strided_slice %236 {offsets = [0, 0, 16], sizes = [2, 8, 8], strides = [1, 1, 1]} : vector<2x8x32xbf16> to vector<2x8x8xbf16>
    "tpu.trace_start"() <{level = 10 : i32, message = "bqd,bkd->bqk"}> : () -> ()
    %cst_109 = arith.constant dense<0.000000e+00> : vector<2x8x8xf32>
    %308 = tpu.matmul %303, %307, %cst_109 {dimension_numbers = #tpu.dot_dimension_numbers<[2], [2], [1], [1], [0, 0, 0, 1, 1, 1], [0], [0]>} : vector<2x8x8xbf16>, vector<2x8x8xbf16>, vector<2x8x8xf32> -> vector<2x8x8xf32>
    "tpu.trace_stop"() : () -> ()
    %cst_110 = arith.constant dense<0xFF800000> : vector<2x8xf32>
    %309 = vector.multi_reduction <maximumf>, %308, %cst_110 [2] : vector<2x8x8xf32> to vector<2x8xf32>
    %310 = vector.shape_cast %309 : vector<2x8xf32> to vector<2x8x1xf32>
    %311 = arith.maximumf %304, %310 : vector<2x8x1xf32>
    %312 = vector.broadcast %311 : vector<2x8x1xf32> to vector<2x8x8xf32>
    %313 = arith.subf %308, %312 : vector<2x8x8xf32>
    %314 = math.exp %313 : vector<2x8x8xf32>
    %315 = arith.subf %304, %311 : vector<2x8x1xf32>
    %316 = math.exp %315 : vector<2x8x1xf32>
    %317 = arith.mulf %316, %305 : vector<2x8x1xf32>
    %cst_111 = arith.constant dense<0.000000e+00> : vector<2x8xf32>
    %318 = vector.multi_reduction <add>, %314, %cst_111 [2] : vector<2x8x8xf32> to vector<2x8xf32>
    %319 = vector.shape_cast %318 : vector<2x8xf32> to vector<2x8x1xf32>
    %320 = arith.addf %317, %319 : vector<2x8x1xf32>
    %321 = vector.broadcast %316 : vector<2x8x1xf32> to vector<2x8x8xf32>
    %322 = arith.mulf %321, %306 : vector<2x8x8xf32>
    %323 = arith.truncf %314 : vector<2x8x8xf32> to vector<2x8x8xbf16>
    %324 = vector.extract_strided_slice %237 {offsets = [0, 0, 16], sizes = [2, 8, 8], strides = [1, 1, 1]} : vector<2x8x32xbf16> to vector<2x8x8xbf16>
    "tpu.trace_start"() <{level = 10 : i32, message = "bqk,bkd->bqd"}> : () -> ()
    %cst_112 = arith.constant dense<0.000000e+00> : vector<2x8x8xf32>
    %325 = tpu.matmul %323, %324, %cst_112 {dimension_numbers = #tpu.dot_dimension_numbers<[2], [1], [1], [2], [0, 0, 0, 1, 1, 2], [0], [0]>} : vector<2x8x8xbf16>, vector<2x8x8xbf16>, vector<2x8x8xf32> -> vector<2x8x8xf32>
    "tpu.trace_stop"() : () -> ()
    %326 = arith.addf %322, %325 : vector<2x8x8xf32>
    %327 = tpu.reciprocal %320 {approx = true} : vector<2x8x1xf32> -> vector<2x8x1xf32>
    %328 = vector.broadcast %327 : vector<2x8x1xf32> to vector<2x8x8xf32>
    %329 = arith.mulf %326, %328 : vector<2x8x8xf32>
    %330 = vector.shape_cast %329 : vector<2x8x8xf32> to vector<16x8xf32>
    %331 = arith.truncf %330 : vector<16x8xf32> to vector<16x8xbf16>
    %332 = vector.extract_strided_slice %232 {offsets = [16, 0], sizes = [8, 32], strides = [1, 1]} : vector<32x32xbf16> to vector<8x32xbf16>
    %cst_113 = arith.constant dense<0.000000e+00> : vector<16x32xf32>
    %333 = tpu.matmul %331, %332, %cst_113 {dimension_numbers = #tpu.dot_dimension_numbers<[1], [0], [0], [1], [0, 0, 1, 1], [], []>} : vector<16x8xbf16>, vector<8x32xbf16>, vector<16x32xf32> -> vector<16x32xf32>
    %334 = arith.addf %302, %333 : vector<16x32xf32>
    %335 = vector.extract_strided_slice %235 {offsets = [0, 0, 24], sizes = [2, 8, 8], strides = [1, 1, 1]} : vector<2x8x32xbf16> to vector<2x8x8xbf16>
    %cst_114 = arith.constant 0xFF800000 : f32
    %336 = vector.broadcast %cst_114 : f32 to vector<2x8x1xf32>
    %cst_115 = arith.constant 0.000000e+00 : f32
    %337 = vector.broadcast %cst_115 : f32 to vector<2x8x1xf32>
    %cst_116 = arith.constant 0.000000e+00 : f32
    %338 = vector.broadcast %cst_116 : f32 to vector<2x8x8xf32>
    %339 = vector.extract_strided_slice %236 {offsets = [0, 0, 24], sizes = [2, 8, 8], strides = [1, 1, 1]} : vector<2x8x32xbf16> to vector<2x8x8xbf16>
    "tpu.trace_start"() <{level = 10 : i32, message = "bqd,bkd->bqk"}> : () -> ()
    %cst_117 = arith.constant dense<0.000000e+00> : vector<2x8x8xf32>
    %340 = tpu.matmul %335, %339, %cst_117 {dimension_numbers = #tpu.dot_dimension_numbers<[2], [2], [1], [1], [0, 0, 0, 1, 1, 1], [0], [0]>} : vector<2x8x8xbf16>, vector<2x8x8xbf16>, vector<2x8x8xf32> -> vector<2x8x8xf32>
    "tpu.trace_stop"() : () -> ()
    %cst_118 = arith.constant dense<0xFF800000> : vector<2x8xf32>
    %341 = vector.multi_reduction <maximumf>, %340, %cst_118 [2] : vector<2x8x8xf32> to vector<2x8xf32>
    %342 = vector.shape_cast %341 : vector<2x8xf32> to vector<2x8x1xf32>
    %343 = arith.maximumf %336, %342 : vector<2x8x1xf32>
    %344 = vector.broadcast %343 : vector<2x8x1xf32> to vector<2x8x8xf32>
    %345 = arith.subf %340, %344 : vector<2x8x8xf32>
    %346 = math.exp %345 : vector<2x8x8xf32>
    %347 = arith.subf %336, %343 : vector<2x8x1xf32>
    %348 = math.exp %347 : vector<2x8x1xf32>
    %349 = arith.mulf %348, %337 : vector<2x8x1xf32>
    %cst_119 = arith.constant dense<0.000000e+00> : vector<2x8xf32>
    %350 = vector.multi_reduction <add>, %346, %cst_119 [2] : vector<2x8x8xf32> to vector<2x8xf32>
    %351 = vector.shape_cast %350 : vector<2x8xf32> to vector<2x8x1xf32>
    %352 = arith.addf %349, %351 : vector<2x8x1xf32>
    %353 = vector.broadcast %348 : vector<2x8x1xf32> to vector<2x8x8xf32>
    %354 = arith.mulf %353, %338 : vector<2x8x8xf32>
    %355 = arith.truncf %346 : vector<2x8x8xf32> to vector<2x8x8xbf16>
    %356 = vector.extract_strided_slice %237 {offsets = [0, 0, 24], sizes = [2, 8, 8], strides = [1, 1, 1]} : vector<2x8x32xbf16> to vector<2x8x8xbf16>
    "tpu.trace_start"() <{level = 10 : i32, message = "bqk,bkd->bqd"}> : () -> ()
    %cst_120 = arith.constant dense<0.000000e+00> : vector<2x8x8xf32>
    %357 = tpu.matmul %355, %356, %cst_120 {dimension_numbers = #tpu.dot_dimension_numbers<[2], [1], [1], [2], [0, 0, 0, 1, 1, 2], [0], [0]>} : vector<2x8x8xbf16>, vector<2x8x8xbf16>, vector<2x8x8xf32> -> vector<2x8x8xf32>
    "tpu.trace_stop"() : () -> ()
    %358 = arith.addf %354, %357 : vector<2x8x8xf32>
    %359 = tpu.reciprocal %352 {approx = true} : vector<2x8x1xf32> -> vector<2x8x1xf32>
    %360 = vector.broadcast %359 : vector<2x8x1xf32> to vector<2x8x8xf32>
    %361 = arith.mulf %358, %360 : vector<2x8x8xf32>
    %362 = vector.shape_cast %361 : vector<2x8x8xf32> to vector<16x8xf32>
    %363 = arith.truncf %362 : vector<16x8xf32> to vector<16x8xbf16>
    %364 = vector.extract_strided_slice %232 {offsets = [24, 0], sizes = [8, 32], strides = [1, 1]} : vector<32x32xbf16> to vector<8x32xbf16>
    %cst_121 = arith.constant dense<0.000000e+00> : vector<16x32xf32>
    %365 = tpu.matmul %363, %364, %cst_121 {dimension_numbers = #tpu.dot_dimension_numbers<[1], [0], [0], [1], [0, 0, 1, 1], [], []>} : vector<16x8xbf16>, vector<8x32xbf16>, vector<16x32xf32> -> vector<16x32xf32>
    %366 = arith.addf %334, %365 : vector<16x32xf32>
    %367 = vector.broadcast %234 : vector<1x32xf32> to vector<16x32xf32>
    %368 = arith.addf %366, %367 : vector<16x32xf32>
    %369 = vector.shape_cast %368 : vector<16x32xf32> to vector<2x8x32xf32>
    %370 = arith.addf %207, %369 : vector<2x8x32xf32>
    %c0_122 = arith.constant 0 : index
    %c0_123 = arith.constant 0 : index
    %c0_124 = arith.constant 0 : index
    %371 = vector.load %arg16[%c0_122, %c0_123, %c0_124] : memref<1x1x32xf32, #tpu.memory_space<vmem>>, vector<1x1x32xf32>
    %372 = vector.shape_cast %371 : vector<1x1x32xf32> to vector<1x32xf32>
    %c0_125 = arith.constant 0 : index
    %c0_126 = arith.constant 0 : index
    %c0_127 = arith.constant 0 : index
    %373 = vector.load %arg17[%c0_125, %c0_126, %c0_127] : memref<1x1x32xf32, #tpu.memory_space<vmem>>, vector<1x1x32xf32>
    %374 = vector.shape_cast %373 : vector<1x1x32xf32> to vector<1x32xf32>
    %cst_128 = arith.constant dense<0.000000e+00> : vector<2x8xf32>
    %375 = vector.multi_reduction <add>, %370, %cst_128 [2] : vector<2x8x32xf32> to vector<2x8xf32>
    %376 = vector.shape_cast %375 : vector<2x8xf32> to vector<2x8x1xf32>
    %cst_129 = arith.constant 3.200000e+01 : f32
    %377 = vector.broadcast %cst_129 : f32 to vector<2x8x1xf32>
    %378 = arith.divf %376, %377 : vector<2x8x1xf32>
    %379 = vector.broadcast %378 : vector<2x8x1xf32> to vector<2x8x32xf32>
    %380 = arith.subf %370, %379 : vector<2x8x32xf32>
    %381 = arith.mulf %380, %380 : vector<2x8x32xf32>
    %cst_130 = arith.constant dense<0.000000e+00> : vector<2x8xf32>
    %382 = vector.multi_reduction <add>, %381, %cst_130 [2] : vector<2x8x32xf32> to vector<2x8xf32>
    %383 = vector.shape_cast %382 : vector<2x8xf32> to vector<2x8x1xf32>
    %cst_131 = arith.constant 3.200000e+01 : f32
    %384 = vector.broadcast %cst_131 : f32 to vector<2x8x1xf32>
    %385 = arith.divf %383, %384 : vector<2x8x1xf32>
    %cst_132 = arith.constant 9.99999974E-6 : f32
    %386 = vector.broadcast %cst_132 : f32 to vector<2x8x1xf32>
    %387 = arith.addf %385, %386 : vector<2x8x1xf32>
    %388 = math.rsqrt %387 : vector<2x8x1xf32>
    %389 = vector.broadcast %388 : vector<2x8x1xf32> to vector<2x8x32xf32>
    %390 = arith.mulf %380, %389 : vector<2x8x32xf32>
    %391 = vector.shape_cast %372 : vector<1x32xf32> to vector<1x1x32xf32>
    %392 = vector.broadcast %391 : vector<1x1x32xf32> to vector<2x8x32xf32>
    %393 = arith.mulf %390, %392 : vector<2x8x32xf32>
    %394 = vector.shape_cast %374 : vector<1x32xf32> to vector<1x1x32xf32>
    %395 = vector.broadcast %394 : vector<1x1x32xf32> to vector<2x8x32xf32>
    %396 = arith.addf %393, %395 : vector<2x8x32xf32>
    %c0_133 = arith.constant 0 : index
    %c0_134 = arith.constant 0 : index
    %c0_135 = arith.constant 0 : index
    %397 = vector.load %arg18[%c0_133, %c0_134, %c0_135] : memref<1x32x64xbf16, #tpu.memory_space<vmem>>, vector<1x32x64xbf16>
    %398 = vector.shape_cast %397 : vector<1x32x64xbf16> to vector<32x64xbf16>
    %c0_136 = arith.constant 0 : index
    %c0_137 = arith.constant 0 : index
    %c0_138 = arith.constant 0 : index
    %399 = vector.load %arg19[%c0_136, %c0_137, %c0_138] : memref<1x1x64xf32, #tpu.memory_space<vmem>>, vector<1x1x64xf32>
    %400 = vector.shape_cast %399 : vector<1x1x64xf32> to vector<1x64xf32>
    %401 = vector.shape_cast %396 : vector<2x8x32xf32> to vector<16x32xf32>
    %402 = arith.truncf %401 : vector<16x32xf32> to vector<16x32xbf16>
    %cst_139 = arith.constant dense<0.000000e+00> : vector<16x64xf32>
    %403 = tpu.matmul %402, %398, %cst_139 {dimension_numbers = #tpu.dot_dimension_numbers<[1], [0], [0], [1], [0, 0, 1, 1], [], []>} : vector<16x32xbf16>, vector<32x64xbf16>, vector<16x64xf32> -> vector<16x64xf32>
    %404 = vector.broadcast %400 : vector<1x64xf32> to vector<16x64xf32>
    %405 = arith.addf %403, %404 : vector<16x64xf32>
    %406 = vector.shape_cast %405 : vector<16x64xf32> to vector<2x8x64xf32>
    %cst_140 = arith.constant 5.000000e-01 : f32
    %407 = vector.broadcast %cst_140 : f32 to vector<2x8x64xf32>
    %408 = arith.mulf %407, %406 : vector<2x8x64xf32>
    %cst_141 = arith.constant 4.471500e-02 : f32
    %409 = vector.broadcast %cst_141 : f32 to vector<2x8x64xf32>
    %410 = arith.mulf %409, %406 : vector<2x8x64xf32>
    %411 = arith.mulf %410, %406 : vector<2x8x64xf32>
    %412 = arith.mulf %411, %406 : vector<2x8x64xf32>
    %413 = arith.addf %406, %412 : vector<2x8x64xf32>
    %cst_142 = arith.constant 0.797884583 : f32
    %414 = vector.broadcast %cst_142 : f32 to vector<2x8x64xf32>
    %415 = arith.mulf %414, %413 : vector<2x8x64xf32>
    %416 = math.tanh %415 : vector<2x8x64xf32>
    %cst_143 = arith.constant 1.000000e+00 : f32
    %417 = vector.broadcast %cst_143 : f32 to vector<2x8x64xf32>
    %418 = arith.addf %417, %416 : vector<2x8x64xf32>
    %419 = arith.mulf %408, %418 : vector<2x8x64xf32>
    %c0_144 = arith.constant 0 : index
    %c0_145 = arith.constant 0 : index
    %c0_146 = arith.constant 0 : index
    %420 = vector.load %arg20[%c0_144, %c0_145, %c0_146] : memref<1x64x32xbf16, #tpu.memory_space<vmem>>, vector<1x64x32xbf16>
    %421 = vector.shape_cast %420 : vector<1x64x32xbf16> to vector<64x32xbf16>
    %c0_147 = arith.constant 0 : index
    %c0_148 = arith.constant 0 : index
    %c0_149 = arith.constant 0 : index
    %422 = vector.load %arg21[%c0_147, %c0_148, %c0_149] : memref<1x1x32xf32, #tpu.memory_space<vmem>>, vector<1x1x32xf32>
    %423 = vector.shape_cast %422 : vector<1x1x32xf32> to vector<1x32xf32>
    %424 = vector.shape_cast %419 : vector<2x8x64xf32> to vector<16x64xf32>
    %425 = arith.truncf %424 : vector<16x64xf32> to vector<16x64xbf16>
    %cst_150 = arith.constant dense<0.000000e+00> : vector<16x32xf32>
    %426 = tpu.matmul %425, %421, %cst_150 {dimension_numbers = #tpu.dot_dimension_numbers<[1], [0], [0], [1], [0, 0, 1, 1], [], []>} : vector<16x64xbf16>, vector<64x32xbf16>, vector<16x32xf32> -> vector<16x32xf32>
    %427 = vector.broadcast %423 : vector<1x32xf32> to vector<16x32xf32>
    %428 = arith.addf %426, %427 : vector<16x32xf32>
    %429 = vector.shape_cast %428 : vector<16x32xf32> to vector<2x8x32xf32>
    %430 = arith.addf %396, %429 : vector<2x8x32xf32>
    %c0_151 = arith.constant 0 : index
    %c0_152 = arith.constant 0 : index
    %c0_153 = arith.constant 0 : index
    %431 = vector.load %arg22[%c0_151, %c0_152, %c0_153] : memref<1x1x32xf32, #tpu.memory_space<vmem>>, vector<1x1x32xf32>
    %432 = vector.shape_cast %431 : vector<1x1x32xf32> to vector<1x32xf32>
    %c0_154 = arith.constant 0 : index
    %c0_155 = arith.constant 0 : index
    %c0_156 = arith.constant 0 : index
    %433 = vector.load %arg23[%c0_154, %c0_155, %c0_156] : memref<1x1x32xf32, #tpu.memory_space<vmem>>, vector<1x1x32xf32>
    %434 = vector.shape_cast %433 : vector<1x1x32xf32> to vector<1x32xf32>
    %cst_157 = arith.constant dense<0.000000e+00> : vector<2x8xf32>
    %435 = vector.multi_reduction <add>, %430, %cst_157 [2] : vector<2x8x32xf32> to vector<2x8xf32>
    %436 = vector.shape_cast %435 : vector<2x8xf32> to vector<2x8x1xf32>
    %cst_158 = arith.constant 3.200000e+01 : f32
    %437 = vector.broadcast %cst_158 : f32 to vector<2x8x1xf32>
    %438 = arith.divf %436, %437 : vector<2x8x1xf32>
    %439 = vector.broadcast %438 : vector<2x8x1xf32> to vector<2x8x32xf32>
    %440 = arith.subf %430, %439 : vector<2x8x32xf32>
    %441 = arith.mulf %440, %440 : vector<2x8x32xf32>
    %cst_159 = arith.constant dense<0.000000e+00> : vector<2x8xf32>
    %442 = vector.multi_reduction <add>, %441, %cst_159 [2] : vector<2x8x32xf32> to vector<2x8xf32>
    %443 = vector.shape_cast %442 : vector<2x8xf32> to vector<2x8x1xf32>
    %cst_160 = arith.constant 3.200000e+01 : f32
    %444 = vector.broadcast %cst_160 : f32 to vector<2x8x1xf32>
    %445 = arith.divf %443, %444 : vector<2x8x1xf32>
    %cst_161 = arith.constant 9.99999974E-6 : f32
    %446 = vector.broadcast %cst_161 : f32 to vector<2x8x1xf32>
    %447 = arith.addf %445, %446 : vector<2x8x1xf32>
    %448 = math.rsqrt %447 : vector<2x8x1xf32>
    %449 = vector.broadcast %448 : vector<2x8x1xf32> to vector<2x8x32xf32>
    %450 = arith.mulf %440, %449 : vector<2x8x32xf32>
    %451 = vector.shape_cast %432 : vector<1x32xf32> to vector<1x1x32xf32>
    %452 = vector.broadcast %451 : vector<1x1x32xf32> to vector<2x8x32xf32>
    %453 = arith.mulf %450, %452 : vector<2x8x32xf32>
    %454 = vector.shape_cast %434 : vector<1x32xf32> to vector<1x1x32xf32>
    %455 = vector.broadcast %454 : vector<1x1x32xf32> to vector<2x8x32xf32>
    %456 = arith.addf %453, %455 : vector<2x8x32xf32>
    %c1_i32 = arith.constant 1 : i32
    %457 = arith.cmpi slt, %arg1, %c1_i32 : i32
    %458 = arith.extui %457 : i1 to i32
    %c0_i32_162 = arith.constant 0 : i32
    %459 = arith.cmpi ne, %458, %c0_i32_162 : i32
    scf.if %459 {
      %c0_165 = arith.constant 0 : index
      %c0_166 = arith.constant 0 : index
      %c0_167 = arith.constant 0 : index
      %463 = vector.load %arg26[%c0_165, %c0_166, %c0_167] : memref<2x8x32xf32, #tpu.memory_space<vmem>>, vector<2x8x32xf32>
      tpu.vector_store %arg26[%c0_165, %c0_166, %c0_167], %456 {strides = array<i32>} : memref<2x8x32xf32, #tpu.memory_space<vmem>>, vector<2x8x32xf32>,
    } else {
    }
    %c1_i32_163 = arith.constant 1 : i32
    %460 = arith.cmpi eq, %arg1, %c1_i32_163 : i32
    %461 = arith.extui %460 : i1 to i32
    %c0_i32_164 = arith.constant 0 : i32
    %462 = arith.cmpi ne, %461, %c0_i32_164 : i32
    scf.if %462 {
      %c0_165 = arith.constant 0 : index
      %c0_166 = arith.constant 0 : index
      %463 = vector.load %arg24[%c0_165, %c0_166] : memref<1x32xf32, #tpu.memory_space<vmem>>, vector<1x32xf32>
      %c0_167 = arith.constant 0 : index
      %c0_168 = arith.constant 0 : index
      %464 = vector.load %arg25[%c0_167, %c0_168] : memref<1x32xf32, #tpu.memory_space<vmem>>, vector<1x32xf32>
      %cst_169 = arith.constant dense<0.000000e+00> : vector<2x8xf32>
      %465 = vector.multi_reduction <add>, %456, %cst_169 [2] : vector<2x8x32xf32> to vector<2x8xf32>
      %466 = vector.shape_cast %465 : vector<2x8xf32> to vector<2x8x1xf32>
      %cst_170 = arith.constant 3.200000e+01 : f32
      %467 = vector.broadcast %cst_170 : f32 to vector<2x8x1xf32>
      %468 = arith.divf %466, %467 : vector<2x8x1xf32>
      %469 = vector.broadcast %468 : vector<2x8x1xf32> to vector<2x8x32xf32>
      %470 = arith.subf %456, %469 : vector<2x8x32xf32>
      %471 = arith.mulf %470, %470 : vector<2x8x32xf32>
      %cst_171 = arith.constant dense<0.000000e+00> : vector<2x8xf32>
      %472 = vector.multi_reduction <add>, %471, %cst_171 [2] : vector<2x8x32xf32> to vector<2x8xf32>
      %473 = vector.shape_cast %472 : vector<2x8xf32> to vector<2x8x1xf32>
      %cst_172 = arith.constant 3.200000e+01 : f32
      %474 = vector.broadcast %cst_172 : f32 to vector<2x8x1xf32>
      %475 = arith.divf %473, %474 : vector<2x8x1xf32>
      %cst_173 = arith.constant 9.99999974E-6 : f32
      %476 = vector.broadcast %cst_173 : f32 to vector<2x8x1xf32>
      %477 = arith.addf %475, %476 : vector<2x8x1xf32>
      %478 = math.rsqrt %477 : vector<2x8x1xf32>
      %479 = vector.broadcast %478 : vector<2x8x1xf32> to vector<2x8x32xf32>
      %480 = arith.mulf %470, %479 : vector<2x8x32xf32>
      %481 = vector.shape_cast %463 : vector<1x32xf32> to vector<1x1x32xf32>
      %482 = vector.broadcast %481 : vector<1x1x32xf32> to vector<2x8x32xf32>
      %483 = arith.mulf %480, %482 : vector<2x8x32xf32>
      %484 = vector.shape_cast %464 : vector<1x32xf32> to vector<1x1x32xf32>
      %485 = vector.broadcast %484 : vector<1x1x32xf32> to vector<2x8x32xf32>
      %486 = arith.addf %483, %485 : vector<2x8x32xf32>
      %c0_174 = arith.constant 0 : index
      %c0_175 = arith.constant 0 : index
      %c0_176 = arith.constant 0 : index
      %487 = vector.load %arg26[%c0_174, %c0_175, %c0_176] : memref<2x8x32xf32, #tpu.memory_space<vmem>>, vector<2x8x32xf32>
      tpu.vector_store %arg26[%c0_174, %c0_175, %c0_176], %486 {strides = array<i32>} : memref<2x8x32xf32, #tpu.memory_space<vmem>>, vector<2x8x32xf32>,
    } else {
    }
    return
  }
  func.func @transform_0(%arg0: i32, %arg1: i32) -> (i32, i32, i32) {
    %c0_i32 = arith.constant 0 : i32
    %c0_i32_0 = arith.constant 0 : i32
    %c0_i32_1 = arith.constant 0 : i32
    return %arg0, %c0_i32, %c0_i32_0 : i32, i32, i32
  }
  func.func @transform_1(%arg0: i32, %arg1: i32) -> (i32, i32, i32) {
    %c0_i32 = arith.constant 0 : i32
    %c0_i32_0 = arith.constant 0 : i32
    %c0_i32_1 = arith.constant 0 : i32
    return %arg0, %c0_i32, %c0_i32_0 : i32, i32, i32
  }
  func.func @transform_2(%arg0: i32, %arg1: i32) -> (i32, i32, i32) {
    %c0_i32 = arith.constant 0 : i32
    %c0_i32_0 = arith.constant 0 : i32
    %c0_i32_1 = arith.constant 0 : i32
    return %arg1, %c0_i32, %c0_i32_0 : i32, i32, i32
  }
  func.func @transform_3(%arg0: i32, %arg1: i32) -> (i32, i32, i32) {
    %c0_i32 = arith.constant 0 : i32
    %c0_i32_0 = arith.constant 0 : i32
    %c0_i32_1 = arith.constant 0 : i32
    return %arg1, %c0_i32, %c0_i32_0 : i32, i32, i32
  }
  func.func @transform_4(%arg0: i32, %arg1: i32) -> (i32, i32, i32) {
    %c0_i32 = arith.constant 0 : i32
    %c0_i32_0 = arith.constant 0 : i32
    %c0_i32_1 = arith.constant 0 : i32
    return %arg1, %c0_i32, %c0_i32_0 : i32, i32, i32
  }
  func.func @transform_5(%arg0: i32, %arg1: i32) -> (i32, i32, i32) {
    %c0_i32 = arith.constant 0 : i32
    %c0_i32_0 = arith.constant 0 : i32
    %c0_i32_1 = arith.constant 0 : i32
    return %arg1, %c0_i32, %c0_i32_0 : i32, i32, i32
  }
  func.func @transform_6(%arg0: i32, %arg1: i32) -> (i32, i32, i32) {
    %c0_i32 = arith.constant 0 : i32
    %c0_i32_0 = arith.constant 0 : i32
    %c0_i32_1 = arith.constant 0 : i32
    return %arg1, %c0_i32, %c0_i32_0 : i32, i32, i32
  }
  func.func @transform_7(%arg0: i32, %arg1: i32) -> (i32, i32, i32) {
    %c0_i32 = arith.constant 0 : i32
    %c0_i32_0 = arith.constant 0 : i32
    %c0_i32_1 = arith.constant 0 : i32
    return %arg1, %c0_i32, %c0_i32_0 : i32, i32, i32
  }
  func.func @transform_8(%arg0: i32, %arg1: i32) -> (i32, i32, i32) {
    %c0_i32 = arith.constant 0 : i32
    %c0_i32_0 = arith.constant 0 : i32
    %c0_i32_1 = arith.constant 0 : i32
    return %arg1, %c0_i32, %c0_i32_0 : i32, i32, i32
  }
  func.func @transform_9(%arg0: i32, %arg1: i32) -> (i32, i32, i32) {
    %c0_i32 = arith.constant 0 : i32
    %c0_i32_0 = arith.constant 0 : i32
    %c0_i32_1 = arith.constant 0 : i32
    return %arg1, %c0_i32, %c0_i32_0 : i32, i32, i32
  }
  func.func @transform_10(%arg0: i32, %arg1: i32) -> (i32, i32, i32) {
    %c0_i32 = arith.constant 0 : i32
    %c0_i32_0 = arith.constant 0 : i32
    %c0_i32_1 = arith.constant 0 : i32
    return %arg1, %c0_i32, %c0_i32_0 : i32, i32, i32
  }
  func.func @transform_11(%arg0: i32, %arg1: i32) -> (i32, i32, i32) {
    %c0_i32 = arith.constant 0 : i32
    %c0_i32_0 = arith.constant 0 : i32
    %c0_i32_1 = arith.constant 0 : i32
    return %arg1, %c0_i32, %c0_i32_0 : i32, i32, i32
  }
  func.func @transform_12(%arg0: i32, %arg1: i32) -> (i32, i32, i32) {
    %c0_i32 = arith.constant 0 : i32
    %c0_i32_0 = arith.constant 0 : i32
    %c0_i32_1 = arith.constant 0 : i32
    return %arg1, %c0_i32, %c0_i32_0 : i32, i32, i32
  }
  func.func @transform_13(%arg0: i32, %arg1: i32) -> (i32, i32, i32) {
    %c0_i32 = arith.constant 0 : i32
    %c0_i32_0 = arith.constant 0 : i32
    %c0_i32_1 = arith.constant 0 : i32
    return %arg1, %c0_i32, %c0_i32_0 : i32, i32, i32
  }
  func.func @transform_14(%arg0: i32, %arg1: i32) -> (i32, i32, i32) {
    %c0_i32 = arith.constant 0 : i32
    %c0_i32_0 = arith.constant 0 : i32
    %c0_i32_1 = arith.constant 0 : i32
    return %arg1, %c0_i32, %c0_i32_0 : i32, i32, i32
  }
  func.func @transform_15(%arg0: i32, %arg1: i32) -> (i32, i32, i32) {
    %c0_i32 = arith.constant 0 : i32
    %c0_i32_0 = arith.constant 0 : i32
    %c0_i32_1 = arith.constant 0 : i32
    return %arg1, %c0_i32, %c0_i32_0 : i32, i32, i32
  }
  func.func @transform_16(%arg0: i32, %arg1: i32) -> (i32, i32, i32) {
    %c0_i32 = arith.constant 0 : i32
    %c0_i32_0 = arith.constant 0 : i32
    %c0_i32_1 = arith.constant 0 : i32
    return %arg1, %c0_i32, %c0_i32_0 : i32, i32, i32
  }
  func.func @transform_17(%arg0: i32, %arg1: i32) -> (i32, i32, i32) {
    %c0_i32 = arith.constant 0 : i32
    %c0_i32_0 = arith.constant 0 : i32
    %c0_i32_1 = arith.constant 0 : i32
    return %arg1, %c0_i32, %c0_i32_0 : i32, i32, i32
  }
  func.func @transform_18(%arg0: i32, %arg1: i32) -> (i32, i32, i32) {
    %c0_i32 = arith.constant 0 : i32
    %c0_i32_0 = arith.constant 0 : i32
    %c0_i32_1 = arith.constant 0 : i32
    return %arg1, %c0_i32, %c0_i32_0 : i32, i32, i32
  }
  func.func @transform_19(%arg0: i32, %arg1: i32) -> (i32, i32, i32) {
    %c0_i32 = arith.constant 0 : i32
    %c0_i32_0 = arith.constant 0 : i32
    %c0_i32_1 = arith.constant 0 : i32
    return %arg1, %c0_i32, %c0_i32_0 : i32, i32, i32
  }
  func.func @transform_20(%arg0: i32, %arg1: i32) -> (i32, i32, i32) {
    %c0_i32 = arith.constant 0 : i32
    %c0_i32_0 = arith.constant 0 : i32
    %c0_i32_1 = arith.constant 0 : i32
    return %arg1, %c0_i32, %c0_i32_0 : i32, i32, i32
  }
  func.func @transform_21(%arg0: i32, %arg1: i32) -> (i32, i32, i32) {
    %c0_i32 = arith.constant 0 : i32
    %c0_i32_0 = arith.constant 0 : i32
    %c0_i32_1 = arith.constant 0 : i32
    return %arg1, %c0_i32, %c0_i32_0 : i32, i32, i32
  }
  func.func @transform_22(%arg0: i32, %arg1: i32) -> (i32, i32) {
    %c0_i32 = arith.constant 0 : i32
    %c0_i32_0 = arith.constant 0 : i32
    %c0_i32_1 = arith.constant 0 : i32
    return %c0_i32, %c0_i32_0 : i32, i32
  }
  func.func @transform_23(%arg0: i32, %arg1: i32) -> (i32, i32) {
    %c0_i32 = arith.constant 0 : i32
    %c0_i32_0 = arith.constant 0 : i32
    %c0_i32_1 = arith.constant 0 : i32
    return %c0_i32, %c0_i32_0 : i32, i32
  }
  func.func @transform_24(%arg0: i32, %arg1: i32) -> (i32, i32, i32) {
    %c0_i32 = arith.constant 0 : i32
    %c0_i32_0 = arith.constant 0 : i32
    %c0_i32_1 = arith.constant 0 : i32
    return %arg0, %c0_i32, %c0_i32_0 : i32, i32, i32
  }
}

</mosaic_0001>

<bundles_post_ra>
// kernel: tpu_custom_call.1
= control target key start
LH: loop header
LB: loop body
LE: loop exit
PB: predicated region body
PF: predicated region fallthrough
CT: control target
= control target key end

     0   :  { %s7018_s0 = inlined_call_operand.hbm [shape: bf16[2,8,32], index: 0, kind: input, shape index: {}]   ;;  %s7019_s1 = inlined_call_operand.hbm [shape: bf16[2,8,32], index: 1, kind: input, shape index: {}]   ;;  %s7020_s2 = inlined_call_operand.vmem [shape: bf16[2,32,96], index: 2, kind: input, shape index: {}]   ;;  %s7021_s3 = inlined_call_operand.hbm [shape: f32[2,1,96], index: 3, kind: input, shape index: {}]   ;;  %s7022_s4 = inlined_call_operand.vmem [shape: bf16[2,32,32], index: 4, kind: input, shape index: {}]   ;;  %s7023_s5 = inlined_call_operand.hbm [shape: f32[2,1,32], index: 5, kind: input, shape index: {}]   ;;  %s7024_s6 = inlined_call_operand.hbm [shape: f32[2,1,32], index: 6, kind: input, shape index: {}]   ;;  %s7025_s7 = inlined_call_operand.hbm [shape: f32[2,1,32], index: 7, kind: input, shape index: {}]   ;;  %s7026_s8 = inlined_call_operand.vmem [shape: bf16[2,32,32], index: 8, kind: input, shape index: {}]   ;;  %s7027_s9 = inlined_call_operand.hbm [shape: f32[2,1,32], index: 9, kind: input, shape index: {}]   ;;  %s7028_s10 = inlined_call_operand.hbm [shape: bf16[2,32,64], index: 10, kind: input, shape index: {}]   ;;  %s7029_s11 = inlined_call_operand.hbm [shape: f32[2,1,64], index: 11, kind: input, shape index: {}]   ;;  %s7030_s12 = inlined_call_operand.hbm [shape: bf16[2,32,32], index: 12, kind: input, shape index: {}]   ;;  %s7031_s13 = inlined_call_operand.hbm [shape: f32[2,1,32], index: 13, kind: input, shape index: {}]   ;;  %s7032_s14 = inlined_call_operand.hbm [shape: f32[2,1,32], index: 14, kind: input, shape index: {}]   ;;  %s7033_s15 = inlined_call_operand.hbm [shape: f32[2,1,32], index: 15, kind: input, shape index: {}]   ;;  %s7034_s16 = inlined_call_operand.hbm [shape: bf16[2,32,64], index: 16, kind: input, shape index: {}]   ;;  %s7035_s17 = inlined_call_operand.hbm [shape: f32[2,1,64], index: 17, kind: input, shape index: {}]   ;;  %s7036_s18 = inlined_call_operand.vmem [shape: bf16[2,64,32], index: 18, kind: input, shape index: {}]   ;;  %s7037_s19 = inlined_call_operand.vmem [shape: f32[2,1,32], index: 19, kind: input, shape index: {}]   ;;  %s7038_s20 = inlined_call_operand.vmem [shape: f32[2,1,32], index: 20, kind: input, shape index: {}]   ;;  %s7039_s21 = inlined_call_operand.vmem [shape: f32[2,1,32], index: 21, kind: input, shape index: {}]   ;;  %s7040_s22 = inlined_call_operand.vmem [shape: f32[1,32], index: 22, kind: input, shape index: {}]   ;;  %s7041_s23 = inlined_call_operand.vmem [shape: f32[1,32], index: 23, kind: input, shape index: {}]   ;;  %s7042_s24 = inlined_call_operand.hbm [shape: f32[2,8,32], index: 24, kind: output, shape index: {}]  }
   0x1   :  { %7065 = sst [smem:[#allocation34_spill]] %s7018_s0 }
   0x2   :  { %7066 = sst [smem:[#allocation35_spill]] %s7019_s1 }
   0x3   :  { %7067 = sst [smem:[#allocation36_spill]] %s7020_s2 }
   0x4   :  { %7068 = sst [smem:[#allocation37_spill]] %s7021_s3 }
   0x5   :  { %7069 = sst [smem:[#allocation38_spill]] %s7022_s4 }
   0x6   :  { %7070 = sst [smem:[#allocation39_spill]] %s7023_s5 }
   0x7   :  { %7071 = sst [smem:[#allocation40_spill]] %s7024_s6 }
   0x8   :  { %7072 = sst [smem:[#allocation41_spill]] %s7025_s7 }
   0x9   :  { %7073 = sst [smem:[#allocation42_spill]] %s7026_s8 }
   0xa   :  { %7074 = sst [smem:[#allocation43_spill]] %s7027_s9 }
   0xb   :  { %7075 = sst [smem:[#allocation44_spill]] %s7028_s10 }
   0xc   :  { %7076 = sst [smem:[#allocation45_spill]] %s7029_s11 }
   0xd   :  { %7077 = sst [smem:[#allocation46_spill]] %s7030_s12 }
   0xe   :  { %7078 = sst [smem:[#allocation47_spill]] %s7031_s13 }
   0xf   :  { %7079 = sst [smem:[#allocation48_spill]] %s7032_s14 }
  0x10   :  { %7080 = sst [smem:[#allocation49_spill]] %s7033_s15 }
  0x11   :  { %7081 = sst [smem:[#allocation50_spill]] %s7034_s16 }
  0x12   :  { %7082 = sst [smem:[#allocation51_spill]] %s7036_s18 }
  0x13   :  { %7083 = sst [smem:[#allocation52_spill]] %s7037_s19 }
  0x14   :  { %7084 = sst [smem:[#allocation53_spill]] %s7038_s20 }
  0x15   :  { %7085 = sst [smem:[#allocation54_spill]] %s7039_s21 }
  0x16   :  { %7086 = sst [smem:[#allocation55_spill]] %s7040_s22 }
  0x17   :  { %7087 = sst [smem:[#allocation56_spill]] %s7041_s23 }
  0x18   :  { %7088 = sst [smem:[#allocation57_spill]] %s7042_s24 }
  0x19   :  { %29 = vsyncpa [#allocation3], 0 }
  0x1a   :  { %30 = vsyncpa [#allocation6], 0 }
  0x1b   :  { %31 = vsyncpa [#allocation4], 0  ;;  %s6045_s5 = smov 0   ;;  %s6047_s26 = smov 0  }
  0x1c   :  { %s6049_s27 = smov 0   ;;  %s6051_s28 = smov 0  }
  0x1d   :  { %s6053_s6 = smov 0   ;;  %s6055_s2 = smov 0  }
  0x1e LB: > { %7089 = sst [smem:[#allocation25_spill]] %s5869_s26  ;;  %s6074_s29 = sadd.s32 4294967295, %s5885_s2   ;;  %s5885_s2 = sphi %s6055_s2, %s37_s2   ;;  %s5881_s6 = sphi %s6053_s6, %s7156_s6   ;;  %s5877_s28 = sphi %s6051_s28, %s7155_s28   ;;  %s5873_s27 = sphi %s6049_s27, %s7153_s27   ;;  %s5869_s26 = sphi %s6047_s26, %s7152_s26   ;;  %s5865_s5 = sphi %s6045_s5, %s7151_s5  }
  0x1f   : > { %7090 = sst [smem:[#allocation26_spill]] %s5873_s27  ;;  %s46_s0 = sadd.s32 1, %s5881_s6 }
  0x20   : > { %7091 = sst [smem:[#allocation27_spill]] %s5877_s28  ;;  %p47_p0 = scmp.ge.s32.totalorder %s46_s0, 2 }
  0x21   : > { %7092 = sst [smem:[#allocation28_spill]] %s5885_s2  ;;  %s134_s7 = sadd.s32 1, %s5873_s27 }
  0x22   : > { %7093 = sst [smem:[#allocation29_spill]] %s6074_s29  ;;  %p141_p1 = scmp.ne.s32.totalorder %s5873_s27, %s5869_s26 }
  0x23   : > { %p142_p2 = scmp.eq.s32.totalorder %s5885_s2, 0  ;;  %s7158_s0 = smov (%p47_p0, %s46_s0), 0 }
  0x24   : > { %7094 = sst [smem:[#allocation30_spill]] %s7158_s0  ;;  %p147_p4 = scmp.ne.s32.totalorder %s5869_s26, %s5865_s5 }
  0x25   : > { %p6083_p3 = por %p142_p2, %p141_p1  ;;  %s131_s3 = ssub.s32 %s5881_s6, %s7158_s0 }
  0x26   : > { %p148_p5 = scmp.eq.s32.totalorder %s6074_s29, 0  ;;  %p132_p6 = scmp.eq.s32.totalorder %s131_s3, 0 }
  0x27   : > { %p4585_p7 = scmp.ge.s32.totalorder %s5885_s2, 1  ;;  %p694_p9 = scmp.lt.s32.totalorder %s5885_s2, 3 }
  0x28   : > { %p6094_p8 = por %p148_p5, %p147_p4  ;;  %s5887_s1 = smov [#allocation2]  }
  0x29   : > { %s6100_s8 = scalar_select %p132_p6, %s5873_s27, %s134_s7  }
  0x2a   : > { %s7096_s25 = scalar_select %p6094_p8, 1, 0 }
  0x2b   : > { %7098 = sst [smem:[#allocation32_spill]] %s6100_s8  ;;  %p6102_p10 = pnand %p4585_p7, %p694_p9 }
  0x2c   : > { %7097 = sst [smem:[#allocation31_spill]] %s7096_s25  ;;  %s709_s5 = sshll.u32 %s5887_s1, 4  ;;  %s710_s5 = int_to_ptr.vmem [resolvable:$true] %s709_s5 }
  0x2d   : > { %s7099_s4 = scalar_select %p6102_p10, 1, 0 }
  0x2e   : > { %p5132_p11 = pneg %p6102_p10  ;;  %p5181_p13 = scmp.lt.s32.totalorder %s5885_s2, 2 }
  0x2f   : > { %7100 = sst [smem:[#allocation33_spill]] %s7099_s4  ;;  %s753_s7 = sand.u32 1, %s5885_s2  }
  0x30   : > { %p6110_p12 = pnand %p5132_p11, %p148_p5  ;;  %s5394_s0 = scalar_lea.vmem %s710_s5, 128 }
  0x31   : > { %p5395_p1 = scmp.ne.s32.totalorder %s710_s5, %s5394_s0  ;;  %p5402_p6 = scmp.lt.s32.totalorder %s710_s5, %s710_s5 }
  0x32   : > { %p5385_p0 = pneg %p6110_p12  ;;  %p5403_p7 = scmp.lt.s32.totalorder %s5394_s0, %s5394_s0 }
  0x34   : > { %p5397_p2 = pnand %p5395_p1, %p5385_p0  ;;  %p5404_p9 = por %p5403_p7, %p5402_p6 }
  0x36   : > { %p5398_p4 = pneg %p5397_p2 }
  0x38   : > { %p5405_p8 = pnand %p5404_p9, %p5398_p4 }
  0x3a   : > { %5408 = shalt.err (!%p5405_p8)
}
  0x3b   : > { %s7051_s1 = smov 64   ;;  %s7053_s8 = smov 4  }
  0x3c   : > { %s7102_s22 = sld [smem:[#allocation34_spill]]  ;;  %s6130_s21 = sand.u32 1, %s5873_s27  }
  0x3d   : > { %p6136_p8 = pnand %p5181_p13, %p6083_p3  ;;  %s6141_s20 = sshll.u32 %s5881_s6, 4 }
  0x3e   : > { %s7104_s28 = sld [smem:[#allocation37_spill]]  ;;  %s756_s23 = scalar_lea.vmem [#allocation7], %s6130_s21 }
  0x3f   : > { %s6152_s27 = scalar_lea.sflag [#allocation3], %s753_s7  ;;  %p6156_p3 = pneg %p6136_p8 }
  0x40   : > { %s5890_s18 = smov [#allocation7]  }
  0x41   : > { %s5427_s19 = sshll.u32 %s5890_s18, 4  ;;  %s5428_s19 = int_to_ptr.vmem [resolvable:$false] %s5427_s19 }
  0x42   : > { %5135 = dma.hbm_to_vmem [thread:$0]  (!%p6110_p12), %s7102_s22, 128, %s710_s5, [#allocation3], %s7051_s1, %s7051_s1, %s7053_s8  }
  0x43   : > { %s763_s22 = sshll.u32 %s756_s23, 4  ;;  %s7105_s5 = sld [smem:[#allocation39_spill]]  ;;  %s764_s22 = int_to_ptr.vmem [resolvable:$true] %s763_s22 }
  0x44   : > { %s761_s25 = scalar_lea.hbm %s7104_s28, %s6141_s20  ;;  %s5422_s26 = scalar_lea.vmem %s764_s22, 16 }
  0x45   : > { %p5423_p11 = scmp.ne.s32.totalorder %s764_s22, %s5422_s26  ;;  %s5429_s28 = scalar_lea.vmem %s5428_s19, 32 }
  0x46   : > { %p5430_p2 = scmp.lt.s32.totalorder %s764_s22, %s5428_s19  ;;  %p5431_p4 = scmp.lt.s32.totalorder %s5429_s28, %s5422_s26 }
  0x47   : > { %p5425_p13 = pnand %p5423_p11, %p6156_p3 }
  0x48   : > { %p5432_p6 = por %p5431_p4, %p5430_p2 }
  0x49   : > { %s7106_s1 = smov %s7105_s5  ;;  %p5426_p1 = pneg %p5425_p13 }
  0x4b   : > { %p5433_p7 = pnand %p5432_p6, %p5426_p1 }
  0x4d   : > { %5436 = shalt.err (!%p5433_p7)
}
  0x4e   : > { %5142 = dma.hbm_to_vmem [thread:$0]  (!%p6136_p8), %s761_s25, 16, %s764_s22, %s6152_s27  }
  0x4f   : > { %s781_s7 = scalar_lea.vmem [#allocation8], %s6130_s21  ;;  %s7108_s5 = sld [smem:[#allocation40_spill]] }
  0x50   : > { %s788_s23 = sshll.u32 %s781_s7, 4  ;;  %s5891_s26 = smov [#allocation8]   ;;  %s789_s23 = int_to_ptr.vmem [resolvable:$true] %s788_s23 }
  0x51   : > { %s5450_s29 = scalar_lea.vmem %s789_s23, 16  ;;  %s5455_s19 = sshll.u32 %s5891_s26, 4  ;;  %s5456_s19 = int_to_ptr.vmem [resolvable:$false] %s5455_s19 }
  0x52   : > { %p5451_p9 = scmp.ne.s32.totalorder %s789_s23, %s5450_s29  ;;  %s5457_s28 = scalar_lea.vmem %s5456_s19, 32 }
  0x53   : > { %p5458_p1 = scmp.lt.s32.totalorder %s789_s23, %s5456_s19  ;;  %p5459_p2 = scmp.lt.s32.totalorder %s5457_s28, %s5450_s29 }
  0x54   : > { %p5453_p11 = pnand %p5451_p9, %p6156_p3 }
  0x55   : > { %s7109_s18 = smov %s7108_s5  ;;  %p5460_p4 = por %p5459_p2, %p5458_p1 }
  0x56   : > { %p5454_p13 = pneg %p5453_p11 }
  0x58   : > { %p5461_p6 = pnand %p5460_p4, %p5454_p13 }
  0x5a   : > { %5464 = shalt.err (!%p5461_p6)
}
  0x5b   : > { %s7110_s7 = scalar_lea.hbm %s7106_s1, %s6141_s20  ;;  %s798_s24 = scalar_lea.vmem [#allocation9], %s6130_s21 }
  0x5c   : > { %5145 = dma.hbm_to_vmem [thread:$0]  (!%p6136_p8), %s7110_s7, 16, %s789_s23, %s6152_s27  }
  0x5d   : > { %s805_s30 = sshll.u32 %s798_s24, 4  ;;  %s7111_s26 = sld [smem:[#allocation41_spill]]  ;;  %s806_s30 = int_to_ptr.vmem [resolvable:$true] %s805_s30 }
  0x5e   : > { %s5478_s8 = scalar_lea.vmem %s806_s30, 16  ;;  %s5892_s4 = smov [#allocation9]  }
  0x5f   : > { %p5479_p7 = scmp.ne.s32.totalorder %s806_s30, %s5478_s8  ;;  %s5483_s25 = sshll.u32 %s5892_s4, 4  ;;  %s5484_s25 = int_to_ptr.vmem [resolvable:$false] %s5483_s25 }
  0x60   : > { %s5485_s22 = scalar_lea.vmem %s5484_s25, 32  ;;  %p5486_p13 = scmp.lt.s32.totalorder %s806_s30, %s5484_s25 }
  0x61   : > { %p5481_p9 = pnand %p5479_p7, %p6156_p3  ;;  %p5487_p1 = scmp.lt.s32.totalorder %s5485_s22, %s5478_s8 }
  0x63   : > { %s820_s28 = scalar_lea.hbm %s7111_s26, %s6141_s20  ;;  %p5482_p11 = pneg %p5481_p9 }
  0x64   : > { %p5488_p2 = por %p5487_p1, %p5486_p13 }
  0x66   : > { %p5489_p4 = pnand %p5488_p2, %p5482_p11 }
  0x68   : > { %5492 = shalt.err (!%p5489_p4)
}
  0x69   : > { %s7113_s24 = scalar_lea.hbm %s7109_s18, %s6141_s20  ;;  %s815_s4 = scalar_lea.vmem [#allocation10], %s6130_s21 }
  0x6a   : > { %5148 = dma.hbm_to_vmem [thread:$0]  (!%p6136_p8), %s7113_s24, 16, %s806_s30, %s6152_s27  }
  0x6b   : > { %s822_s5 = sshll.u32 %s815_s4, 4  ;;  %s7114_s9 = sld [smem:[#allocation43_spill]]  ;;  %s823_s5 = int_to_ptr.vmem [resolvable:$true] %s822_s5 }
  0x6c   : > { %s5506_s25 = scalar_lea.vmem %s823_s5, 16  ;;  %s5893_s22 = smov [#allocation10]  }
  0x6d   : > { %p5507_p6 = scmp.ne.s32.totalorder %s823_s5, %s5506_s25  ;;  %s5511_s23 = sshll.u32 %s5893_s22, 4  ;;  %s5512_s23 = int_to_ptr.vmem [resolvable:$false] %s5511_s23 }
  0x6e   : > { %s5513_s7 = scalar_lea.vmem %s5512_s23, 32  ;;  %p5514_p11 = scmp.lt.s32.totalorder %s823_s5, %s5512_s23 }
  0x6f   : > { %p5509_p7 = pnand %p5507_p6, %p6156_p3  ;;  %p5515_p13 = scmp.lt.s32.totalorder %s5513_s7, %s5506_s25 }
  0x71   : > { %s845_s26 = scalar_lea.hbm %s7114_s9, %s6141_s20  ;;  %p5510_p9 = pneg %p5509_p7 }
  0x72   : > { %p5516_p1 = por %p5515_p13, %p5514_p11 }
  0x74   : > { %p5517_p2 = pnand %p5516_p1, %p5510_p9 }
  0x76   : > { %5520 = shalt.err (!%p5517_p2)
}
  0x77   : > { %5151 = dma.hbm_to_vmem [thread:$0]  (!%p6136_p8), %s820_s28, 16, %s823_s5, %s6152_s27  }
  0x78   : > { %s840_s4 = scalar_lea.vmem [#allocation11], %s6130_s21  ;;  %s6212_s8 = sshll.u32 %s6130_s21, 4 }
  0x79   : > { %s847_s29 = sshll.u32 %s840_s4, 4  ;;  %s5894_s22 = smov [#allocation11]   ;;  %s848_s29 = int_to_ptr.vmem [resolvable:$true] %s847_s29 }
  0x7a   : > { %s5534_s25 = scalar_lea.vmem %s848_s29, 16  ;;  %s5539_s23 = sshll.u32 %s5894_s22, 4  ;;  %s5540_s23 = int_to_ptr.vmem [resolvable:$false] %s5539_s23 }
  0x7b   : > { %p5535_p4 = scmp.ne.s32.totalorder %s848_s29, %s5534_s25  ;;  %s5541_s7 = scalar_lea.vmem %s5540_s23, 32 }
  0x7c   : > { %p5542_p9 = scmp.lt.s32.totalorder %s848_s29, %s5540_s23  ;;  %p5543_p11 = scmp.lt.s32.totalorder %s5541_s7, %s5534_s25 }
  0x7d   : > { %p5537_p6 = pnand %p5535_p4, %p6156_p3 }
  0x7e   : > { %p5544_p13 = por %p5543_p11, %p5542_p9 }
  0x7f   : > { %p5538_p7 = pneg %p5537_p6 }
  0x81   : > { %p5545_p1 = pnand %p5544_p13, %p5538_p7 }
  0x83   : > { %5548 = shalt.err (!%p5545_p1)
}
  0x84   : > { %5154 = dma.hbm_to_vmem [thread:$0]  (!%p6136_p8), %s845_s26, 16, %s848_s29, %s6152_s27  }
  0x85   : > { %s6225_s30 = sshll.u32 %s5881_s6, 8  ;;  %s858_s24 = scalar_lea.vmem [#allocation12], %s6212_s8 }
  0x86   : > { %s865_s4 = sshll.u32 %s858_s24, 4  ;;  %s7115_s10 = sld [smem:[#allocation44_spill]]  ;;  %s866_s4 = int_to_ptr.vmem [resolvable:$true] %s865_s4 }
  0x87   : > { %s5562_s7 = scalar_lea.vmem %s866_s4, 256  ;;  %s5895_s28 = smov [#allocation12]  }
  0x88   : > { %p5563_p2 = scmp.ne.s32.totalorder %s866_s4, %s5562_s7  ;;  %s5567_s5 = sshll.u32 %s5895_s28, 4  ;;  %s5568_s5 = int_to_ptr.vmem [resolvable:$false] %s5567_s5 }
  0x89   : > { %s5569_s1 = scalar_lea.vmem %s5568_s5, 512  ;;  %p5570_p7 = scmp.lt.s32.totalorder %s866_s4, %s5568_s5 }
  0x8a   : > { %p5565_p4 = pnand %p5563_p2, %p6156_p3  ;;  %p5571_p9 = scmp.lt.s32.totalorder %s5569_s1, %s5562_s7 }
  0x8c   : > { %s864_s23 = scalar_lea.hbm %s7115_s10, %s6225_s30  ;;  %p5566_p6 = pneg %p5565_p4 }
  0x8d   : > { %p5572_p11 = por %p5571_p9, %p5570_p7 }
  0x8f   : > { %p5573_p13 = pnand %p5572_p11, %p5566_p6 }
  0x91   : > { %5576 = shalt.err (!%p5573_p13)
}
  0x92   : > { %s7116_s26 = smov 4   ;;  %s7117_s29 = smov 64  }
  0x93   : > { %5157 = dma.hbm_to_vmem [thread:$0]  (!%p6136_p8), %s864_s23, 256, %s866_s4, %s6152_s27, %s7117_s29, %s7117_s29, %s7116_s26  }
  0x94   : > { %s7118_s11 = sld [smem:[#allocation45_spill]]  ;;  %s878_s28 = scalar_lea.vmem [#allocation13], %s6130_s21 }
  0x95   : > { %s885_s1 = sshll.u32 %s878_s28, 4  ;;  %s7119_s12 = sld [smem:[#allocation46_spill]]  ;;  %s886_s1 = int_to_ptr.vmem [resolvable:$true] %s885_s1 }
  0x96   : > { %s5590_s10 = scalar_lea.vmem %s886_s1, 16  ;;  %s5896_s18 = smov [#allocation13]  }
  0x97   : > { %p5591_p1 = scmp.ne.s32.totalorder %s886_s1, %s5590_s10  ;;  %s5595_s19 = sshll.u32 %s5896_s18, 4  ;;  %s5596_s19 = int_to_ptr.vmem [resolvable:$false] %s5595_s19 }
  0x98   : > { %s5597_s4 = scalar_lea.vmem %s5596_s19, 32  ;;  %p5598_p6 = scmp.lt.s32.totalorder %s886_s1, %s5596_s19 }
  0x99   : > { %p5593_p2 = pnand %p5591_p1, %p6156_p3  ;;  %p5599_p7 = scmp.lt.s32.totalorder %s5597_s4, %s5590_s10 }
  0x9a   : > { %s883_s22 = scalar_lea.hbm %s7118_s11, %s6141_s20 }
  0x9b   : > { %s902_s9 = scalar_lea.hbm %s7119_s12, %s6225_s30  ;;  %p5594_p4 = pneg %p5593_p2 }
  0x9c   : > { %p5600_p9 = por %p5599_p7, %p5598_p6 }
  0x9e   : > { %p5601_p11 = pnand %p5600_p9, %p5594_p4 }
  0xa0   : > { %5604 = shalt.err (!%p5601_p11)
}
  0xa1   : > { %5160 = dma.hbm_to_vmem [thread:$0]  (!%p6136_p8), %s883_s22, 16, %s886_s1, %s6152_s27  }
  0xa2   : > { %s896_s23 = scalar_lea.vmem [#allocation14], %s6212_s8  ;;  %s7120_s13 = sld [smem:[#allocation47_spill]] }
  0xa3   : > { %s903_s24 = sshll.u32 %s896_s23, 4  ;;  %s5897_s10 = smov [#allocation14]   ;;  %s904_s24 = int_to_ptr.vmem [resolvable:$true] %s903_s24 }
  0xa4   : > { %s5618_s7 = scalar_lea.vmem %s904_s24, 256  ;;  %s5623_s19 = sshll.u32 %s5897_s10, 4  ;;  %s5624_s19 = int_to_ptr.vmem [resolvable:$false] %s5623_s19 }
  0xa5   : > { %p5619_p13 = scmp.ne.s32.totalorder %s904_s24, %s5618_s7  ;;  %s5625_s5 = scalar_lea.vmem %s5624_s19, 512 }
  0xa6   : > { %p5626_p4 = scmp.lt.s32.totalorder %s904_s24, %s5624_s19  ;;  %p5627_p6 = scmp.lt.s32.totalorder %s5625_s5, %s5618_s7 }
  0xa7   : > { %p5621_p1 = pnand %p5619_p13, %p6156_p3 }
  0xa8   : > { %s921_s18 = scalar_lea.hbm %s7120_s13, %s6141_s20  ;;  %p5628_p7 = por %p5627_p6, %p5626_p4 }
  0xa9   : > { %p5622_p2 = pneg %p5621_p1 }
  0xab   : > { %p5629_p9 = pnand %p5628_p7, %p5622_p2 }
  0xad   : > { %5632 = shalt.err (!%p5629_p9)
}
  0xae   : > { %5163 = dma.hbm_to_vmem [thread:$0]  (!%p6136_p8), %s902_s9, 256, %s904_s24, %s6152_s27, %s7117_s29, %s7117_s29, %s7116_s26  }
  0xaf   : > { %s916_s4 = scalar_lea.vmem [#allocation15], %s6130_s21  ;;  %s7121_s14 = sld [smem:[#allocation48_spill]] }
  0xb0   : > { %s923_s23 = sshll.u32 %s916_s4, 4  ;;  %s5898_s19 = smov [#allocation15]   ;;  %s924_s23 = int_to_ptr.vmem [resolvable:$true] %s923_s23 }
  0xb1   : > { %s5646_s10 = scalar_lea.vmem %s924_s23, 16  ;;  %s5651_s5 = sshll.u32 %s5898_s19, 4  ;;  %s5652_s5 = int_to_ptr.vmem [resolvable:$false] %s5651_s5 }
  0xb2   : > { %p5647_p11 = scmp.ne.s32.totalorder %s924_s23, %s5646_s10  ;;  %s5653_s22 = scalar_lea.vmem %s5652_s5, 32 }
  0xb3   : > { %p5654_p2 = scmp.lt.s32.totalorder %s924_s23, %s5652_s5  ;;  %p5655_p4 = scmp.lt.s32.totalorder %s5653_s22, %s5646_s10 }
  0xb4   : > { %p5649_p13 = pnand %p5647_p11, %p6156_p3 }
  0xb5   : > { %s938_s7 = scalar_lea.hbm %s7121_s14, %s6141_s20  ;;  %p5656_p6 = por %p5655_p4, %p5654_p2 }
  0xb6   : > { %p5650_p1 = pneg %p5649_p13 }
  0xb8   : > { %p5657_p7 = pnand %p5656_p6, %p5650_p1 }
  0xba   : > { %5660 = shalt.err (!%p5657_p7)
}
  0xbb   : > { %5166 = dma.hbm_to_vmem [thread:$0]  (!%p6136_p8), %s921_s18, 16, %s924_s23, %s6152_s27  }
  0xbc   : > { %s933_s1 = scalar_lea.vmem [#allocation16], %s6130_s21  ;;  %s7122_s15 = sld [smem:[#allocation49_spill]] }
  0xbd   : > { %s940_s4 = sshll.u32 %s933_s1, 4  ;;  %s5899_s5 = smov [#allocation16]   ;;  %s941_s4 = int_to_ptr.vmem [resolvable:$true] %s940_s4 }
  0xbe   : > { %s5674_s19 = scalar_lea.vmem %s941_s4, 16  ;;  %s5679_s22 = sshll.u32 %s5899_s5, 4  ;;  %s5680_s22 = int_to_ptr.vmem [resolvable:$false] %s5679_s22 }
  0xbf   : > { %p5675_p9 = scmp.ne.s32.totalorder %s941_s4, %s5674_s19  ;;  %s5681_s9 = scalar_lea.vmem %s5680_s22, 32 }
  0xc0   : > { %p5682_p1 = scmp.lt.s32.totalorder %s941_s4, %s5680_s22  ;;  %p5683_p2 = scmp.lt.s32.totalorder %s5681_s9, %s5674_s19 }
  0xc1   : > { %p5677_p11 = pnand %p5675_p9, %p6156_p3 }
  0xc2   : > { %s955_s10 = scalar_lea.hbm %s7122_s15, %s6141_s20  ;;  %p5684_p4 = por %p5683_p2, %p5682_p1 }
  0xc3   : > { %p5678_p13 = pneg %p5677_p11 }
  0xc5   : > { %p5685_p6 = pnand %p5684_p4, %p5678_p13 }
  0xc7   : > { %5688 = shalt.err (!%p5685_p6)
}
  0xc8   : > { %5169 = dma.hbm_to_vmem [thread:$0]  (!%p6136_p8), %s938_s7, 16, %s941_s4, %s6152_s27  }
  0xc9   : > { %s950_s24 = scalar_lea.vmem [#allocation17], %s6130_s21  ;;  %s7123_s16 = sld [smem:[#allocation50_spill]] }
  0xca   : > { %s957_s1 = sshll.u32 %s950_s24, 4  ;;  %s5900_s22 = smov [#allocation17]   ;;  %s958_s1 = int_to_ptr.vmem [resolvable:$true] %s957_s1 }
  0xcb   : > { %s5702_s5 = scalar_lea.vmem %s958_s1, 16  ;;  %s5707_s9 = sshll.u32 %s5900_s22, 4  ;;  %s5708_s9 = int_to_ptr.vmem [resolvable:$false] %s5707_s9 }
  0xcc   : > { %p5703_p7 = scmp.ne.s32.totalorder %s958_s1, %s5702_s5  ;;  %s5709_s18 = scalar_lea.vmem %s5708_s9, 32 }
  0xcd   : > { %p5710_p13 = scmp.lt.s32.totalorder %s958_s1, %s5708_s9  ;;  %p5711_p1 = scmp.lt.s32.totalorder %s5709_s18, %s5702_s5 }
  0xce   : > { %p5705_p9 = pnand %p5703_p7, %p6156_p3 }
  0xcf   : > { %s974_s19 = scalar_lea.hbm %s7123_s16, %s6225_s30  ;;  %p5712_p2 = por %p5711_p1, %p5710_p13 }
  0xd0   : > { %p5706_p11 = pneg %p5705_p9 }
  0xd2   : > { %p5713_p4 = pnand %p5712_p2, %p5706_p11 }
  0xd4   : > { %5716 = shalt.err (!%p5713_p4)
}
  0xd5   : > { %5172 = dma.hbm_to_vmem [thread:$0]  (!%p6136_p8), %s955_s10, 16, %s958_s1, %s6152_s27  }
  0xd6   : > { %s968_s23 = scalar_lea.vmem [#allocation18], %s6212_s8  ;;  %s5901_s25 = smov [#allocation5]  }
  0xd7   : > { %s975_s24 = sshll.u32 %s968_s23, 4  ;;  %s725_s28 = sshll.u32 %s5901_s25, 4  ;;  %s976_s24 = int_to_ptr.vmem [resolvable:$true] %s975_s24  ;;  %s726_s28 = int_to_ptr.vmem [resolvable:$true] %s725_s28 }
  0xd8   : > { %s5730_s5 = scalar_lea.vmem %s976_s24, 256  ;;  %s5902_s22 = smov [#allocation18]  }
  0xd9   : > { %p5731_p6 = scmp.ne.s32.totalorder %s976_s24, %s5730_s5  ;;  %s5735_s9 = sshll.u32 %s5902_s22, 4  ;;  %s5736_s9 = int_to_ptr.vmem [resolvable:$false] %s5735_s9 }
  0xda   : > { %s5737_s18 = scalar_lea.vmem %s5736_s9, 512  ;;  %p5738_p11 = scmp.lt.s32.totalorder %s976_s24, %s5736_s9 }
  0xdb   : > { %p5733_p7 = pnand %p5731_p6, %p6156_p3  ;;  %p5739_p13 = scmp.lt.s32.totalorder %s5737_s18, %s5730_s5 }
  0xdd   : > { %p5734_p9 = pneg %p5733_p7  ;;  %p5740_p1 = por %p5739_p13, %p5738_p11 }
  0xdf   : > { %p5741_p2 = pnand %p5740_p1, %p5734_p9 }
  0xe1   : > { %5744 = shalt.err (!%p5741_p2)
}
  0xe2   : > { %5175 = dma.hbm_to_vmem [thread:$0]  (!%p6136_p8), %s974_s19, 256, %s976_s24, %s6152_s27, %s7117_s29, %s7117_s29, %s7116_s26  }
  0xe3   : > { %s5756_s1 = scalar_lea.vmem %s726_s28, 128  ;;  %p5764_p9 = scmp.lt.s32.totalorder %s726_s28, %s726_s28 }
  0xe4   : > { %p5757_p4 = scmp.ne.s32.totalorder %s726_s28, %s5756_s1  ;;  %p5765_p11 = scmp.lt.s32.totalorder %s5756_s1, %s5756_s1 }
  0xe6   : > { %p5759_p6 = pnand %p5757_p4, %p5385_p0  ;;  %p5766_p13 = por %p5765_p11, %p5764_p9 }
  0xe8   : > { %p5760_p7 = pneg %p5759_p6 }
  0xea   : > { %p5767_p1 = pnand %p5766_p13, %p5760_p7 }
  0xec   : > { %5770 = shalt.err (!%p5767_p1)
}
  0xed   : > { %s7124_s19 = sld [smem:[#allocation35_spill]]  ;;  %s993_s24 = scalar_lea.hbm %s7035_s17, %s6141_s20 }
  0xee   : > { %s988_s25 = scalar_lea.vmem [#allocation19], %s6130_s21  ;;  %s5903_s3 = smov [#allocation19]  }
  0xef   : > { %s995_s5 = sshll.u32 %s988_s25, 4  ;;  %s5789_s9 = sshll.u32 %s5903_s3, 4  ;;  %s996_s5 = int_to_ptr.vmem [resolvable:$true] %s995_s5  ;;  %s5790_s9 = int_to_ptr.vmem [resolvable:$false] %s5789_s9 }
  0xf0   : > { %s5784_s22 = scalar_lea.vmem %s996_s5, 16  ;;  %s5791_s18 = scalar_lea.vmem %s5790_s9, 32 }
  0xf1   : > { %p5785_p0 = scmp.ne.s32.totalorder %s996_s5, %s5784_s22  ;;  %p5792_p6 = scmp.lt.s32.totalorder %s996_s5, %s5790_s9 }
  0xf2   : > { %p5793_p7 = scmp.lt.s32.totalorder %s5791_s18, %s5784_s22 }
  0xf3   : > { %5138 = dma.hbm_to_vmem [thread:$0]  (!%p6110_p12), %s7124_s19, 128, %s726_s28, [#allocation6], %s7117_s29, %s7117_s29, %s7116_s26  }
  0xf4   : > { %p5787_p2 = pnand %p5785_p0, %p6156_p3  ;;  %p5794_p9 = por %p5793_p7, %p5792_p6 }
  0xf6   : > { %p5788_p4 = pneg %p5787_p2 }
  0xf8   : > { %p5795_p12 = pnand %p5794_p9, %p5788_p4 }
  0xfa   : > { %5798 = shalt.err (!%p5795_p12)
}
  0xfb   : > { %5178 = dma.hbm_to_vmem [thread:$0]  (!%p6136_p8), %s993_s24, 16, %s996_s5, %s6152_s27  }
  0xfc   : > { %1030 = sbr.rel (%p6102_p10) target bundleno = 7009 (0x1b61), region = 116  ;;  %s7126_s21 = sld [smem:[#allocation29_spill]] (!%p6102_p10) }
 0x101   : > { %5848 = dma.done.wait (%p148_p5), [#allocation3], 128  }
 0x102   : > { %5850 = vsyncadd (%p148_p5), [#allocation3], 4294967168 }
 0x103   : > { %5852 = dma.done.wait (%p148_p5), [#allocation6], 128  }
 0x104   : > { %5854 = vsyncadd (%p148_p5), [#allocation6], 4294967168  ;;  %s7127_s2 = sld [smem:[#allocation25_spill]]  ;;  %s1040_s26 = sand.u32 1, %s7126_s21  }
 0x105   : > { %s7128_s0 = sld [smem:[#allocation31_spill]]  ;;  %s1041_s29 = scalar_lea.sflag [#allocation3], %s1040_s26 }
 0x10a   : > { %s6364_s27 = sand.u32 1, %s7127_s2  }
 0x10b   : > { %p7129_p10 = scmp.ne.s32.totalorder %s7128_s0, 0 }
 0x10d   : > { %5856 = dma.done.wait (%p7129_p10), %s1041_s29, 928  }
 0x10e   : > { %5858 = vsyncadd (%p7129_p10), %s1041_s29, 4294966368  ;;  %s7130_s8 = sld [smem:[#allocation27_spill]]  ;;  %s6372_s10 = sshll.u32 %s6364_s27, 4 }
 0x10f   : > { %s7131_s23 = sld [smem:[#allocation36_spill]]  ;;  %s1067_s14 = scalar_lea.vmem [#allocation10], %s6364_s27 }
 0x110   : > { %s7132_s22 = sld [smem:[#allocation38_spill]]  ;;  %s1075_s15 = scalar_lea.vmem [#allocation11], %s6364_s27 }
 0x111   : > { %s7133_s20 = sld [smem:[#allocation42_spill]]  ;;  %s1084_s2 = scalar_lea.vmem [#allocation12], %s6372_s10 }
 0x112   : > { %s7134_s26 = sld [smem:[#allocation51_spill]]  ;;  %s1092_s0 = scalar_lea.vmem [#allocation13], %s6364_s27 }
 0x113   : > { %s7137_s9 = sld [smem:[#allocation54_spill]]  ;;  %s1117_s16 = scalar_lea.vmem [#allocation16], %s6364_s27 }
 0x114   : > { %p1283_p5 = scmp.lt.s32.totalorder %s7130_s8, 1  ;;  %s1125_s19 = scalar_lea.vmem [#allocation17], %s6364_s27 }
 0x115   : > { %s1134_s4 = scalar_lea.vmem [#allocation18], %s6372_s10  ;;  %p4622_p8 = scmp.ne.s32.totalorder %s7130_s8, 0 }
 0x116   : > { %s6376_s1 = scalar_select %p1283_p5, %s7130_s8, 1 }
 0x118   : > { %s4705_s30 = sshll.u32 %s6376_s1, 4  ;;  %s4708_s7 = sshll.u32 %s6376_s1, 5 }
 0x119   : > { %s6383_s24 = scalar_lea.vmem %s7131_s23, %s4705_s30  ;;  %s6388_s3 = scalar_lea.vmem %s7132_s22, %s4705_s30 }
 0x11a   : > { %s6393_s21 = scalar_lea.vmem %s7133_s20, %s4705_s30  ;;  %s6398_s29 = scalar_lea.vmem %s7134_s26, %s4708_s7 }
 0x11b   : > { %s7135_s23 = sld [smem:[#allocation52_spill]]  ;;  %s1311_s18 = scalar_lea.vmem %s7137_s9, %s6376_s1 }
 0x11c   : > { %s7136_s22 = sld [smem:[#allocation53_spill]]  ;;  %s1051_s30 = scalar_lea.vmem [#allocation8], %s6364_s27 }
 0x11d   : > { %s1059_s20 = scalar_lea.vmem [#allocation9], %s6364_s27  ;;  %s6419_s7 = scalar_lea.vmem [#allocation14], %s6372_s10 }
 0x11e   : > { %s1109_s26 = scalar_lea.vmem [#allocation15], %s6364_s27  ;;  %1317 = sbr.rel (%p4622_p8) target bundleno = 295 (0x127), region = 180 }
 0x121   : > { %s1305_s28 = scalar_lea.vmem %s7135_s23, %s6376_s1  ;;  %s1142_s23 = scalar_lea.vmem [#allocation19], %s6364_s27 }
 0x122   : > { %s1308_s11 = scalar_lea.vmem %s7136_s22, %s6376_s1 }
 0x123   : > { %v4710_v0 = vld [vmem:[#allocation2] sm:$0xff]   ;;  %vm1322_vm0 = vcmask 261120  }
 0x124   : > { %v4711_v1 = vunpack.c.l.bf16 %v4710_v0  ;;  %v4712_v2 = vunpack.c.h.bf16 %v4710_v0 }
 0x126   : > { %1323 = vst.msk [vmem:[#allocation20] sm:$0xff] %vm1322_vm0, %v4711_v1  ;;  %1324 = vst.msk [vmem:[#allocation20 + $0x8] sm:$0xff] %vm1322_vm0, %v4712_v2 }
 0x127 PF: > { %v5254_v3 = vld [vmem:[%s6383_s24 + $0x8] sm:$0xff]   ;;  %v5904_v4 = vmov 0.0   ;;  %v5255_v5 = vld [vmem:[%s6383_s24] sm:$0xff]   ;;  %vm5905_vm1 = vmmov 0   ;;  %vm1353_vm2 = vcmask 261120   ;;  %s7138_s12 = scalar_lea.vmem [#allocation7], %s6364_s27  ;;  %v1409_v28 = vlaneseq }
 0x128   : > { %4810 = vmatprep.subr.bf16.mxu1 %v5904_v4  ;;  %4824 = vmatprep.subr.bf16.mxu0 %v5904_v4  ;;  %v4623_v9 = vld [vmem:[%s7138_s12] ss:$0 sm:$0xff]  ;;  %s5906_s13 = smov 96   ;;  %s5907_s8 = smov 64   ;;  %vm1417_vm3 = vcmask 64512   ;;  %vm1552_vm4 = vcmask 1043456  }
 0x129   : > { %4811 = vmatpush3.bf16.msra.mxu1 %v5254_v3  ;;  %4814 = vmatprep.mubr.msk.bf16.mxu1 %vm5905_vm1, %v5904_v4  ;;  %s5908_s24 = smov 88   ;;  %s5909_s25 = smov 120   ;;  %v1410_v29 = vshrl.u32 %v1409_v28, 7  ;;  %v1412_v30 = vand.u32 127, %v1409_v28  ;;  %vm4056_vm6 = vcmask 523264  }
 0x12a   : > { %4812 = vmatprep.subr.bf16.mxu1 %v5904_v4  ;;  %4826 = vmatprep.mubr.msk.bf16.mxu0 %vm5905_vm1, %v5904_v4  ;;  %s5910_s5 = smov 56   ;;  %s5911_s22 = smov 80  }
 0x12b   : > { %vm6484_vm5 = vcmp.le.s32.totalorder %v1412_v30, %v1410_v29  ;;  %s5912_s9 = smov 112   ;;  %s5913_s12 = smov 48  }
 0x12d   : > { %v6433_v6 = vld [vmem:[#allocation20] sm:$0xff]  ;;  %v6435_v7 = vld [vmem:[#allocation20 + $0x8] sm:$0xff]  ;;  %4813 = vmatpush3.bf16.msra.mxu1 %v5255_v5 }
 0x12e   : > { %v1334_v8 = vpack.c.bf16 %v6435_v7, %v6433_v6  ;;  %4818 = vmatprep.subr.bf16.mxu1 %v5904_v4 }
 0x130   : > { %4815 = vmatmul.mubr.msk.bf16.vlgmr.msra.gmra.mxu1 %vm1353_vm2, %v1334_v8 }
 0x131   : > { %4820 = vmatprep.mubr.msk.bf16.mxu1 %vm5905_vm1, %v5904_v4 }
 0x1f0   : > { %v1391_v10 = vpop.f32.mrf.mxu1 }
 0x1f1   : > { %v1392_v11 = vadd.f32 %v4623_v9, %v1391_v10 }
 0x1f2   : > { %v4816_v12 = vpop.f32.mrf.mxu1 }
 0x1f3   : > { %v6448_v13 = vpack.c.bf16 %v1392_v11, %v1392_v11  ;;  %v1398_v18 = vmul.f32 0.35355338, %v1392_v11 }
 0x1f4   : > { %v1394_v14 = vpop.f32.mrf.mxu1 }
 0x1f5   : > { %v1395_v15 = vadd.f32 %v4623_v9, %v1394_v14  ;;  %1415 = vrot.lane.b32.xlu0 %v6448_v13, %s5906_s13  ;;  %v6462_v19 = vpack.c.bf16 %v1398_v18, %v1398_v18 }
 0x1f6   : > { %v4817_v16 = vpop.f32.mrf.mxu1 }
 0x1f7   : > { %v6452_v17 = vpack.c.bf16 %v1395_v15, %v1395_v15  ;;  %v1399_v20 = vmul.f32 0.35355338, %v1395_v15 }
 0x1f9   : > { %1465 = vrot.lane.b32.xlu0 %v6452_v17, %s5906_s13  ;;  %v6466_v21 = vpack.c.bf16 %v1399_v20, %v1399_v20 }
 0x1fd   : > { %1547 = vrot.lane.b32.xlu0 %v6448_v13, %s5907_s8 }
 0x201   : > { %1654 = vrot.lane.b32.xlu0 %v6448_v13, %s5908_s24 }
 0x205   : > { %1705 = vrot.lane.b32.xlu0 %v6452_v17, %s5908_s24 }
 0x209   : > { %1652 = vrot.lane.b32.xlu0 %v6462_v19, %s5909_s25 }
 0x20d   : > { %1703 = vrot.lane.b32.xlu0 %v6466_v21, %s5909_s25 }
 0x267   : > { %v1416_v22 = vpop.permute.xlu0 %1415 }
 0x268   : > { %v1422_v23 = vsel %vm1417_vm3, %v1416_v22, 0 }
 0x269   : > { %4819 = vmatpush3.bf16.xpose.msra.mxu1 %v1422_v23 }
 0x26a   : > { %4830 = vmatprep.subr.bf16.mxu1 %v5904_v4 }
 0x26b   : > { %v1466_v24 = vpop.permute.xlu0 %1465 }
 0x26c   : > { %v1471_v25 = vsel %vm1417_vm3, %v1466_v24, 0 }
 0x26d   : > { %4825 = vmatpush3.bf16.xpose.msra.mxu0 %v1471_v25 }
 0x26e   : > { %4836 = vmatprep.subr.bf16.mxu0 %v5904_v4 }
 0x26f   : > { %v1548_v26 = vpop.permute.xlu0 %1547 }
 0x270   : > { %v1554_v27 = vsel %vm1552_vm4, %v1548_v26, 0  ;;  %4821 = vmatmul.mubr.msk.bf16.vlgmr.msra.gmra.mxu1 %vm1417_vm3, %v6462_v19 }
 0x271   : > { %4831 = vmatpush3.bf16.msra.mxu1 %v1554_v27  ;;  %4832 = vmatprep.mubr.msk.bf16.mxu1 %vm5905_vm1, %v5904_v4 }
 0x272   : > { %4842 = vmatprep.subr.bf16.mxu1 %v5904_v4 }
 0x273   : > { %v1655_v52 = vpop.permute.xlu0 %1654 }
 0x274   : > { %4827 = vmatmul.mubr.msk.bf16.vlgmr.msra.gmra.mxu0 %vm1417_vm3, %v6466_v21  ;;  %v1660_v56 = vsel %vm1417_vm3, %v1655_v52, 0 }
 0x275   : > { %4838 = vmatprep.mubr.msk.bf16.mxu0 %vm5905_vm1, %v5904_v4 }
 0x277   : > { %v1706_v55 = vpop.permute.xlu0 %1705 }
 0x278   : > { %v1711_v59 = vsel %vm1417_vm3, %v1706_v55, 0 }
 0x27b   : > { %v1653_v60 = vpop.permute.xlu0 %1652 }
 0x27f   : > { %v1704_v61 = vpop.permute.xlu0 %1703 }
 0x330   : > { %v1458_v32 = vpop.f32.mrf.mxu1 }
 0x331   : > { %v1515_v33 = vsel %vm6484_vm5, %v1458_v32, -1e+30 }
 0x332   : > { %v4822_v34 = vpop.f32.mrf.mxu1  ;;  %v1517_v35 = vsel %vm1417_vm3, %v1515_v33, -inf }
 0x333   : > { %1518 = vmax.xlane.f32.xlu1 %v1517_v35 }
 0x334   : > { %v1461_v36 = vpop.f32.mrf.mxu1  ;;  %v1507_v37 = vpop.f32.mrf.mxu0 }
 0x335   : > { %v1516_v38 = vsel %vm6484_vm5, %v1507_v37, -1e+30 }
 0x336   : > { %v4823_v39 = vpop.f32.mrf.mxu1  ;;  %v4828_v40 = vpop.f32.mrf.mxu0  ;;  %v1520_v41 = vsel %vm1417_vm3, %v1516_v38, -inf }
 0x337   : > { %1521 = vmax.xlane.f32.xlu1 %v1520_v41 }
 0x338   : > { %v1510_v42 = vpop.f32.mrf.mxu0 }
 0x33a   : > { %v4829_v43 = vpop.f32.mrf.mxu0 }
 0x348   : > { %1596 = vrot.lane.b32.xlu1 %v6452_v17, %s5907_s8  ;;  %s5914_s8 = smov 72  }
 0x3bc   : > { %v1519_v44 = vpop.xlane.xlu1 %1518 }
 0x3bd   : > { %v1523_v45 = vsub.f32 %v1515_v33, %v1519_v44  ;;  %v1529_v62 = vsub.f32 -inf, %v1519_v44 }
 0x3bf   : > { %v1525_v46 = vmul.f32 1.442695, %v1523_v45  ;;  %v1531_v63 = vmul.f32 1.442695, %v1529_v62 }
 0x3c0   : > { %v1522_v47 = vpop.xlane.xlu1 %1521 }
 0x3c1   : > { %5267 = vpow2.f32 %v1525_v46  ;;  %v1524_v48 = vsub.f32 %v1516_v38, %v1522_v47  ;;  %v1530_v0 = vsub.f32 -inf, %v1522_v47 }
 0x3c3   : > { %v1527_v49 = vmul.f32 1.442695, %v1524_v48  ;;  %v1533_v1 = vmul.f32 1.442695, %v1530_v0 }
 0x3c4   : > { %v1597_v50 = vpop.permute.xlu1 %1596 }
 0x3c5   : > { %5269 = vpow2.f32 %v1527_v49  ;;  %v1602_v51 = vsel %vm1552_vm4, %v1597_v50, 0 }
 0x3c6   : > { %4837 = vmatpush3.bf16.msra.mxu0 %v1602_v51  ;;  %5271 = vpow2.f32 %v1531_v63  ;;  %v1400_v51 = vld [vmem:[%s6388_s3] sm:$0xf] }
 0x3c7   : > { %4848 = vmatprep.subr.bf16.mxu0 %v5904_v4  ;;  %5273 = vpow2.f32 %v1533_v1  ;;  %v1939_v55 = vsel %vm1552_vm4, %v1400_v51, 0  ;;  %v1401_v1 = vld [vmem:[%s6388_s3 + $0x4] sm:$0xf] }
 0x3ce   : > { %v5268_v53 = vpop.eup %5267 }
 0x3cf   : > { %v1545_v54 = vpack.c.bf16 %v5268_v53, %v5268_v53  ;;  %v1537_v36 = vsel %vm1417_vm3, %v5268_v53, 0.0 }
 0x3d1   : > { %4833 = vmatmul.mubr.msk.bf16.vlgmr.msra.gmra.mxu1 %vm1417_vm3, %v1545_v54 }
 0x3d2   : > { %v5270_v57 = vpop.eup %5269  ;;  %4843 = vmatpush3.bf16.xpose.msra.mxu1 %v1660_v56  ;;  %4844 = vmatprep.mubr.msk.bf16.mxu1 %vm5905_vm1, %v5904_v4 }
 0x3d3   : > { %v1546_v58 = vpack.c.bf16 %v5270_v57, %v5270_v57  ;;  %4854 = vmatprep.subr.bf16.mxu1 %v5904_v4  ;;  %v5272_v2 = vpop.eup %5271  ;;  %v1540_v37 = vsel %vm1417_vm3, %v5270_v57, 0.0 }
 0x3d4   : > { %v6514_v3 = vmul.f32 0.0, %v5272_v2  ;;  %v5274_v5 = vpop.eup %5273  ;;  %v1892_v2 = vsel %vm1552_vm4, %v1401_v1, 0 }
 0x3d5   : > { %4839 = vmatmul.mubr.msk.bf16.vlgmr.msra.gmra.mxu0 %vm1417_vm3, %v1546_v58  ;;  %v6519_v11 = vmul.f32 0.0, %v5274_v5 }
 0x3d6   : > { %4849 = vmatpush3.bf16.xpose.msra.mxu0 %v1711_v59  ;;  %4850 = vmatprep.mubr.msk.bf16.mxu0 %vm5905_vm1, %v5904_v4 }
 0x3d7   : > { %4860 = vmatprep.subr.bf16.mxu0 %v5904_v4 }
 0x3d9   : > { %4845 = vmatmul.mubr.msk.bf16.vlgmr.msra.gmra.mxu1 %vm1417_vm3, %v1653_v60 }
 0x3da   : > { %4856 = vmatprep.mubr.msk.bf16.mxu1 %vm5905_vm1, %v5904_v4 }
 0x3dd   : > { %4851 = vmatmul.mubr.msk.bf16.vlgmr.msra.gmra.mxu0 %vm1417_vm3, %v1704_v61 }
 0x3de   : > { %4862 = vmatprep.mubr.msk.bf16.mxu0 %vm5905_vm1, %v5904_v4 }
 0x491   : > { %v1590_v8 = vpop.f32.mrf.mxu1 }
 0x492   : > { %v6517_v9 = vadd.f32 %v1590_v8, %v6514_v3 }
 0x493   : > { %v4834_v10 = vpop.f32.mrf.mxu1 }
 0x495   : > { %v1593_v12 = vpop.f32.mrf.mxu1  ;;  %v1638_v14 = vpop.f32.mrf.mxu0 }
 0x496   : > { %v6522_v15 = vadd.f32 %v1638_v14, %v6519_v11 }
 0x497   : > { %v4835_v16 = vpop.f32.mrf.mxu1  ;;  %v4840_v18 = vpop.f32.mrf.mxu0 }
 0x499   : > { %v1641_v20 = vpop.f32.mrf.mxu0  ;;  %v1696_v22 = vpop.f32.mrf.mxu1 }
 0x49a   : > { %v1753_v23 = vsel %vm6484_vm5, %v1696_v22, -1e+30 }
 0x49b   : > { %v4841_v24 = vpop.f32.mrf.mxu0  ;;  %v4846_v25 = vpop.f32.mrf.mxu1  ;;  %v1755_v26 = vsel %vm1417_vm3, %v1753_v23, -inf }
 0x49c   : > { %1756 = vmax.xlane.f32.xlu1 %v1755_v26 }
 0x49d   : > { %v1699_v27 = vpop.f32.mrf.mxu1  ;;  %v1747_v28 = vpop.f32.mrf.mxu0 }
 0x49e   : > { %v1754_v29 = vsel %vm6484_vm5, %v1747_v28, -1e+30 }
 0x49f   : > { %v4847_v30 = vpop.f32.mrf.mxu1  ;;  %v4852_v32 = vpop.f32.mrf.mxu0  ;;  %v1758_v33 = vsel %vm1417_vm3, %v1754_v29, -inf }
 0x4a0   : > { %1759 = vmax.xlane.f32.xlu0 %v1758_v33 }
 0x4a1   : > { %v1750_v34 = vpop.f32.mrf.mxu0 }
 0x4a3   : > { %v4853_v35 = vpop.f32.mrf.mxu0 }
 0x4ad   : > { %1833 = vrot.lane.b32.xlu1 %v6452_v17, %s5910_s5 }
 0x4b6   : > { %1785 = vrot.lane.b32.xlu0 %v6448_v13, %s5910_s5  ;;  %s5915_s5 = smov 104  }
 0x4d1   : > { %1538 = vadd.xlane.f32.xlu1 %v1537_v36 }
 0x4d5   : > { %1541 = vadd.xlane.f32.xlu0 %v1540_v37 }
 0x525   : > { %v6534_v38 = vpop.xlane.xlu1 %1756 }
 0x526   : > { %v1761_v39 = vsub.f32 %v1753_v23, %v6534_v38  ;;  %v1767_v12 = vsub.f32 -inf, %v6534_v38 }
 0x528   : > { %v1763_v40 = vmul.f32 1.442695, %v1761_v39 }
 0x529   : > { %v6537_v41 = vpop.xlane.xlu0 %1759  ;;  %v1834_v42 = vpop.permute.xlu1 %1833 }
 0x52a   : > { %5275 = vpow2.f32 %v1763_v40  ;;  %v1762_v43 = vsub.f32 %v1754_v29, %v6537_v41  ;;  %v1839_v44 = vsel %vm1552_vm4, %v1834_v42, 0  ;;  %v1768_v14 = vsub.f32 -inf, %v6537_v41 }
 0x52b   : > { %4861 = vmatpush3.bf16.msra.mxu0 %v1839_v44 }
 0x52c   : > { %v1765_v45 = vmul.f32 1.442695, %v1762_v43  ;;  %4872 = vmatprep.subr.bf16.mxu0 %v5904_v4  ;;  %v1771_v16 = vmul.f32 1.442695, %v1768_v14 }
 0x52d   : > { %v1786_v46 = vpop.permute.xlu0 %1785 }
 0x52e   : > { %5277 = vpow2.f32 %v1765_v45  ;;  %v1791_v47 = vsel %vm1552_vm4, %v1786_v46, 0 }
 0x52f   : > { %4855 = vmatpush3.bf16.msra.mxu1 %v1791_v47 }
 0x530   : > { %4866 = vmatprep.subr.bf16.mxu1 %v5904_v4 }
 0x537   : > { %v5276_v48 = vpop.eup %5275 }
 0x538   : > { %v1775_v49 = vsel %vm1417_vm3, %v5276_v48, 0.0  ;;  %v1783_v50 = vpack.c.bf16 %v5276_v48, %v5276_v48 }
 0x539   : > { %1776 = vadd.xlane.f32.xlu0 %v1775_v49 }
 0x53a   : > { %4857 = vmatmul.mubr.msk.bf16.vlgmr.msra.gmra.mxu1 %vm1417_vm3, %v1783_v50 }
 0x53b   : > { %v5278_v52 = vpop.eup %5277  ;;  %4868 = vmatprep.mubr.msk.bf16.mxu1 %vm5905_vm1, %v5904_v4  ;;  %4867 = vmatpush3.bf16.msra.mxu1 %v1892_v2 }
 0x53c   : > { %v1778_v53 = vsel %vm1417_vm3, %v5278_v52, 0.0  ;;  %v1784_v54 = vpack.c.bf16 %v5278_v52, %v5278_v52  ;;  %4878 = vmatprep.subr.bf16.mxu1 %v5904_v4 }
 0x53d   : > { %1779 = vadd.xlane.f32.xlu1 %v1778_v53 }
 0x53e   : > { %4863 = vmatmul.mubr.msk.bf16.vlgmr.msra.gmra.mxu0 %vm1417_vm3, %v1784_v54 }
 0x53f   : > { %4873 = vmatpush3.bf16.msra.mxu0 %v1939_v55  ;;  %4874 = vmatprep.mubr.msk.bf16.mxu0 %vm5905_vm1, %v5904_v4 }
 0x540   : > { %4884 = vmatprep.subr.bf16.mxu0 %v5904_v4 }
 0x54e   : > { %2034 = vrot.lane.b32.xlu1 %v6452_v17, %s5911_s22 }
 0x54f   : > { %1984 = vrot.lane.b32.xlu0 %v6448_v13, %s5911_s22 }
 0x552   : > { %1982 = vrot.lane.b32.xlu1 %v6462_v19, %s5912_s9 }
 0x553   : > { %2032 = vrot.lane.b32.xlu0 %v6466_v21, %s5912_s9 }
 0x55a   : > { %v1539_v56 = vpop.xlane.xlu1 %1538 }
 0x55b   : > { %v1543_v57 = vadd.f32 %v1539_v56, %v6514_v3 }
 0x55d   : > { %5279 = vrcp.f32 %v1543_v57 }
 0x55e   : > { %v1542_v58 = vpop.xlane.xlu0 %1541 }
 0x55f   : > { %v1544_v59 = vadd.f32 %v1542_v58, %v6519_v11 }
 0x561   : > { %5281 = vrcp.f32 %v1544_v59 }
 0x56a   : > { %v5280_v60 = vpop.eup %5279 }
 0x56b   : > { %v1648_v61 = vmul.f32 %v5280_v60, %v6517_v9 }
 0x56e   : > { %v5282_v62 = vpop.eup %5281 }
 0x56f   : > { %v1649_v63 = vmul.f32 %v5282_v62, %v6522_v15  ;;  %v1769_v15 = vmul.f32 1.442695, %v1767_v12 }
 0x571   : > { %v1650_v0 = vpack.c.bf16 %v1649_v63, %v1648_v61  ;;  %5283 = vpow2.f32 %v1769_v15 }
 0x572   : > { %5285 = vpow2.f32 %v1771_v16 }
 0x573   : > { %4875 = vmatmul.mubr.msk.bf16.vlgmr.msra.gmra.mxu0 %vm1417_vm3, %v1650_v0 }
 0x574   : > { %4886 = vmatprep.mubr.msk.bf16.mxu0 %vm5905_vm1, %v5904_v4 }
 0x57e   : > { %v5284_v18 = vpop.eup %5283 }
 0x57f   : > { %v5286_v20 = vpop.eup %5285  ;;  %v1773_v22 = vmul.f32 0.0, %v5284_v18 }
 0x580   : > { %v1774_v23 = vmul.f32 0.0, %v5286_v20 }
 0x5c2   : > { %v1777_v3 = vpop.xlane.xlu0 %1776 }
 0x5c3   : > { %v1781_v24 = vadd.f32 %v1777_v3, %v1773_v22 }
 0x5c5   : > { %5287 = vrcp.f32 %v1781_v24  ;;  %v1402_v24 = vld [vmem:[%s6388_s3 + $0x8] sm:$0xf] }
 0x5c6   : > { %v1780_v5 = vpop.xlane.xlu1 %1779  ;;  %v1985_v10 = vpop.permute.xlu0 %1984 }
 0x5c7   : > { %v1782_v25 = vadd.f32 %v1780_v5, %v1774_v23  ;;  %v1990_v42 = vsel %vm1417_vm3, %v1985_v10, 0 }
 0x5c9   : > { %5289 = vrcp.f32 %v1782_v25  ;;  %v2221_v25 = vsel %vm1552_vm4, %v1402_v24, 0 }
 0x5ca   : > { %v2035_v8 = vpop.permute.xlu1 %2034  ;;  %v2033_v11 = vpop.permute.xlu0 %2032 }
 0x5cb   : > { %v2040_v9 = vsel %vm1417_vm3, %v2035_v8, 0 }
 0x5cc   : > { %4885 = vmatpush3.bf16.xpose.msra.mxu0 %v2040_v9 }
 0x5cd   : > { %4896 = vmatprep.subr.bf16.mxu0 %v5904_v4 }
 0x5ce   : > { %v1983_v43 = vpop.permute.xlu1 %1982 }
 0x5d2   : > { %v5288_v32 = vpop.eup %5287 }
 0x5d3   : > { %4887 = vmatmul.mubr.msk.bf16.vlgmr.msra.gmra.mxu0 %vm1417_vm3, %v2033_v11 }
 0x5d4   : > { %4898 = vmatprep.mubr.msk.bf16.mxu0 %vm5905_vm1, %v5904_v4 }
 0x5d6   : > { %v5290_v34 = vpop.eup %5289 }
 0x5fa   : > { %v1827_v26 = vpop.f32.mrf.mxu1 }
 0x5fb   : > { %v1881_v28 = vadd.f32 %v1827_v26, %v1773_v22 }
 0x5fc   : > { %v4858_v27 = vpop.f32.mrf.mxu1 }
 0x5fd   : > { %v1885_v37 = vmul.f32 %v5288_v32, %v1881_v28 }
 0x5fe   : > { %v1830_v29 = vpop.f32.mrf.mxu1  ;;  %v1875_v30 = vpop.f32.mrf.mxu0 }
 0x5ff   : > { %v1882_v33 = vadd.f32 %v1875_v30, %v1774_v23 }
 0x600   : > { %v4859_v35 = vpop.f32.mrf.mxu1  ;;  %v4864_v36 = vpop.f32.mrf.mxu0 }
 0x601   : > { %v1886_v38 = vmul.f32 %v5290_v34, %v1882_v33 }
 0x602   : > { %v1878_v39 = vpop.f32.mrf.mxu0 }
 0x603   : > { %v1887_v40 = vpack.c.bf16 %v1886_v38, %v1885_v37 }
 0x604   : > { %v4865_v41 = vpop.f32.mrf.mxu0 }
 0x605   : > { %4869 = vmatmul.mubr.msk.bf16.vlgmr.msra.gmra.mxu1 %vm1417_vm3, %v1887_v40 }
 0x606   : > { %4879 = vmatpush3.bf16.xpose.msra.mxu1 %v1990_v42  ;;  %4880 = vmatprep.mubr.msk.bf16.mxu1 %vm5905_vm1, %v5904_v4 }
 0x607   : > { %4890 = vmatprep.subr.bf16.mxu1 %v5904_v4 }
 0x60d   : > { %4881 = vmatmul.mubr.msk.bf16.vlgmr.msra.gmra.mxu1 %vm1417_vm3, %v1983_v43 }
 0x60e   : > { %4892 = vmatprep.mubr.msk.bf16.mxu1 %vm5905_vm1, %v5904_v4 }
 0x633   : > { %v6588_v44 = vpop.f32.mrf.mxu0 }
 0x635   : > { %v4876_v45 = vpop.f32.mrf.mxu0 }
 0x637   : > { %v6590_v46 = vpop.f32.mrf.mxu0 }
 0x639   : > { %v4877_v47 = vpop.f32.mrf.mxu0 }
 0x693   : > { %v2076_v48 = vpop.f32.mrf.mxu0 }
 0x694   : > { %v2083_v49 = vsel %vm6484_vm5, %v2076_v48, -1e+30 }
 0x695   : > { %v4888_v50 = vpop.f32.mrf.mxu0  ;;  %v2087_v51 = vsel %vm1417_vm3, %v2083_v49, -inf }
 0x696   : > { %2088 = vmax.xlane.f32.xlu0 %v2087_v51 }
 0x697   : > { %v2079_v52 = vpop.f32.mrf.mxu0 }
 0x699   : > { %v4889_v53 = vpop.f32.mrf.mxu0 }
 0x6ac   : > { %2114 = vrot.lane.b32.xlu0 %v6448_v13, %s5913_s12 }
 0x6c5   : > { %v6596_v54 = vpop.f32.mrf.mxu1 }
 0x6c7   : > { %v4870_v55 = vpop.f32.mrf.mxu1 }
 0x6c9   : > { %v6598_v56 = vpop.f32.mrf.mxu1 }
 0x6cb   : > { %v4871_v57 = vpop.f32.mrf.mxu1 }
 0x6cd   : > { %v2026_v58 = vpop.f32.mrf.mxu1 }
 0x6ce   : > { %v2082_v59 = vsel %vm6484_vm5, %v2026_v58, -1e+30 }
 0x6cf   : > { %v4882_v60 = vpop.f32.mrf.mxu1  ;;  %v2084_v61 = vsel %vm1417_vm3, %v2082_v59, -inf }
 0x6d0   : > { %2085 = vmax.xlane.f32.xlu1 %v2084_v61 }
 0x6d1   : > { %v2029_v62 = vpop.f32.mrf.mxu1 }
 0x6d3   : > { %v4883_v63 = vpop.f32.mrf.mxu1 }
 0x6e1   : > { %2162 = vrot.lane.b32.xlu1 %v6452_v17, %s5913_s12  ;;  %s5916_s12 = smov 40  }
 0x71f   : > { %v2089_v0 = vpop.xlane.xlu0 %2088 }
 0x720   : > { %v2091_v1 = vsub.f32 %v2083_v49, %v2089_v0  ;;  %v2097_v22 = vsub.f32 -inf, %v2089_v0 }
 0x722   : > { %v2094_v2 = vmul.f32 1.442695, %v2091_v1  ;;  %v2100_v23 = vmul.f32 1.442695, %v2097_v22 }
 0x723   : > { %v2115_v3 = vpop.permute.xlu0 %2114 }
 0x724   : > { %5291 = vpow2.f32 %v2094_v2  ;;  %v2120_v5 = vsel %vm1552_vm4, %v2115_v3, 0  ;;  %v1976_v3 = vadd.f32 %v6588_v44, %v6596_v54 }
 0x725   : > { %4891 = vmatpush3.bf16.msra.mxu1 %v2120_v5 }
 0x726   : > { %4902 = vmatprep.subr.bf16.mxu1 %v5904_v4 }
 0x731   : > { %v5292_v8 = vpop.eup %5291 }
 0x732   : > { %v2107_v9 = vsel %vm1417_vm3, %v5292_v8, 0.0  ;;  %v2113_v16 = vpack.c.bf16 %v5292_v8, %v5292_v8 }
 0x733   : > { %2108 = vadd.xlane.f32.xlu0 %v2107_v9 }
 0x749   : > { %2268 = vrot.lane.b32.xlu0 %v6448_v13, %s5914_s8 }
 0x74d   : > { %2316 = vrot.lane.b32.xlu0 %v6466_v21, %s5915_s5 }
 0x759   : > { %v2086_v10 = vpop.xlane.xlu1 %2085 }
 0x75a   : > { %v2090_v11 = vsub.f32 %v2082_v59, %v2086_v10  ;;  %v2096_v35 = vsub.f32 -inf, %v2086_v10  ;;  %v1979_v10 = vadd.f32 %v6590_v46, %v6598_v56 }
 0x75c   : > { %v2092_v12 = vmul.f32 1.442695, %v2090_v11  ;;  %v2098_v36 = vmul.f32 1.442695, %v2096_v35 }
 0x75d   : > { %v2163_v14 = vpop.permute.xlu1 %2162 }
 0x75e   : > { %5293 = vpow2.f32 %v2092_v12  ;;  %v2168_v15 = vsel %vm1552_vm4, %v2163_v14, 0 }
 0x75f   : > { %4897 = vmatpush3.bf16.msra.mxu0 %v2168_v15  ;;  %5295 = vpow2.f32 %v2100_v23 }
 0x760   : > { %4908 = vmatprep.subr.bf16.mxu0 %v5904_v4  ;;  %5297 = vpow2.f32 %v2098_v36 }
 0x762   : > { %4899 = vmatmul.mubr.msk.bf16.vlgmr.msra.gmra.mxu0 %vm1417_vm3, %v2113_v16 }
 0x763   : > { %4910 = vmatprep.mubr.msk.bf16.mxu0 %vm5905_vm1, %v5904_v4 }
 0x76b   : > { %v5294_v18 = vpop.eup %5293 }
 0x76c   : > { %v2104_v21 = vsel %vm1417_vm3, %v5294_v18, 0.0  ;;  %v2112_v20 = vpack.c.bf16 %v5294_v18, %v5294_v18  ;;  %v5296_v26 = vpop.eup %5295 }
 0x76d   : > { %2105 = vadd.xlane.f32.xlu1 %v2104_v21  ;;  %v2103_v27 = vmul.f32 0.0, %v5296_v26  ;;  %v5298_v37 = vpop.eup %5297 }
 0x76e   : > { %4893 = vmatmul.mubr.msk.bf16.vlgmr.msra.gmra.mxu1 %vm1417_vm3, %v2112_v20  ;;  %v2102_v38 = vmul.f32 0.0, %v5298_v37 }
 0x76f   : > { %4904 = vmatprep.mubr.msk.bf16.mxu1 %vm5905_vm1, %v5904_v4  ;;  %4903 = vmatpush3.bf16.msra.mxu1 %v2221_v25 }
 0x770   : > { %4914 = vmatprep.subr.bf16.mxu1 %v5904_v4 }
 0x77e   : > { %2318 = vrot.lane.b32.xlu1 %v6452_v17, %s5914_s8 }
 0x782   : > { %2266 = vrot.lane.b32.xlu1 %v6462_v19, %s5915_s5 }
 0x7bc   : > { %v2109_v28 = vpop.xlane.xlu0 %2108 }
 0x7bd   : > { %v2111_v29 = vadd.f32 %v2109_v28, %v2103_v27 }
 0x7bf   : > { %5299 = vrcp.f32 %v2111_v29 }
 0x7c0   : > { %v2269_v30 = vpop.permute.xlu0 %2268 }
 0x7c1   : > { %v2274_v32 = vsel %vm1417_vm3, %v2269_v30, 0 }
 0x7c2   : > { %4909 = vmatpush3.bf16.xpose.msra.mxu0 %v2274_v32 }
 0x7c3   : > { %4920 = vmatprep.subr.bf16.mxu0 %v5904_v4 }
 0x7c4   : > { %v2317_v60 = vpop.permute.xlu0 %2316 }
 0x7cc   : > { %v5300_v42 = vpop.eup %5299 }
 0x7f6   : > { %v2106_v19 = vpop.xlane.xlu1 %2105 }
 0x7f7   : > { %v2110_v39 = vadd.f32 %v2106_v19, %v2102_v38  ;;  %v1403_v19 = vld [vmem:[%s6388_s3 + $0xc] sm:$0xf] }
 0x7f9   : > { %5301 = vrcp.f32 %v2110_v39 }
 0x7fa   : > { %v2319_v33 = vpop.permute.xlu1 %2318 }
 0x7fb   : > { %v2324_v59 = vsel %vm1417_vm3, %v2319_v33, 0  ;;  %v2505_v33 = vsel %vm1552_vm4, %v1403_v19, 0 }
 0x7fe   : > { %v2267_v34 = vpop.permute.xlu1 %2266 }
 0x7ff   : > { %4911 = vmatmul.mubr.msk.bf16.vlgmr.msra.gmra.mxu0 %vm1417_vm3, %v2267_v34 }
 0x800   : > { %4922 = vmatprep.mubr.msk.bf16.mxu0 %vm5905_vm1, %v5904_v4 }
 0x806   : > { %v5302_v51 = vpop.eup %5301 }
 0x822   : > { %v2204_v40 = vpop.f32.mrf.mxu0 }
 0x823   : > { %v2211_v41 = vadd.f32 %v2204_v40, %v2103_v27 }
 0x824   : > { %v4900_v43 = vpop.f32.mrf.mxu0 }
 0x825   : > { %v2215_v45 = vmul.f32 %v5300_v42, %v2211_v41 }
 0x826   : > { %v2207_v47 = vpop.f32.mrf.mxu0 }
 0x828   : > { %v4901_v48 = vpop.f32.mrf.mxu0 }
 0x82e   : > { %v2156_v49 = vpop.f32.mrf.mxu1 }
 0x82f   : > { %v2210_v50 = vadd.f32 %v2156_v49, %v2102_v38 }
 0x830   : > { %v4894_v52 = vpop.f32.mrf.mxu1 }
 0x831   : > { %v2214_v53 = vmul.f32 %v5302_v51, %v2210_v50 }
 0x832   : > { %v2159_v55 = vpop.f32.mrf.mxu1 }
 0x833   : > { %v2216_v57 = vpack.c.bf16 %v2215_v45, %v2214_v53 }
 0x834   : > { %v4895_v58 = vpop.f32.mrf.mxu1 }
 0x835   : > { %4905 = vmatmul.mubr.msk.bf16.vlgmr.msra.gmra.mxu1 %vm1417_vm3, %v2216_v57 }
 0x836   : > { %4915 = vmatpush3.bf16.xpose.msra.mxu1 %v2324_v59  ;;  %4916 = vmatprep.mubr.msk.bf16.mxu1 %vm5905_vm1, %v5904_v4 }
 0x837   : > { %4926 = vmatprep.subr.bf16.mxu1 %v5904_v4 }
 0x83d   : > { %4917 = vmatmul.mubr.msk.bf16.vlgmr.msra.gmra.mxu1 %vm1417_vm3, %v2317_v60 }
 0x83e   : > { %4928 = vmatprep.mubr.msk.bf16.mxu1 %vm5905_vm1, %v5904_v4 }
 0x8bf   : > { %v2310_v61 = vpop.f32.mrf.mxu0 }
 0x8c0   : > { %v2366_v62 = vsel %vm6484_vm5, %v2310_v61, -1e+30 }
 0x8c1   : > { %v4912_v63 = vpop.f32.mrf.mxu0  ;;  %v2368_v0 = vsel %vm1417_vm3, %v2366_v62, -inf }
 0x8c2   : > { %2369 = vmax.xlane.f32.xlu1 %v2368_v0 }
 0x8c3   : > { %v2313_v1 = vpop.f32.mrf.mxu0 }
 0x8c4   : > { %v4647_v1 = vld [vmem:[%s1051_s30] ss:$0 sm:$0xff]  ;;  %s7144_s30 = sld [smem:[#allocation27_spill]] }
 0x8c5   : > { %v4913_v2 = vpop.f32.mrf.mxu0 }
 0x8ca   : > { %p4694_p3 = scmp.ge.s32.totalorder %s7144_s30, 1 }
 0x8d3   : > { %2446 = vrot.lane.b32.xlu1 %v6452_v17, %s5916_s12 }
 0x8f5   : > { %v2257_v5 = vpop.f32.mrf.mxu1 }
 0x8f6   : > { %v6646_v8 = vadd.f32 %v2257_v5, %v1976_v3 }
 0x8f7   : > { %v4906_v9 = vpop.f32.mrf.mxu1 }
 0x8f9   : > { %v2260_v11 = vpop.f32.mrf.mxu1 }
 0x8fa   : > { %v6650_v12 = vadd.f32 %v2260_v11, %v1979_v10 }
 0x8fb   : > { %v4907_v14 = vpop.f32.mrf.mxu1 }
 0x8fd   : > { %v2360_v15 = vpop.f32.mrf.mxu1 }
 0x8fe   : > { %v2367_v16 = vsel %vm6484_vm5, %v2360_v15, -1e+30 }
 0x8ff   : > { %v4918_v18 = vpop.f32.mrf.mxu1  ;;  %v2371_v17 = vsel %vm1417_vm3, %v2367_v16, -inf }
 0x900   : > { %2372 = vmax.xlane.f32.xlu0 %v2371_v17 }
 0x901   : > { %v2363_v44 = vpop.f32.mrf.mxu1 }
 0x903   : > { %v4919_v54 = vpop.f32.mrf.mxu1 }
 0x916   : > { %2398 = vrot.lane.b32.xlu0 %v6448_v13, %s5916_s12 }
 0x94b   : > { %v2370_v21 = vpop.xlane.xlu1 %2369 }
 0x94c   : > { %v2374_v20 = vsub.f32 %v2366_v62, %v2370_v21  ;;  %v2380_v34 = vsub.f32 -inf, %v2370_v21 }
 0x94e   : > { %v2376_v22 = vmul.f32 1.442695, %v2374_v20  ;;  %v2382_v36 = vmul.f32 1.442695, %v2380_v34  ;;  %v4648_v34 = vld [vmem:[%s1059_s20] ss:$0 sm:$0xff] }
 0x94f   : > { %v2447_v46 = vpop.permute.xlu1 %2446 }
 0x950   : > { %5303 = vpow2.f32 %v2376_v22  ;;  %v2452_v56 = vsel %vm1552_vm4, %v2447_v46, 0 }
 0x951   : > { %4927 = vmatpush3.bf16.msra.mxu1 %v2452_v56 }
 0x952   : > { %4938 = vmatprep.subr.bf16.mxu1 %v5904_v4 }
 0x95d   : > { %v5304_v31 = vpop.eup %5303 }
 0x95e   : > { %v2388_v23 = vsel %vm1417_vm3, %v5304_v31, 0.0  ;;  %v2396_v28 = vpack.c.bf16 %v5304_v31, %v5304_v31 }
 0x95f   : > { %2389 = vadd.xlane.f32.xlu1 %v2388_v23  ;;  %v5257_v23 = vld [vmem:[%s1084_s2] sm:$0xff]  }
 0x989   : > { %v2373_v24 = vpop.xlane.xlu0 %2372 }
 0x98a   : > { %v2375_v25 = vsub.f32 %v2367_v16, %v2373_v24  ;;  %v2381_v35 = vsub.f32 -inf, %v2373_v24  ;;  %v5258_v24 = vld [vmem:[#allocation5] sm:$0xff]  }
 0x98c   : > { %v2378_v26 = vmul.f32 1.442695, %v2375_v25  ;;  %v2384_v37 = vmul.f32 1.442695, %v2381_v35  ;;  %v5259_v25 = vld [vmem:[%s6393_s21 + $0x8] sm:$0xff]  }
 0x98d   : > { %v2399_v27 = vpop.permute.xlu0 %2398 }
 0x98e   : > { %5305 = vpow2.f32 %v2378_v26  ;;  %v2404_v13 = vsel %vm1552_vm4, %v2399_v27, 0  ;;  %v5260_v26 = vld [vmem:[%s6393_s21] sm:$0xff]  }
 0x98f   : > { %4921 = vmatpush3.bf16.msra.mxu0 %v2404_v13  ;;  %5307 = vpow2.f32 %v2382_v36 }
 0x990   : > { %4932 = vmatprep.subr.bf16.mxu0 %v5904_v4  ;;  %5309 = vpow2.f32 %v2384_v37 }
 0x992   : > { %4923 = vmatmul.mubr.msk.bf16.vlgmr.msra.gmra.mxu0 %vm1417_vm3, %v2396_v28 }
 0x993   : > { %4934 = vmatprep.mubr.msk.bf16.mxu0 %vm5905_vm1, %v5904_v4  ;;  %4933 = vmatpush3.bf16.msra.mxu0 %v2505_v33 }
 0x994   : > { %4946 = vmatprep.subr.bf16.mxu0 %v5904_v4 }
 0x99b   : > { %v5306_v29 = vpop.eup %5305 }
 0x99c   : > { %v2391_v30 = vsel %vm1417_vm3, %v5306_v29, 0.0  ;;  %v2397_v32 = vpack.c.bf16 %v5306_v29, %v5306_v29  ;;  %v5308_v38 = vpop.eup %5307 }
 0x99d   : > { %2392 = vadd.xlane.f32.xlu0 %v2391_v30  ;;  %v5310_v39 = vpop.eup %5309  ;;  %v2386_v41 = vmul.f32 0.0, %v5308_v38  ;;  %v4649_v38 = vld [vmem:[%s1067_s14] ss:$0 sm:$0xff] }
 0x99e   : > { %4929 = vmatmul.mubr.msk.bf16.vlgmr.msra.gmra.mxu1 %vm1417_vm3, %v2397_v32  ;;  %v2387_v43 = vmul.f32 0.0, %v5310_v39 }
 0x99f   : > { %4942 = vmatprep.mubr.msk.bf16.mxu1 %vm5905_vm1, %v5904_v4  ;;  %4939 = vmatpush3.bf16.msra.mxu1 %v5259_v25 }
 0x9a0   : > { %4940 = vmatprep.subr.bf16.mxu1 %v5904_v4 }
 0x9a3   : > { %4941 = vmatpush3.bf16.msra.mxu1 %v5260_v26 }
 0x9a4   : > { %4954 = vmatprep.subr.bf16.mxu1 %v5904_v4 }
 0x9e8   : > { %v2390_v40 = vpop.xlane.xlu1 %2389 }
 0x9e9   : > { %v2394_v45 = vadd.f32 %v2390_v40, %v2386_v41 }
 0x9eb   : > { %5311 = vrcp.f32 %v2394_v45 }
 0x9f8   : > { %v5312_v55 = vpop.eup %5311 }
 0xa26   : > { %v2393_v42 = vpop.xlane.xlu0 %2392 }
 0xa27   : > { %v2395_v47 = vadd.f32 %v2393_v42, %v2387_v43 }
 0xa29   : > { %5313 = vrcp.f32 %v2395_v47 }
 0xa36   : > { %v5314_v58 = vpop.eup %5313 }
 0xa52   : > { %v2440_v48 = vpop.f32.mrf.mxu0 }
 0xa53   : > { %v2494_v52 = vadd.f32 %v2440_v48, %v2386_v41 }
 0xa54   : > { %v4924_v49 = vpop.f32.mrf.mxu0 }
 0xa55   : > { %v2498_v60 = vmul.f32 %v5312_v55, %v2494_v52 }
 0xa56   : > { %v2443_v50 = vpop.f32.mrf.mxu0 }
 0xa58   : > { %v4925_v51 = vpop.f32.mrf.mxu0 }
 0xa5e   : > { %v2488_v53 = vpop.f32.mrf.mxu1 }
 0xa5f   : > { %v2495_v57 = vadd.f32 %v2488_v53, %v2387_v43  ;;  %v4654_v43 = vld [vmem:[%s1092_s0] ss:$0 sm:$0xff] }
 0xa60   : > { %v4930_v59 = vpop.f32.mrf.mxu1 }
 0xa61   : > { %v2499_v61 = vmul.f32 %v5314_v58, %v2495_v57  ;;  %v4650_v58 = vld [vmem:[%s1075_s15] ss:$0 sm:$0xff] }
 0xa62   : > { %v2491_v62 = vpop.f32.mrf.mxu1 }
 0xa63   : > { %v2500_v63 = vpack.c.bf16 %v2499_v61, %v2498_v60 }
 0xa64   : > { %v4931_v0 = vpop.f32.mrf.mxu1 }
 0xa65   : > { %4935 = vmatmul.mubr.msk.bf16.vlgmr.msra.gmra.mxu0 %vm1417_vm3, %v2500_v63 }
 0xa66   : > { %4950 = vmatprep.mubr.msk.bf16.mxu0 %vm5905_vm1, %v5904_v4 }
 0xb25   : > { %v2541_v2 = vpop.f32.mrf.mxu0 }
 0xb26   : > { %v2548_v3 = vadd.f32 %v2541_v2, %v6646_v8 }
 0xb27   : > { %v4936_v5 = vpop.f32.mrf.mxu0 }
 0xb28   : > { %v2556_v9 = vadd.f32 %v4647_v1, %v2548_v3 }
 0xb29   : > { %v2544_v10 = vpop.f32.mrf.mxu0 }
 0xb2a   : > { %v2549_v11 = vadd.f32 %v2544_v10, %v6650_v12  ;;  %v2558_v14 = vadd.f32 %v2556_v9, %v6433_v6 }
 0xb2b   : > { %v4937_v15 = vpop.f32.mrf.mxu0 }
 0xb2c   : > { %v2557_v16 = vadd.f32 %v4647_v1, %v2549_v11  ;;  %v2562_v18 = vsel %vm1353_vm2, %v2558_v14, 0.0 }
 0xb2d   : > { %2563 = vadd.xlane.f32.xlu0 %v2562_v18 }
 0xb2e   : > { %v2559_v17 = vadd.f32 %v2557_v16, %v6435_v7  ;;  %v5256_v7 = vld [vmem:[%s1084_s2 + $0x8] sm:$0xff]  }
 0xb2f   : > { %4947 = vmatpush3.bf16.msra.mxu0 %v5256_v7 }
 0xb30   : > { %v2565_v44 = vsel %vm1353_vm2, %v2559_v17, 0.0  ;;  %4948 = vmatprep.subr.bf16.mxu0 %v5904_v4 }
 0xb31   : > { %2566 = vadd.xlane.f32.xlu1 %v2565_v44 }
 0xb33   : > { %4949 = vmatpush3.bf16.msra.mxu0 %v5257_v23 }
 0xb34   : > { %4960 = vmatprep.subr.bf16.mxu0 %v5904_v4 }
 0xb36   : > { %4951 = vmatmul.mubr.msk.bf16.vlgmr.msra.gmra.mxu0 %vm1353_vm2, %v5258_v24 }
 0xb37   : > { %4962 = vmatprep.mubr.msk.bf16.mxu0 %vm5905_vm1, %v5904_v4 }
 0xbb6   : > { %v2564_v8 = vpop.xlane.xlu0 %2563 }
 0xbb7   : > { %v2569_v54 = vmul.f32 0.03125, %v2564_v8 }
 0xbb9   : > { %v2571_v21 = vsub.f32 %v2558_v14, %v2569_v54 }
 0xbba   : > { %v2567_v20 = vpop.xlane.xlu1 %2566 }
 0xbbb   : > { %v2570_v22 = vmul.f32 0.03125, %v2567_v20  ;;  %v2573_v12 = vmul.f32 %v2571_v21, %v2571_v21 }
 0xbbd   : > { %v2572_v6 = vsub.f32 %v2559_v17, %v2570_v22  ;;  %v2575_v46 = vsel %vm1353_vm2, %v2573_v12, 0.0 }
 0xbbe   : > { %2576 = vadd.xlane.f32.xlu0 %v2575_v46 }
 0xbbf   : > { %v2574_v56 = vmul.f32 %v2572_v6, %v2572_v6 }
 0xbc1   : > { %v2578_v31 = vsel %vm1353_vm2, %v2574_v56, 0.0 }
 0xbc2   : > { %2579 = vadd.xlane.f32.xlu1 %v2578_v31 }
 0xbf6   : > { %v2740_v45 = vpop.f32.mrf.mxu0 }
 0xbf7   : > { %v2741_v48 = vadd.f32 %v4654_v43, %v2740_v45 }
 0xbf8   : > { %v4952_v47 = vpop.f32.mrf.mxu0 }
 0xbf9   : > { %v6712_v52 = vpack.c.bf16 %v2741_v48, %v2741_v48 }
 0xbfa   : > { %v2743_v49 = vpop.f32.mrf.mxu0 }
 0xbfb   : > { %v2744_v50 = vadd.f32 %v4654_v43, %v2743_v49  ;;  %v2760_v55 = vsel %vm1417_vm3, %v6712_v52, 0 }
 0xbfc   : > { %v4953_v51 = vpop.f32.mrf.mxu0 }
 0xbfd   : > { %v6714_v53 = vpack.c.bf16 %v2744_v50, %v2744_v50 }
 0xbff   : > { %2928 = vrot.lane.b32.xlu1 %v6714_v53, %s5906_s13  ;;  %v2806_v57 = vsel %vm1417_vm3, %v6714_v53, 0 }
 0xc00   : > { %4961 = vmatpush3.bf16.xpose.msra.mxu0 %v2806_v57 }
 0xc01   : > { %4972 = vmatprep.subr.bf16.mxu0 %v5904_v4 }
 0xc47   : > { %v2577_v27 = vpop.xlane.xlu0 %2576 }
 0xc48   : > { %v2581_v13 = vmul.f32 0.03125, %v2577_v27 }
 0xc4a   : > { %v2583_v28 = vadd.f32 1e-05, %v2581_v13 }
 0xc4b   : > { %v2580_v29 = vpop.xlane.xlu1 %2579 }
 0xc4c   : > { %5315 = vrsqrt.f32 %v2583_v28  ;;  %v2582_v30 = vmul.f32 0.03125, %v2580_v29 }
 0xc4e   : > { %v2584_v32 = vadd.f32 1e-05, %v2582_v30 }
 0xc50   : > { %5317 = vrsqrt.f32 %v2584_v32 }
 0xc59   : > { %v5316_v19 = vpop.eup %5315 }
 0xc5a   : > { %v2587_v33 = vmul.f32 %v5316_v19, %v2571_v21 }
 0xc5c   : > { %v2595_v37 = vmul.f32 %v4648_v34, %v2587_v33 }
 0xc5d   : > { %v5318_v35 = vpop.eup %5317 }
 0xc5e   : > { %v2588_v36 = vmul.f32 %v5318_v35, %v2572_v6  ;;  %v6701_v40 = vadd.f32 %v4649_v38, %v2595_v37 }
 0xc60   : > { %v2596_v39 = vmul.f32 %v4648_v34, %v2588_v36 }
 0xc62   : > { %v6703_v41 = vadd.f32 %v4649_v38, %v2596_v39 }
 0xc64   : > { %v2610_v42 = vpack.c.bf16 %v6703_v41, %v6701_v40 }
 0xc66   : > { %4943 = vmatmul.mubr.msk.bf16.vlgmr.msra.gmra.mxu1 %vm1353_vm2, %v2610_v42 }
 0xc67   : > { %4956 = vmatprep.mubr.msk.bf16.mxu1 %vm5905_vm1, %v5904_v4  ;;  %4955 = vmatpush3.bf16.xpose.msra.mxu1 %v2760_v55 }
 0xc68   : > { %4966 = vmatprep.subr.bf16.mxu1 %v5904_v4 }
 0xc71   : > { %v2929_v3 = vpop.permute.xlu1 %2928 }
 0xc72   : > { %v2934_v10 = vsel %vm1552_vm4, %v2929_v3, 0 }
 0xd26   : > { %v2666_v59 = vpop.f32.mrf.mxu1 }
 0xd27   : > { %v2667_v60 = vadd.f32 %v4650_v58, %v2666_v59 }
 0xd28   : > { %v4944_v61 = vpop.f32.mrf.mxu1 }
 0xd29   : > { %v2673_v62 = vmul.f32 0.35355338, %v2667_v60 }
 0xd2a   : > { %v2669_v63 = vpop.f32.mrf.mxu1 }
 0xd2b   : > { %v6726_v0 = vpack.c.bf16 %v2673_v62, %v2673_v62  ;;  %v2670_v1 = vadd.f32 %v4650_v58, %v2669_v63 }
 0xd2c   : > { %v4945_v2 = vpop.f32.mrf.mxu1 }
 0xd2d   : > { %v2674_v5 = vmul.f32 0.35355338, %v2670_v1  ;;  %4957 = vmatmul.mubr.msk.bf16.vlgmr.msra.gmra.mxu1 %vm1417_vm3, %v6726_v0 }
 0xd2e   : > { %4968 = vmatprep.mubr.msk.bf16.mxu1 %vm5905_vm1, %v5904_v4 }
 0xd2f   : > { %v6732_v9 = vpack.c.bf16 %v2674_v5, %v2674_v5 }
 0xd31   : > { %4963 = vmatmul.mubr.msk.bf16.vlgmr.msra.gmra.mxu0 %vm1417_vm3, %v6732_v9 }
 0xd32   : > { %4973 = vmatpush3.bf16.msra.mxu0 %v2934_v10  ;;  %4974 = vmatprep.mubr.msk.bf16.mxu0 %vm5905_vm1, %v5904_v4 }
 0xd33   : > { %4984 = vmatprep.subr.bf16.mxu0 %v5904_v4 }
 0xded   : > { %v2796_v11 = vpop.f32.mrf.mxu1 }
 0xdee   : > { %v2848_v14 = vsel %vm1417_vm3, %v2796_v11, -inf }
 0xdef   : > { %2849 = vmax.xlane.f32.xlu0 %v2848_v14  ;;  %v4958_v15 = vpop.f32.mrf.mxu1 }
 0xdf1   : > { %v2799_v16 = vpop.f32.mrf.mxu1  ;;  %v2842_v18 = vpop.f32.mrf.mxu0 }
 0xdf2   : > { %v2851_v17 = vsel %vm1417_vm3, %v2842_v18, -inf }
 0xdf3   : > { %2852 = vmax.xlane.f32.xlu1 %v2851_v17  ;;  %v4959_v44 = vpop.f32.mrf.mxu1  ;;  %v4964_v8 = vpop.f32.mrf.mxu0 }
 0xdf5   : > { %v2845_v54 = vpop.f32.mrf.mxu0 }
 0xdf7   : > { %v4965_v21 = vpop.f32.mrf.mxu0 }
 0xe04   : > { %2986 = vrot.lane.b32.xlu1 %v6712_v52, %s5909_s25 }
 0xe05   : > { %2879 = vrot.lane.b32.xlu0 %v6712_v52, %s5906_s13 }
 0xe08   : > { %2984 = vrot.lane.b32.xlu1 %v6726_v0, %s5909_s25 }
 0xe09   : > { %3037 = vrot.lane.b32.xlu0 %v6714_v53, %s5909_s25 }
 0xe0d   : > { %3035 = vrot.lane.b32.xlu0 %v6732_v9, %s5909_s25 }
 0xe78   : > { %v2850_v20 = vpop.xlane.xlu0 %2849 }
 0xe79   : > { %v2854_v22 = vsub.f32 %v2796_v11, %v2850_v20  ;;  %v2860_v19 = vsub.f32 -inf, %v2850_v20 }
 0xe7b   : > { %v2856_v12 = vmul.f32 1.442695, %v2854_v22  ;;  %v2862_v33 = vmul.f32 1.442695, %v2860_v19  ;;  %v2748_v19 = vld [vmem:[%s6419_s7 + $0x4] sm:$0xf] }
 0xe7c   : > { %v2853_v6 = vpop.xlane.xlu1 %2852  ;;  %v2880_v46 = vpop.permute.xlu0 %2879 }
 0xe7d   : > { %5319 = vpow2.f32 %v2856_v12  ;;  %v2855_v56 = vsub.f32 %v2842_v18, %v2853_v6  ;;  %v2885_v31 = vsel %vm1552_vm4, %v2880_v46, 0  ;;  %v2861_v34 = vsub.f32 -inf, %v2853_v6  ;;  %v2747_v46 = vld [vmem:[%s6419_s7] sm:$0xf] }
 0xe7e   : > { %4967 = vmatpush3.bf16.msra.mxu1 %v2885_v31 }
 0xe7f   : > { %v2858_v7 = vmul.f32 1.442695, %v2855_v56  ;;  %4978 = vmatprep.subr.bf16.mxu1 %v5904_v4  ;;  %v2864_v35 = vmul.f32 1.442695, %v2861_v34 }
 0xe80   : > { %v2987_v24 = vpop.permute.xlu1 %2986  ;;  %v3038_v13 = vpop.permute.xlu0 %3037 }
 0xe81   : > { %5321 = vpow2.f32 %v2858_v7  ;;  %v2992_v26 = vsel %vm1417_vm3, %v2987_v24, 0  ;;  %v3043_v29 = vsel %vm1417_vm3, %v3038_v13, 0 }
 0xe82   : > { %5323 = vpow2.f32 %v2862_v33  ;;  %v3222_v33 = vsel %vm1552_vm4, %v2748_v19, 0 }
 0xe83   : > { %5325 = vpow2.f32 %v2864_v35 }
 0xe84   : > { %v2985_v30 = vpop.permute.xlu1 %2984  ;;  %v3036_v32 = vpop.permute.xlu0 %3035 }
 0xe8a   : > { %v5320_v23 = vpop.eup %5319 }
 0xe8b   : > { %v2876_v25 = vpack.c.bf16 %v5320_v23, %v5320_v23  ;;  %v2868_v10 = vsel %vm1417_vm3, %v5320_v23, 0.0  ;;  %v3269_v23 = vsel %vm1552_vm4, %v2747_v46, 0 }
 0xe8d   : > { %4969 = vmatmul.mubr.msk.bf16.vlgmr.msra.gmra.mxu1 %vm1417_vm3, %v2876_v25 }
 0xe8e   : > { %v5322_v27 = vpop.eup %5321  ;;  %4979 = vmatpush3.bf16.xpose.msra.mxu1 %v2992_v26  ;;  %4980 = vmatprep.mubr.msk.bf16.mxu1 %vm5905_vm1, %v5904_v4 }
 0xe8f   : > { %v2877_v28 = vpack.c.bf16 %v5322_v27, %v5322_v27  ;;  %4990 = vmatprep.subr.bf16.mxu1 %v5904_v4  ;;  %v5324_v36 = vpop.eup %5323  ;;  %v2871_v11 = vsel %vm1417_vm3, %v5322_v27, 0.0 }
 0xe90   : > { %v6770_v37 = vmul.f32 0.0, %v5324_v36  ;;  %v5326_v38 = vpop.eup %5325 }
 0xe91   : > { %4975 = vmatmul.mubr.msk.bf16.vlgmr.msra.gmra.mxu0 %vm1417_vm3, %v2877_v28  ;;  %v6775_v45 = vmul.f32 0.0, %v5326_v38 }
 0xe92   : > { %4985 = vmatpush3.bf16.xpose.msra.mxu0 %v3043_v29  ;;  %4986 = vmatprep.mubr.msk.bf16.mxu0 %vm5905_vm1, %v5904_v4 }
 0xe93   : > { %4996 = vmatprep.subr.bf16.mxu0 %v5904_v4 }
 0xe95   : > { %4981 = vmatmul.mubr.msk.bf16.vlgmr.msra.gmra.mxu1 %vm1417_vm3, %v2985_v30 }
 0xe96   : > { %4992 = vmatprep.mubr.msk.bf16.mxu1 %vm5905_vm1, %v5904_v4 }
 0xe99   : > { %4987 = vmatmul.mubr.msk.bf16.vlgmr.msra.gmra.mxu0 %vm1417_vm3, %v3036_v32 }
 0xe9a   : > { %4998 = vmatprep.mubr.msk.bf16.mxu0 %vm5905_vm1, %v5904_v4 }
 0xf4d   : > { %v2921_v39 = vpop.f32.mrf.mxu1 }
 0xf4e   : > { %v6773_v42 = vadd.f32 %v2921_v39, %v6770_v37 }
 0xf4f   : > { %v4970_v43 = vpop.f32.mrf.mxu1 }
 0xf51   : > { %v2924_v47 = vpop.f32.mrf.mxu1  ;;  %v2970_v48 = vpop.f32.mrf.mxu0 }
 0xf52   : > { %v6778_v49 = vadd.f32 %v2970_v48, %v6775_v45 }
 0xf53   : > { %v4971_v50 = vpop.f32.mrf.mxu1  ;;  %v4976_v51 = vpop.f32.mrf.mxu0 }
 0xf55   : > { %v2973_v55 = vpop.f32.mrf.mxu0  ;;  %v3028_v57 = vpop.f32.mrf.mxu1 }
 0xf56   : > { %v3085_v58 = vsel %vm1417_vm3, %v3028_v57, -inf }
 0xf57   : > { %v4977_v59 = vpop.f32.mrf.mxu0  ;;  %3086 = vmax.xlane.f32.xlu1 %v3085_v58  ;;  %v4982_v60 = vpop.f32.mrf.mxu1 }
 0xf59   : > { %v3031_v61 = vpop.f32.mrf.mxu1  ;;  %v3079_v62 = vpop.f32.mrf.mxu0 }
 0xf5a   : > { %v3088_v63 = vsel %vm1417_vm3, %v3079_v62, -inf }
 0xf5b   : > { %3089 = vmax.xlane.f32.xlu0 %v3088_v63  ;;  %v4983_v1 = vpop.f32.mrf.mxu1  ;;  %v4988_v2 = vpop.f32.mrf.mxu0 }
 0xf5d   : > { %v3082_v3 = vpop.f32.mrf.mxu0 }
 0xf5f   : > { %v4989_v5 = vpop.f32.mrf.mxu0 }
 0xf68   : > { %3163 = vrot.lane.b32.xlu1 %v6714_v53, %s5908_s24 }
 0xf71   : > { %3115 = vrot.lane.b32.xlu0 %v6712_v52, %s5908_s24 }
 0xf8c   : > { %2869 = vadd.xlane.f32.xlu1 %v2868_v10 }
 0xf90   : > { %2872 = vadd.xlane.f32.xlu0 %v2871_v11 }
 0xfe0   : > { %v6788_v14 = vpop.xlane.xlu1 %3086 }
 0xfe1   : > { %v3091_v15 = vsub.f32 %v3028_v57, %v6788_v14 }
 0xfe3   : > { %v3093_v16 = vmul.f32 1.442695, %v3091_v15 }
 0xfe4   : > { %v6791_v18 = vpop.xlane.xlu0 %3089  ;;  %v3164_v17 = vpop.permute.xlu1 %3163 }
 0xfe5   : > { %5327 = vpow2.f32 %v3093_v16  ;;  %v3092_v44 = vsub.f32 %v3079_v62, %v6791_v18  ;;  %v3169_v8 = vsel %vm1552_vm4, %v3164_v17, 0  ;;  %v3098_v43 = vsub.f32 -inf, %v6791_v18 }
 0xfe6   : > { %4997 = vmatpush3.bf16.msra.mxu0 %v3169_v8 }
 0xfe7   : > { %v3095_v54 = vmul.f32 1.442695, %v3092_v44  ;;  %5008 = vmatprep.subr.bf16.mxu0 %v5904_v4  ;;  %v3101_v47 = vmul.f32 1.442695, %v3098_v43 }
 0xfe8   : > { %v3116_v21 = vpop.permute.xlu0 %3115 }
 0xfe9   : > { %5329 = vpow2.f32 %v3095_v54  ;;  %v3121_v20 = vsel %vm1552_vm4, %v3116_v21, 0 }
 0xfea   : > { %4991 = vmatpush3.bf16.msra.mxu1 %v3121_v20 }
 0xfeb   : > { %5002 = vmatprep.subr.bf16.mxu1 %v5904_v4 }
 0xff2   : > { %v5328_v22 = vpop.eup %5327 }
 0xff3   : > { %v3105_v12 = vsel %vm1417_vm3, %v5328_v22, 0.0  ;;  %v3113_v6 = vpack.c.bf16 %v5328_v22, %v5328_v22 }
 0xff4   : > { %3106 = vadd.xlane.f32.xlu0 %v3105_v12 }
 0xff5   : > { %4993 = vmatmul.mubr.msk.bf16.vlgmr.msra.gmra.mxu1 %vm1417_vm3, %v3113_v6 }
 0xff6   : > { %v5330_v56 = vpop.eup %5329  ;;  %5004 = vmatprep.mubr.msk.bf16.mxu1 %vm5905_vm1, %v5904_v4  ;;  %5003 = vmatpush3.bf16.msra.mxu1 %v3222_v33 }
 0xff7   : > { %v3108_v31 = vsel %vm1417_vm3, %v5330_v56, 0.0  ;;  %v3114_v7 = vpack.c.bf16 %v5330_v56, %v5330_v56  ;;  %5014 = vmatprep.subr.bf16.mxu1 %v5904_v4 }
 0xff8   : > { %3109 = vadd.xlane.f32.xlu1 %v3108_v31 }
 0xff9   : > { %4999 = vmatmul.mubr.msk.bf16.vlgmr.msra.gmra.mxu0 %vm1417_vm3, %v3114_v7 }
 0xffa   : > { %5009 = vmatpush3.bf16.msra.mxu0 %v3269_v23  ;;  %5010 = vmatprep.mubr.msk.bf16.mxu0 %vm5905_vm1, %v5904_v4 }
 0xffb   : > { %5020 = vmatprep.subr.bf16.mxu0 %v5904_v4 }
0x1009   : > { %3364 = vrot.lane.b32.xlu1 %v6714_v53, %s5912_s9 }
0x100a   : > { %3314 = vrot.lane.b32.xlu0 %v6712_v52, %s5912_s9 }
0x100d   : > { %3312 = vrot.lane.b32.xlu1 %v6726_v0, %s5912_s9 }
0x100e   : > { %3362 = vrot.lane.b32.xlu0 %v6732_v9, %s5912_s9 }
0x1015   : > { %v2870_v24 = vpop.xlane.xlu1 %2869 }
0x1016   : > { %v2874_v25 = vadd.f32 %v2870_v24, %v6770_v37 }
0x1018   : > { %5331 = vrcp.f32 %v2874_v25 }
0x1019   : > { %v2873_v26 = vpop.xlane.xlu0 %2872 }
0x101a   : > { %v2875_v27 = vadd.f32 %v2873_v26, %v6775_v45 }
0x101c   : > { %5333 = vrcp.f32 %v2875_v27 }
0x1025   : > { %v5332_v13 = vpop.eup %5331 }
0x1026   : > { %v2980_v28 = vmul.f32 %v5332_v13, %v6773_v42  ;;  %v3097_v42 = vsub.f32 -inf, %v6788_v14 }
0x1028   : > { %v3099_v45 = vmul.f32 1.442695, %v3097_v42 }
0x1029   : > { %v5334_v29 = vpop.eup %5333 }
0x102a   : > { %v2981_v30 = vmul.f32 %v5334_v29, %v6778_v49  ;;  %5335 = vpow2.f32 %v3099_v45 }
0x102b   : > { %5337 = vpow2.f32 %v3101_v47 }
0x102c   : > { %v2982_v32 = vpack.c.bf16 %v2981_v30, %v2980_v28 }
0x102e   : > { %5011 = vmatmul.mubr.msk.bf16.vlgmr.msra.gmra.mxu0 %vm1417_vm3, %v2982_v32 }
0x102f   : > { %5022 = vmatprep.mubr.msk.bf16.mxu0 %vm5905_vm1, %v5904_v4 }
0x1037   : > { %v5336_v48 = vpop.eup %5335 }
0x1038   : > { %v5338_v49 = vpop.eup %5337  ;;  %v3103_v50 = vmul.f32 0.0, %v5336_v48 }
0x1039   : > { %v3104_v51 = vmul.f32 0.0, %v5338_v49  ;;  %v2749_v49 = vld [vmem:[%s6419_s7 + $0x8] sm:$0xf] }
0x107d   : > { %v3107_v34 = vpop.xlane.xlu0 %3106 }
0x107e   : > { %v3111_v55 = vadd.f32 %v3107_v34, %v3103_v50 }
0x1080   : > { %5339 = vrcp.f32 %v3111_v55 }
0x1081   : > { %v3110_v35 = vpop.xlane.xlu1 %3109  ;;  %v3315_v38 = vpop.permute.xlu0 %3314 }
0x1082   : > { %v3112_v57 = vadd.f32 %v3110_v35, %v3104_v51  ;;  %v3320_v18 = vsel %vm1417_vm3, %v3315_v38, 0 }
0x1084   : > { %5341 = vrcp.f32 %v3112_v57 }
0x1085   : > { %v3365_v36 = vpop.permute.xlu1 %3364  ;;  %v3363_v39 = vpop.permute.xlu0 %3362 }
0x1086   : > { %v3370_v37 = vsel %vm1417_vm3, %v3365_v36, 0 }
0x1087   : > { %5021 = vmatpush3.bf16.xpose.msra.mxu0 %v3370_v37 }
0x1088   : > { %5032 = vmatprep.subr.bf16.mxu0 %v5904_v4 }
0x1089   : > { %v3313_v17 = vpop.permute.xlu1 %3312 }
0x108d   : > { %v5340_v63 = vpop.eup %5339 }
0x108e   : > { %5023 = vmatmul.mubr.msk.bf16.vlgmr.msra.gmra.mxu0 %vm1417_vm3, %v3363_v39 }
0x108f   : > { %5034 = vmatprep.mubr.msk.bf16.mxu0 %vm5905_vm1, %v5904_v4 }
0x1091   : > { %v5342_v2 = vpop.eup %5341 }
0x10b5   : > { %v3157_v58 = vpop.f32.mrf.mxu1 }
0x10b6   : > { %v3211_v60 = vadd.f32 %v3157_v58, %v3103_v50  ;;  %v3549_v50 = vsel %vm1552_vm4, %v2749_v49, 0 }
0x10b7   : > { %v4994_v59 = vpop.f32.mrf.mxu1 }
0x10b8   : > { %v3215_v10 = vmul.f32 %v5340_v63, %v3211_v60 }
0x10b9   : > { %v3160_v61 = vpop.f32.mrf.mxu1  ;;  %v3205_v62 = vpop.f32.mrf.mxu0 }
0x10ba   : > { %v3212_v1 = vadd.f32 %v3205_v62, %v3104_v51 }
0x10bb   : > { %v4995_v3 = vpop.f32.mrf.mxu1  ;;  %v5000_v5 = vpop.f32.mrf.mxu0 }
0x10bc   : > { %v3216_v11 = vmul.f32 %v5342_v2, %v3212_v1 }
0x10bd   : > { %v3208_v14 = vpop.f32.mrf.mxu0 }
0x10be   : > { %v3217_v15 = vpack.c.bf16 %v3216_v11, %v3215_v10 }
0x10bf   : > { %v5001_v16 = vpop.f32.mrf.mxu0 }
0x10c0   : > { %5005 = vmatmul.mubr.msk.bf16.vlgmr.msra.gmra.mxu1 %vm1417_vm3, %v3217_v15 }
0x10c1   : > { %5015 = vmatpush3.bf16.xpose.msra.mxu1 %v3320_v18  ;;  %5016 = vmatprep.mubr.msk.bf16.mxu1 %vm5905_vm1, %v5904_v4 }
0x10c2   : > { %5026 = vmatprep.subr.bf16.mxu1 %v5904_v4 }
0x10c8   : > { %5017 = vmatmul.mubr.msk.bf16.vlgmr.msra.gmra.mxu1 %vm1417_vm3, %v3313_v17 }
0x10c9   : > { %5028 = vmatprep.mubr.msk.bf16.mxu1 %vm5905_vm1, %v5904_v4 }
0x10ee   : > { %v6842_v44 = vpop.f32.mrf.mxu0 }
0x10f0   : > { %v5012_v8 = vpop.f32.mrf.mxu0 }
0x10f2   : > { %v6844_v54 = vpop.f32.mrf.mxu0 }
0x10f4   : > { %v5013_v21 = vpop.f32.mrf.mxu0 }
0x114e   : > { %v3406_v20 = vpop.f32.mrf.mxu0 }
0x114f   : > { %v3415_v22 = vsel %vm1417_vm3, %v3406_v20, -inf }
0x1150   : > { %3416 = vmax.xlane.f32.xlu0 %v3415_v22  ;;  %v5024_v12 = vpop.f32.mrf.mxu0 }
0x1152   : > { %v3409_v6 = vpop.f32.mrf.mxu0 }
0x1154   : > { %v5025_v46 = vpop.f32.mrf.mxu0 }
0x1166   : > { %3442 = vrot.lane.b32.xlu0 %v6712_v52, %s5911_s22 }
0x1180   : > { %v6849_v56 = vpop.f32.mrf.mxu1 }
0x1182   : > { %v5006_v31 = vpop.f32.mrf.mxu1 }
0x1184   : > { %v6851_v7 = vpop.f32.mrf.mxu1 }
0x1186   : > { %v5007_v23 = vpop.f32.mrf.mxu1 }
0x1188   : > { %v3356_v24 = vpop.f32.mrf.mxu1 }
0x1189   : > { %v3412_v25 = vsel %vm1417_vm3, %v3356_v24, -inf }
0x118a   : > { %3413 = vmax.xlane.f32.xlu1 %v3412_v25  ;;  %v5018_v26 = vpop.f32.mrf.mxu1 }
0x118c   : > { %v3359_v27 = vpop.f32.mrf.mxu1 }
0x118e   : > { %v5019_v13 = vpop.f32.mrf.mxu1 }
0x119b   : > { %3490 = vrot.lane.b32.xlu1 %v6714_v53, %s5911_s22 }
0x11d9   : > { %v3417_v28 = vpop.xlane.xlu0 %3416 }
0x11da   : > { %v3419_v29 = vsub.f32 %v3406_v20, %v3417_v28  ;;  %v3425_v47 = vsub.f32 -inf, %v3417_v28 }
0x11dc   : > { %v3422_v30 = vmul.f32 1.442695, %v3419_v29  ;;  %v3428_v48 = vmul.f32 1.442695, %v3425_v47  ;;  %v3306_v29 = vadd.f32 %v6842_v44, %v6849_v56 }
0x11dd   : > { %v3443_v32 = vpop.permute.xlu0 %3442 }
0x11de   : > { %5343 = vpow2.f32 %v3422_v30  ;;  %v3448_v19 = vsel %vm1552_vm4, %v3443_v32, 0 }
0x11df   : > { %5027 = vmatpush3.bf16.msra.mxu1 %v3448_v19 }
0x11e0   : > { %5038 = vmatprep.subr.bf16.mxu1 %v5904_v4 }
0x11eb   : > { %v5344_v33 = vpop.eup %5343 }
0x11ec   : > { %v3435_v34 = vsel %vm1417_vm3, %v5344_v33, 0.0  ;;  %v3441_v42 = vpack.c.bf16 %v5344_v33, %v5344_v33  ;;  %v3309_v33 = vadd.f32 %v6844_v54, %v6851_v7 }
0x11ed   : > { %3436 = vadd.xlane.f32.xlu0 %v3435_v34 }
0x1203   : > { %3596 = vrot.lane.b32.xlu0 %v6712_v52, %s5915_s5 }
0x1207   : > { %3644 = vrot.lane.b32.xlu0 %v6732_v9, %s5915_s5 }
0x1213   : > { %v3414_v35 = vpop.xlane.xlu1 %3413 }
0x1214   : > { %v3418_v36 = vsub.f32 %v3356_v24, %v3414_v35  ;;  %v3424_v63 = vsub.f32 -inf, %v3414_v35 }
0x1216   : > { %v3420_v37 = vmul.f32 1.442695, %v3418_v36  ;;  %v3426_v1 = vmul.f32 1.442695, %v3424_v63 }
0x1217   : > { %v3491_v38 = vpop.permute.xlu1 %3490 }
0x1218   : > { %5345 = vpow2.f32 %v3420_v37  ;;  %v3496_v39 = vsel %vm1552_vm4, %v3491_v38, 0 }
0x1219   : > { %5033 = vmatpush3.bf16.msra.mxu0 %v3496_v39  ;;  %5347 = vpow2.f32 %v3428_v48 }
0x121a   : > { %5044 = vmatprep.subr.bf16.mxu0 %v5904_v4  ;;  %5349 = vpow2.f32 %v3426_v1 }
0x121c   : > { %5035 = vmatmul.mubr.msk.bf16.vlgmr.msra.gmra.mxu0 %vm1417_vm3, %v3441_v42 }
0x121d   : > { %5046 = vmatprep.mubr.msk.bf16.mxu0 %vm5905_vm1, %v5904_v4 }
0x1225   : > { %v5346_v43 = vpop.eup %5345 }
0x1226   : > { %v3432_v9 = vsel %vm1417_vm3, %v5346_v43, 0.0  ;;  %v3440_v45 = vpack.c.bf16 %v5346_v43, %v5346_v43  ;;  %v5348_v51 = vpop.eup %5347 }
0x1227   : > { %3433 = vadd.xlane.f32.xlu1 %v3432_v9  ;;  %v3431_v55 = vmul.f32 0.0, %v5348_v51  ;;  %v5350_v2 = vpop.eup %5349 }
0x1228   : > { %5029 = vmatmul.mubr.msk.bf16.vlgmr.msra.gmra.mxu1 %vm1417_vm3, %v3440_v45  ;;  %v3430_v3 = vmul.f32 0.0, %v5350_v2 }
0x1229   : > { %5040 = vmatprep.mubr.msk.bf16.mxu1 %vm5905_vm1, %v5904_v4  ;;  %5039 = vmatpush3.bf16.msra.mxu1 %v3549_v50 }
0x122a   : > { %5050 = vmatprep.subr.bf16.mxu1 %v5904_v4 }
0x1238   : > { %3646 = vrot.lane.b32.xlu1 %v6714_v53, %s5915_s5 }
0x123c   : > { %3594 = vrot.lane.b32.xlu1 %v6726_v0, %s5915_s5 }
0x1276   : > { %v3437_v57 = vpop.xlane.xlu0 %3436 }
0x1277   : > { %v3439_v58 = vadd.f32 %v3437_v57, %v3431_v55 }
0x1279   : > { %5351 = vrcp.f32 %v3439_v58 }
0x127a   : > { %v3597_v59 = vpop.permute.xlu0 %3596 }
0x127b   : > { %v3602_v60 = vsel %vm1417_vm3, %v3597_v59, 0  ;;  %v2750_v59 = vld [vmem:[%s6419_s7 + $0xc] sm:$0xf] }
0x127c   : > { %5045 = vmatpush3.bf16.xpose.msra.mxu0 %v3602_v60  ;;  %v3831_v60 = vsel %vm1552_vm4, %v2750_v59, 0 }
0x127d   : > { %5056 = vmatprep.subr.bf16.mxu0 %v5904_v4 }
0x127e   : > { %v3645_v24 = vpop.permute.xlu0 %3644 }
0x1286   : > { %v5352_v14 = vpop.eup %5351 }
0x12b0   : > { %v3434_v0 = vpop.xlane.xlu1 %3433 }
0x12b1   : > { %v3438_v5 = vadd.f32 %v3434_v0, %v3430_v3 }
0x12b3   : > { %5353 = vrcp.f32 %v3438_v5 }
0x12b4   : > { %v3647_v61 = vpop.permute.xlu1 %3646 }
0x12b5   : > { %v3652_v23 = vsel %vm1417_vm3, %v3647_v61, 0 }
0x12b8   : > { %v3595_v62 = vpop.permute.xlu1 %3594 }
0x12b9   : > { %5047 = vmatmul.mubr.msk.bf16.vlgmr.msra.gmra.mxu0 %vm1417_vm3, %v3595_v62 }
0x12ba   : > { %5058 = vmatprep.mubr.msk.bf16.mxu0 %vm5905_vm1, %v5904_v4 }
0x12c0   : > { %v5354_v20 = vpop.eup %5353 }
0x12dc   : > { %v3532_v10 = vpop.f32.mrf.mxu0 }
0x12dd   : > { %v3539_v11 = vadd.f32 %v3532_v10, %v3431_v55 }
0x12de   : > { %v5036_v15 = vpop.f32.mrf.mxu0 }
0x12df   : > { %v3543_v16 = vmul.f32 %v5352_v14, %v3539_v11 }
0x12e0   : > { %v3535_v18 = vpop.f32.mrf.mxu0 }
0x12e2   : > { %v5037_v17 = vpop.f32.mrf.mxu0 }
0x12e8   : > { %v3484_v8 = vpop.f32.mrf.mxu1 }
0x12e9   : > { %v3538_v21 = vadd.f32 %v3484_v8, %v3430_v3 }
0x12ea   : > { %v5030_v22 = vpop.f32.mrf.mxu1 }
0x12eb   : > { %v3542_v12 = vmul.f32 %v5354_v20, %v3538_v21 }
0x12ec   : > { %v3487_v6 = vpop.f32.mrf.mxu1 }
0x12ed   : > { %v3544_v46 = vpack.c.bf16 %v3543_v16, %v3542_v12 }
0x12ee   : > { %v5031_v31 = vpop.f32.mrf.mxu1 }
0x12ef   : > { %5041 = vmatmul.mubr.msk.bf16.vlgmr.msra.gmra.mxu1 %vm1417_vm3, %v3544_v46 }
0x12f0   : > { %5051 = vmatpush3.bf16.xpose.msra.mxu1 %v3652_v23  ;;  %5052 = vmatprep.mubr.msk.bf16.mxu1 %vm5905_vm1, %v5904_v4 }
0x12f1   : > { %5062 = vmatprep.subr.bf16.mxu1 %v5904_v4 }
0x12f7   : > { %5053 = vmatmul.mubr.msk.bf16.vlgmr.msra.gmra.mxu1 %vm1417_vm3, %v3645_v24 }
0x12f8   : > { %5064 = vmatprep.mubr.msk.bf16.mxu1 %vm5905_vm1, %v5904_v4 }
0x1379   : > { %v3638_v25 = vpop.f32.mrf.mxu0 }
0x137a   : > { %v3694_v26 = vsel %vm1417_vm3, %v3638_v25, -inf }
0x137b   : > { %3695 = vmax.xlane.f32.xlu1 %v3694_v26  ;;  %v5048_v27 = vpop.f32.mrf.mxu0 }
0x137c   : > { %v4679_v27 = vld [vmem:[%s1109_s26] ss:$0 sm:$0xff] }
0x137d   : > { %v3641_v13 = vpop.f32.mrf.mxu0 }
0x137f   : > { %v5049_v28 = vpop.f32.mrf.mxu0 }
0x138c   : > { %3772 = vrot.lane.b32.xlu1 %v6714_v53, %s5914_s8 }
0x13af   : > { %v3585_v30 = vpop.f32.mrf.mxu1 }
0x13b0   : > { %v6897_v32 = vadd.f32 %v3585_v30, %v3306_v29 }
0x13b1   : > { %v5042_v19 = vpop.f32.mrf.mxu1 }
0x13b3   : > { %v3588_v34 = vpop.f32.mrf.mxu1 }
0x13b4   : > { %v6901_v35 = vadd.f32 %v3588_v34, %v3309_v33 }
0x13b5   : > { %v5043_v36 = vpop.f32.mrf.mxu1 }
0x13b7   : > { %v3688_v37 = vpop.f32.mrf.mxu1 }
0x13b8   : > { %v3697_v38 = vsel %vm1417_vm3, %v3688_v37, -inf }
0x13b9   : > { %3698 = vmax.xlane.f32.xlu0 %v3697_v38  ;;  %v5054_v39 = vpop.f32.mrf.mxu1 }
0x13bb   : > { %v3691_v53 = vpop.f32.mrf.mxu1 }
0x13bd   : > { %v5055_v42 = vpop.f32.mrf.mxu1 }
0x13cf   : > { %3724 = vrot.lane.b32.xlu0 %v6712_v52, %s5914_s8 }
0x1404   : > { %v3696_v44 = vpop.xlane.xlu1 %3695 }
0x1405   : > { %v3700_v56 = vsub.f32 %v3638_v25, %v3696_v44  ;;  %v3706_v0 = vsub.f32 -inf, %v3696_v44 }
0x1407   : > { %v3702_v43 = vmul.f32 1.442695, %v3700_v56  ;;  %v3708_v62 = vmul.f32 1.442695, %v3706_v0 }
0x1408   : > { %v3773_v9 = vpop.permute.xlu1 %3772 }
0x1409   : > { %5355 = vpow2.f32 %v3702_v43  ;;  %v3778_v54 = vsel %vm1552_vm4, %v3773_v9, 0 }
0x140a   : > { %5063 = vmatpush3.bf16.msra.mxu1 %v3778_v54 }
0x140b   : > { %5074 = vmatprep.subr.bf16.mxu1 %v5904_v4 }
0x1416   : > { %v5356_v7 = vpop.eup %5355 }
0x1417   : > { %v3714_v45 = vsel %vm1417_vm3, %v5356_v7, 0.0  ;;  %v3722_v51 = vpack.c.bf16 %v5356_v7, %v5356_v7 }
0x1418   : > { %3715 = vadd.xlane.f32.xlu1 %v3714_v45  ;;  %v5262_v45 = vld [vmem:[%s1134_s4] sm:$0xff]  }
0x1442   : > { %v3699_v47 = vpop.xlane.xlu0 %3698 }
0x1443   : > { %v3701_v48 = vsub.f32 %v3688_v37, %v3699_v47  ;;  %v3707_v61 = vsub.f32 -inf, %v3699_v47 }
0x1445   : > { %v3704_v49 = vmul.f32 1.442695, %v3701_v48  ;;  %v3710_v63 = vmul.f32 1.442695, %v3707_v61  ;;  %v4681_v61 = vld [vmem:[%s1125_s19] ss:$0 sm:$0xff] }
0x1446   : > { %v3725_v50 = vpop.permute.xlu0 %3724 }
0x1447   : > { %5357 = vpow2.f32 %v3704_v49  ;;  %v3730_v52 = vsel %vm1552_vm4, %v3725_v50, 0 }
0x1448   : > { %5057 = vmatpush3.bf16.msra.mxu0 %v3730_v52  ;;  %5359 = vpow2.f32 %v3708_v62 }
0x1449   : > { %5068 = vmatprep.subr.bf16.mxu0 %v5904_v4  ;;  %5361 = vpow2.f32 %v3710_v63 }
0x144b   : > { %5059 = vmatmul.mubr.msk.bf16.vlgmr.msra.gmra.mxu0 %vm1417_vm3, %v3722_v51 }
0x144c   : > { %5070 = vmatprep.mubr.msk.bf16.mxu0 %vm5905_vm1, %v5904_v4  ;;  %5069 = vmatpush3.bf16.msra.mxu0 %v3831_v60 }
0x144d   : > { %5082 = vmatprep.subr.bf16.mxu0 %v5904_v4 }
0x1454   : > { %v5358_v55 = vpop.eup %5357 }
0x1455   : > { %v3717_v57 = vsel %vm1417_vm3, %v5358_v55, 0.0  ;;  %v3723_v58 = vpack.c.bf16 %v5358_v55, %v5358_v55  ;;  %v5360_v1 = vpop.eup %5359 }
0x1456   : > { %3718 = vadd.xlane.f32.xlu0 %v3717_v57  ;;  %v5362_v2 = vpop.eup %5361  ;;  %v3712_v5 = vmul.f32 0.0, %v5360_v1 }
0x1457   : > { %5065 = vmatmul.mubr.msk.bf16.vlgmr.msra.gmra.mxu1 %vm1417_vm3, %v3723_v58  ;;  %v3713_v11 = vmul.f32 0.0, %v5362_v2  ;;  %v4680_v58 = vld [vmem:[%s1117_s16] ss:$0 sm:$0xff] }
0x1458   : > { %5078 = vmatprep.mubr.msk.bf16.mxu1 %vm5905_vm1, %v5904_v4 }
0x14a1   : > { %v3716_v3 = vpop.xlane.xlu1 %3715 }
0x14a2   : > { %v3720_v14 = vadd.f32 %v3716_v3, %v3712_v5  ;;  %v5263_v3 = vld [vmem:[%s6398_s29 + $0x18] sm:$0xff]  }
0x14a4   : > { %5363 = vrcp.f32 %v3720_v14  ;;  %v4682_v14 = vld [vmem:[%s1142_s23] ss:$0 sm:$0xff] }
0x14b1   : > { %v5364_v22 = vpop.eup %5363 }
0x14df   : > { %v3719_v10 = vpop.xlane.xlu0 %3718 }
0x14e0   : > { %v3721_v15 = vadd.f32 %v3719_v10, %v3713_v11  ;;  %v5265_v10 = vld [vmem:[%s6398_s29 + $0x8] sm:$0xff]  }
0x14e2   : > { %5365 = vrcp.f32 %v3721_v15 }
0x14ef   : > { %v5366_v6 = vpop.eup %5365 }
0x150b   : > { %v3766_v16 = vpop.f32.mrf.mxu0 }
0x150c   : > { %v3820_v21 = vadd.f32 %v3766_v16, %v3712_v5  ;;  %v5264_v5 = vld [vmem:[%s6398_s29 + $0x10] sm:$0xff]  }
0x150d   : > { %v5060_v18 = vpop.f32.mrf.mxu0 }
0x150e   : > { %v3824_v31 = vmul.f32 %v5364_v22, %v3820_v21 }
0x150f   : > { %v3769_v17 = vpop.f32.mrf.mxu0 }
0x1511   : > { %v5061_v8 = vpop.f32.mrf.mxu0 }
0x1517   : > { %v3814_v20 = vpop.f32.mrf.mxu1 }
0x1518   : > { %v3821_v12 = vadd.f32 %v3814_v20, %v3713_v11  ;;  %v5266_v11 = vld [vmem:[%s6398_s29] sm:$0xff]  }
0x1519   : > { %v5066_v46 = vpop.f32.mrf.mxu1 }
0x151a   : > { %v3825_v23 = vmul.f32 %v5366_v6, %v3821_v12 }
0x151b   : > { %v3817_v24 = vpop.f32.mrf.mxu1 }
0x151c   : > { %v3826_v25 = vpack.c.bf16 %v3825_v23, %v3824_v31 }
0x151d   : > { %v5067_v26 = vpop.f32.mrf.mxu1 }
0x151e   : > { %5071 = vmatmul.mubr.msk.bf16.vlgmr.msra.gmra.mxu0 %vm1417_vm3, %v3826_v25 }
0x151f   : > { %5090 = vmatprep.mubr.msk.bf16.mxu0 %vm5905_vm1, %v5904_v4  ;;  %5083 = vmatpush3.bf16.msra.mxu0 %v5263_v3 }
0x1520   : > { %5084 = vmatprep.subr.bf16.mxu0 %v5904_v4 }
0x1523   : > { %5085 = vmatpush3.bf16.msra.mxu0 %v5264_v5 }
0x1524   : > { %5086 = vmatprep.subr.bf16.mxu0 %v5904_v4 }
0x1527   : > { %5087 = vmatpush3.bf16.msra.mxu0 %v5265_v10 }
0x1528   : > { %5088 = vmatprep.subr.bf16.mxu0 %v5904_v4 }
0x152b   : > { %5089 = vmatpush3.bf16.msra.mxu0 %v5266_v11 }
0x15de   : > { %v3867_v13 = vpop.f32.mrf.mxu0 }
0x15df   : > { %v3874_v28 = vadd.f32 %v3867_v13, %v6897_v32 }
0x15e0   : > { %v5072_v29 = vpop.f32.mrf.mxu0 }
0x15e1   : > { %v3882_v30 = vadd.f32 %v4679_v27, %v3874_v28 }
0x15e2   : > { %v3870_v19 = vpop.f32.mrf.mxu0 }
0x15e3   : > { %v3875_v33 = vadd.f32 %v3870_v19, %v6901_v35  ;;  %v3884_v34 = vadd.f32 %v3882_v30, %v6701_v40 }
0x15e4   : > { %v5073_v36 = vpop.f32.mrf.mxu0 }
0x15e5   : > { %v3883_v37 = vadd.f32 %v4679_v27, %v3875_v33  ;;  %v3888_v38 = vsel %vm1353_vm2, %v3884_v34, 0.0  ;;  %v4686_v36 = vld [vmem:[%s1305_s28] ss:$0 sm:$0xff] }
0x15e6   : > { %3889 = vadd.xlane.f32.xlu0 %v3888_v38 }
0x15e7   : > { %v3885_v39 = vadd.f32 %v3883_v37, %v6703_v41  ;;  %v5261_v41 = vld [vmem:[%s1134_s4 + $0x8] sm:$0xff]  }
0x15e8   : > { %5075 = vmatpush3.bf16.msra.mxu1 %v5261_v41 }
0x15e9   : > { %v3891_v53 = vsel %vm1353_vm2, %v3885_v39, 0.0  ;;  %5076 = vmatprep.subr.bf16.mxu1 %v5904_v4 }
0x15ea   : > { %3892 = vadd.xlane.f32.xlu1 %v3891_v53 }
0x15ec   : > { %5077 = vmatpush3.bf16.msra.mxu1 %v5262_v45 }
0x166f   : > { %v3890_v32 = vpop.xlane.xlu0 %3889 }
0x1670   : > { %v3894_v42 = vmul.f32 0.03125, %v3890_v32 }
0x1672   : > { %v3896_v44 = vsub.f32 %v3884_v34, %v3894_v42 }
0x1673   : > { %v3893_v56 = vpop.xlane.xlu1 %3892 }
0x1674   : > { %v3895_v43 = vmul.f32 0.03125, %v3893_v56  ;;  %v3898_v35 = vmul.f32 %v3896_v44, %v3896_v44 }
0x1676   : > { %v3897_v9 = vsub.f32 %v3885_v39, %v3895_v43  ;;  %v3900_v40 = vsel %vm1353_vm2, %v3898_v35, 0.0 }
0x1677   : > { %3901 = vadd.xlane.f32.xlu0 %v3900_v40 }
0x1678   : > { %v3899_v54 = vmul.f32 %v3897_v9, %v3897_v9 }
0x167a   : > { %v3903_v7 = vsel %vm1353_vm2, %v3899_v54, 0.0 }
0x167b   : > { %3904 = vadd.xlane.f32.xlu1 %v3903_v7 }
0x1700   : > { %v3902_v47 = vpop.xlane.xlu0 %3901 }
0x1701   : > { %v3906_v48 = vmul.f32 0.03125, %v3902_v47 }
0x1703   : > { %v3908_v49 = vadd.f32 1e-05, %v3906_v48 }
0x1704   : > { %v3905_v50 = vpop.xlane.xlu1 %3904 }
0x1705   : > { %5367 = vrsqrt.f32 %v3908_v49  ;;  %v3907_v52 = vmul.f32 0.03125, %v3905_v50 }
0x1707   : > { %v3909_v51 = vadd.f32 1e-05, %v3907_v52 }
0x1709   : > { %5369 = vrsqrt.f32 %v3909_v51 }
0x1712   : > { %v5368_v55 = vpop.eup %5367 }
0x1713   : > { %v3912_v57 = vmul.f32 %v5368_v55, %v3896_v44 }
0x1715   : > { %v3920_v0 = vmul.f32 %v4680_v58, %v3912_v57 }
0x1716   : > { %v5370_v59 = vpop.eup %5369 }
0x1717   : > { %v3913_v60 = vmul.f32 %v5370_v59, %v3897_v9  ;;  %v3928_v63 = vadd.f32 %v4681_v61, %v3920_v0  ;;  %v4692_v0 = vld [vmem:[%s1308_s11] ss:$0 sm:$0xff] }
0x1719   : > { %v3921_v62 = vmul.f32 %v4680_v58, %v3913_v60 }
0x171b   : > { %v3929_v1 = vadd.f32 %v4681_v61, %v3921_v62  ;;  %v4693_v62 = vld [vmem:[%s1311_s18] ss:$0 sm:$0xff] }
0x171d   : > { %v3935_v2 = vpack.c.bf16 %v3929_v1, %v3928_v63 }
0x171f   : > { %5079 = vmatmul.mubr.msk.bf16.vlgmr.msra.gmra.mxu1 %vm1353_vm2, %v3935_v2 }
0x17df   : > { %v3991_v15 = vpop.f32.mrf.mxu1 }
0x17e0   : > { %v3992_v16 = vadd.f32 %v4682_v14, %v3991_v15 }
0x17e1   : > { %v5080_v18 = vpop.f32.mrf.mxu1 }
0x17e2   : > { %v4000_v17 = vmul.f32 0.044715, %v3992_v16  ;;  %v3998_v28 = vmul.f32 0.5, %v3992_v16 }
0x17e3   : > { %v3994_v8 = vpop.f32.mrf.mxu1 }
0x17e4   : > { %v4002_v21 = vmul.f32 %v4000_v17, %v3992_v16  ;;  %v3995_v20 = vadd.f32 %v4682_v14, %v3994_v8 }
0x17e5   : > { %v5081_v22 = vpop.f32.mrf.mxu1 }
0x17e6   : > { %v4004_v12 = vmul.f32 %v4002_v21, %v3992_v16  ;;  %v4001_v6 = vmul.f32 0.044715, %v3995_v20  ;;  %v3999_v29 = vmul.f32 0.5, %v3995_v20 }
0x17e8   : > { %v4006_v46 = vadd.f32 %v4004_v12, %v3992_v16  ;;  %v4003_v31 = vmul.f32 %v4001_v6, %v3995_v20 }
0x17ea   : > { %v4008_v23 = vmul.f32 0.7978846, %v4006_v46  ;;  %v4005_v24 = vmul.f32 %v4003_v31, %v3995_v20 }
0x17ec   : > { %5371 = vtanh.f32 %v4008_v23  ;;  %v4007_v4 = vadd.f32 %v4005_v24, %v3995_v20 }
0x17ee   : > { %v4009_v25 = vmul.f32 0.7978846, %v4007_v4 }
0x17f0   : > { %5373 = vtanh.f32 %v4009_v25 }
0x17f9   : > { %v5372_v26 = vpop.eup %5371 }
0x17fa   : > { %v4012_v27 = vadd.f32 1.0, %v5372_v26 }
0x17fc   : > { %v4014_v19 = vmul.f32 %v4012_v27, %v3998_v28 }
0x17fd   : > { %v5374_v13 = vpop.eup %5373 }
0x17fe   : > { %v4013_v30 = vadd.f32 1.0, %v5374_v13 }
0x1800   : > { %v4015_v33 = vmul.f32 %v4013_v30, %v3999_v29 }
0x1802   : > { %v4025_v34 = vpack.c.bf16 %v4015_v33, %v4014_v19 }
0x1804   : > { %5091 = vmatmul.mubr.msk.bf16.vlgmr.msra.gmra.mxu0 %vm4056_vm6, %v4025_v34 }
0x18c4   : > { %v4094_v37 = vpop.f32.mrf.mxu0 }
0x18c5   : > { %v4095_v38 = vadd.f32 %v4686_v36, %v4094_v37 }
0x18c6   : > { %v5092_v39 = vpop.f32.mrf.mxu0 }
0x18c7   : > { %v4101_v53 = vadd.f32 %v4095_v38, %v3928_v63 }
0x18c8   : > { %v4097_v32 = vpop.f32.mrf.mxu0 }
0x18c9   : > { %v4098_v42 = vadd.f32 %v4686_v36, %v4097_v32  ;;  %v4105_v44 = vsel %vm1353_vm2, %v4101_v53, 0.0 }
0x18ca   : > { %4106 = vadd.xlane.f32.xlu0 %v4105_v44  ;;  %v5093_v56 = vpop.f32.mrf.mxu0 }
0x18cb   : > { %v4102_v43 = vadd.f32 %v4098_v42, %v3929_v1 }
0x18cd   : > { %v4108_v35 = vsel %vm1353_vm2, %v4102_v43, 0.0 }
0x18ce   : > { %4109 = vadd.xlane.f32.xlu1 %v4108_v35 }
0x1953   : > { %v4107_v9 = vpop.xlane.xlu0 %4106 }
0x1954   : > { %v4111_v40 = vmul.f32 0.03125, %v4107_v9 }
0x1956   : > { %v4113_v54 = vsub.f32 %v4101_v53, %v4111_v40 }
0x1957   : > { %v4110_v7 = vpop.xlane.xlu1 %4109 }
0x1958   : > { %v4112_v41 = vmul.f32 0.03125, %v4110_v7  ;;  %v4115_v45 = vmul.f32 %v4113_v54, %v4113_v54 }
0x195a   : > { %v4114_v47 = vsub.f32 %v4102_v43, %v4112_v41  ;;  %v4117_v48 = vsel %vm1353_vm2, %v4115_v45, 0.0 }
0x195b   : > { %4118 = vadd.xlane.f32.xlu0 %v4117_v48 }
0x195c   : > { %v4116_v49 = vmul.f32 %v4114_v47, %v4114_v47 }
0x195e   : > { %v4120_v50 = vsel %vm1353_vm2, %v4116_v49, 0.0 }
0x195f   : > { %4121 = vadd.xlane.f32.xlu1 %v4120_v50 }
0x19e4   : > { %v4119_v52 = vpop.xlane.xlu0 %4118 }
0x19e5   : > { %v4123_v51 = vmul.f32 0.03125, %v4119_v52 }
0x19e7   : > { %v4125_v55 = vadd.f32 1e-05, %v4123_v51 }
0x19e8   : > { %v4122_v57 = vpop.xlane.xlu1 %4121 }
0x19e9   : > { %5375 = vrsqrt.f32 %v4125_v55  ;;  %v4124_v58 = vmul.f32 0.03125, %v4122_v57 }
0x19eb   : > { %v4126_v59 = vadd.f32 1e-05, %v4124_v58 }
0x19ed   : > { %5377 = vrsqrt.f32 %v4126_v59 }
0x19f6   : > { %v5376_v60 = vpop.eup %5375 }
0x19f7   : > { %v4129_v61 = vmul.f32 %v5376_v60, %v4113_v54 }
0x19f9   : > { %v4137_v63 = vmul.f32 %v4692_v0, %v4129_v61 }
0x19fa   : > { %v5378_v1 = vpop.eup %5377 }
0x19fb   : > { %v4145_v2 = vadd.f32 %v4693_v62, %v4137_v63  ;;  %v4130_v3 = vmul.f32 %v5378_v1, %v4114_v47  ;;  %4150 = sbr.rel (%p4694_p3) target bundleno = 6658 (0x1a02), region = 184 }
0x19fd   : > { %v4138_v5 = vmul.f32 %v4692_v0, %v4130_v3 }
0x19ff   : > { %v4146_v10 = vadd.f32 %v4693_v62, %v4138_v5 }
0x1a00   : > { %4151 = vst.msk [vmem:[#allocation20] sm:$0xff] %vm1353_vm2, %v4145_v2 }
0x1a01   : > { %4152 = vst.msk [vmem:[#allocation20 + $0x8] sm:$0xff] %vm1353_vm2, %v4146_v10 }
0x1a02 PF: > { %s7145_s11 = sld [smem:[#allocation27_spill]] }
0x1a08   : > { %p4695_p11 = scmp.ne.s32.totalorder %s7145_s11, 1 }
0x1a09   : > { %s7146_s20 = sld [smem:[#allocation55_spill]] (!%p4695_p11) }
0x1a0a   : > { %4156 = sbr.rel (%p4695_p11) target bundleno = 6984 (0x1b48), region = 188  ;;  %s7147_s7 = sld [smem:[#allocation56_spill]] (!%p4695_p11) }
0x1a0f   : > { %v4159_v11 = vsel %vm1353_vm2, %v4145_v2, 0.0  ;;  %v4162_v14 = vsel %vm1353_vm2, %v4146_v10, 0.0  ;;  %v4696_v27 = vld [vmem:[%s7146_s20] ss:$0 sm:$0xff] }
0x1a10   : > { %4160 = vadd.xlane.f32.xlu0 %v4159_v11  ;;  %v4697_v28 = vld [vmem:[%s7147_s7] ss:$0 sm:$0xff] }
0x1a14   : > { %4163 = vadd.xlane.f32.xlu0 %v4162_v14 }
0x1a99   : > { %v4161_v15 = vpop.xlane.xlu0 %4160 }
0x1a9a   : > { %v4165_v16 = vmul.f32 0.03125, %v4161_v15 }
0x1a9c   : > { %v4167_v18 = vsub.f32 %v4145_v2, %v4165_v16 }
0x1a9d   : > { %v4164_v17 = vpop.xlane.xlu0 %4163 }
0x1a9e   : > { %v4166_v8 = vmul.f32 0.03125, %v4164_v17  ;;  %v4169_v21 = vmul.f32 %v4167_v18, %v4167_v18 }
0x1aa0   : > { %v4168_v20 = vsub.f32 %v4146_v10, %v4166_v8  ;;  %v4171_v22 = vsel %vm1353_vm2, %v4169_v21, 0.0 }
0x1aa1   : > { %4172 = vadd.xlane.f32.xlu1 %v4171_v22 }
0x1aa2   : > { %v4170_v12 = vmul.f32 %v4168_v20, %v4168_v20 }
0x1aa4   : > { %v4174_v6 = vsel %vm1353_vm2, %v4170_v12, 0.0 }
0x1aa5   : > { %4175 = vadd.xlane.f32.xlu1 %v4174_v6 }
0x1b2a   : > { %v4173_v46 = vpop.xlane.xlu1 %4172 }
0x1b2b   : > { %v4177_v31 = vmul.f32 0.03125, %v4173_v46 }
0x1b2d   : > { %v4179_v23 = vadd.f32 1e-05, %v4177_v31 }
0x1b2e   : > { %v4176_v24 = vpop.xlane.xlu1 %4175 }
0x1b2f   : > { %5379 = vrsqrt.f32 %v4179_v23  ;;  %v4178_v4 = vmul.f32 0.03125, %v4176_v24 }
0x1b31   : > { %v4180_v25 = vadd.f32 1e-05, %v4178_v4 }
0x1b33   : > { %5381 = vrsqrt.f32 %v4180_v25 }
0x1b3c   : > { %v5380_v26 = vpop.eup %5379 }
0x1b3d   : > { %v4183_v13 = vmul.f32 %v5380_v26, %v4167_v18 }
0x1b3f   : > { %v4191_v29 = vmul.f32 %v4696_v27, %v4183_v13 }
0x1b40   : > { %v5382_v30 = vpop.eup %5381 }
0x1b41   : > { %v4199_v19 = vadd.f32 %v4697_v28, %v4191_v29  ;;  %v4184_v33 = vmul.f32 %v5382_v30, %v4168_v20 }
0x1b43   : > { %4201 = vst.msk [vmem:[#allocation20] sm:$0xff] %vm1353_vm2, %v4199_v19  ;;  %v4192_v34 = vmul.f32 %v4696_v27, %v4184_v33 }
0x1b45   : > { %v4200_v36 = vadd.f32 %v4697_v28, %v4192_v34 }
0x1b47   : > { %4202 = vst.msk [vmem:[#allocation20 + $0x8] sm:$0xff] %vm1353_vm2, %v4200_v36 }
0x1b48 PF: > { %s7148_s26 = sld [smem:[#allocation29_spill]]  ;;  %s5917_s19 = smov [#allocation20]  }
0x1b49   : > { %s4212_s4 = sshll.u32 %s5917_s19, 4  ;;  %s4213_s4 = int_to_ptr.vmem [resolvable:$true] %s4212_s4 }
0x1b4a   : > { %s5799_s23 = scalar_lea.vmem %s4213_s4, 256  ;;  %p5806_p4 = scmp.lt.s32.totalorder %s4213_s4, %s4213_s4 }
0x1b4b   : > { %p5800_p1 = scmp.ne.s32.totalorder %s4213_s4, %s5799_s23  ;;  %p5807_p6 = scmp.lt.s32.totalorder %s5799_s23, %s5799_s23 }
0x1b4d   : > { %p5808_p7 = por %p5807_p6, %p5806_p4 }
0x1b4e   : > { %p5184_p13 = scmp.eq.s32.totalorder %s7148_s26, 1 }
0x1b50   : > { %p5801_p0 = pnand %p5800_p1, %p5184_p13 }
0x1b52   : > { %p5802_p2 = pneg %p5801_p0 }
0x1b54   : > { %p5809_p9 = pnand %p5808_p7, %p5802_p2 }
0x1b56   : > { %5812 = shalt.err (!%p5809_p9)
}
0x1b57   : > { %s5918_s13 = smov 128   ;;  %s5919_s24 = smov 8  }
0x1b58   : > { %s7149_s9 = sld [smem:[#allocation57_spill]] }
0x1b5e   : > { %5129 = dma.vmem_to_hbm [thread:$0]  (%p5184_p13), %s4213_s4, 256, %s7149_s9, [#allocation4], %s5918_s13, %s5918_s13, %s5919_s24  }
0x1b5f   : > { %5860 = dma.done.wait (%p5184_p13), [#allocation4], 256  }
0x1b60   : > { %5862 = vsyncadd (%p5184_p13), [#allocation4], 4294967040 }
0x1b61 PF: > { %s7150_s8 = sld [smem:[#allocation28_spill]]  ;;  %s7155_s28 = smov %s5881_s6 }
0x1b62   : > { %s7151_s5 = sld [smem:[#allocation25_spill]] }
0x1b63   : > { %s7152_s26 = sld [smem:[#allocation26_spill]] }
0x1b64   : > { %s7153_s27 = sld [smem:[#allocation32_spill]] }
0x1b65   : > { %s7154_s12 = sld [smem:[#allocation30_spill]] }
0x1b67   : > { %s37_s2 = sadd.s32 1, %s7150_s8  }
0x1b68   : > { %p34_p12 = scmp.ge.s32.totalorder %s37_s2, 4  }
0x1b6a   :  { %36 = sbr.rel (!%p34_p12) target bundleno = 30 (0x1e), region = 328 }
0x1b6b   : > { %s7156_s6 = smov %s7154_s12 }
0x1b6f   :  { %4228 = vsyncpa [#allocation3], 1 }
0x1b70   :  { %4230 = vsyncpa [#allocation3 + $0x1], 1 }
0x1b71   :  { %4231 = vsyncpa [#allocation6], 1 }
0x1b72   :  { %4232 = vsyncpa [#allocation4], 1 }
0x1b73   :  { %4234 = vsyncpa [#allocation4 + $0x1], 1 }

</bundles_post_ra>
